<compile_context>
chip_gen: v7x
topology: tpu7x:2x2x1
jax: 0.10.0
libtpu: 0.0.40
codegen_flags: <defaults>
</compile_context>

<pallas_src>
import functools

import jax
import jax.numpy as jnp
from jax import lax
from jax.experimental import pallas as pl
from jax.experimental.pallas import tpu as pltpu


# ----------------------------- Pallas kernels ------------------------------ #

def _fused_convs_kernel(xpad_ref, w1_ref, s1_ref, b1_ref, w2_ref, s2_ref,
                        b2_ref, w3_ref, s3_ref, b3_ref, out_ref, sesum_ref):
    # xpad : (1, H+2, W+2, Cin) bf16 — zero ring already baked into the data
    # w1   : (Cin, width) bf16   w2: (9, width, width) bf16   w3: (width, cexp) bf16
    # s*/b*: (1, C) f32 folded BN scale / bias
    # out  : (1, TH, W, cexp) bf16    per-row-tile conv3+bn3 output
    # sesum: (1, 1, 1, cexp) f32      per-row-tile channel sums (SE squeeze)
    r = pl.program_id(1)
    _, Hp2, Wp2, Cin = xpad_ref.shape
    H, W = Hp2 - 2, Wp2 - 2
    width = w1_ref.shape[1]
    TH = out_ref.shape[1]
    cexp = out_ref.shape[3]

    # ---- conv1 (1x1) + bn1 + relu over a (TH+2)-row halo of the image -------
    h0 = pl.multiple_of(r * TH, TH)
    xh = xpad_ref[pl.ds(0, 1), pl.ds(h0, TH + 2), :, :]       # (1, TH+2, W+2, Cin)
    y1 = jnp.dot(xh.reshape((TH + 2) * Wp2, Cin), w1_ref[...],
                 preferred_element_type=jnp.float32)
    y1 = jnp.maximum(y1 * s1_ref[...] + b1_ref[...], 0.0)
    y1 = y1.reshape(TH + 2, Wp2, width)

    # conv2's SAME padding must be zero AFTER conv1/bn1/relu: zero every halo
    # position that originated from the padded ring of the input image.
    row = lax.broadcasted_iota(jnp.int32, (TH + 2, Wp2, 1), 0) + h0
    col = lax.broadcasted_iota(jnp.int32, (TH + 2, Wp2, 1), 1)
    valid = (row >= 1) & (row <= H) & (col >= 1) & (col <= W)
    y1 = jnp.where(valid, y1, 0.0)                             # f32, exact zeros

    # ---- conv2 (3x3 SAME, stride 1) as a 9-tap matmul accumulation ----------
    y2 = jnp.zeros((TH * W, width), jnp.float32)
    for kh in range(3):
        for kw in range(3):
            tap = y1[kh:kh + TH, kw:kw + W, :].reshape(TH * W, width)
            y2 = y2 + jnp.dot(tap.astype(jnp.bfloat16), w2_ref[kh * 3 + kw],
                              preferred_element_type=jnp.float32)
    y2 = jnp.maximum(y2 * s2_ref[...] + b2_ref[...], 0.0)

    # ---- conv3 (1x1) + bn3 (no relu before SE) ------------------------------
    y3 = jnp.dot(y2.astype(jnp.bfloat16), w3_ref[...],
                 preferred_element_type=jnp.float32)
    y3 = y3 * s3_ref[...] + b3_ref[...]

    out_ref[...] = y3.reshape(1, TH, W, cexp).astype(out_ref.dtype)
    sesum_ref[...] = y3.sum(axis=0).reshape(1, 1, 1, cexp)


def _se_apply_kernel(sesum_ref, sw1_ref, sb1_ref, sw2_ref, sb2_ref,
                     y_ref, x_ref, o_ref, *, inv_hw):
    # sesum: (1, n_rt, 1, C) f32;  SE fc1: (C, Cr), fc2: (Cr, C)
    # y (bf16 conv output), identity x (f32), o (f32): (1, H, W, C)
    pooled = (sesum_ref[...].sum(axis=(0, 1, 2)) * inv_hw).reshape(1, -1)
    h = jnp.maximum(
        jnp.dot(pooled, sw1_ref[...], preferred_element_type=jnp.float32)
        + sb1_ref[...], 0.0)
    g = jax.nn.sigmoid(
        jnp.dot(h, sw2_ref[...], preferred_element_type=jnp.float32)
        + sb2_ref[...])
    g = g.reshape(1, 1, 1, -1)
    o_ref[...] = jnp.maximum(y_ref[...].astype(jnp.float32) * g + x_ref[...], 0.0)


# ------------------------------ pallas_call glue ---------------------------- #

def _vmem_limit_bytes():
    # v5e/v6e have 128 MiB of VMEM per TensorCore, v7x only 64 MiB: derive the
    # budget instead of hard-coding it; fall back to a known-safe 32 MiB.
    try:
        cap = pltpu.get_tpu_info().vmem_capacity_bytes
        return int(min(cap * 3 // 4, 96 * 1024 * 1024))
    except Exception:
        return 32 * 1024 * 1024


def _pick_row_tile(h, w, target_m=1024):
    # Largest divisor of h keeping M = th*w within ~1024 MXU rows per pass.
    best = 1
    for th in range(1, h + 1):
        if h % th == 0 and th * w <= max(target_m, w):
            best = th
    return best


def bottleneck_forward_nhwc(x_nhwc, p):
    B, H, W, cin = x_nhwc.shape
    width = p["w1"].shape[1]
    cexp = p["w3"].shape[1]
    th = _pick_row_tile(H, W)
    n_rt = H // th
    vmem = _vmem_limit_bytes()

    # Zero ring so every row tile can slice a statically-sized (TH+2)-row halo.
    x_pad = jnp.pad(x_nhwc, ((0, 0), (1, 1), (1, 1), (0, 0))).astype(jnp.bfloat16)
    w1 = p["w1"].astype(jnp.bfloat16)
    w2 = p["w2"].astype(jnp.bfloat16)          # (9, width, width)
    w3 = p["w3"].astype(jnp.bfloat16)

    y, sesum = pl.pallas_call(
        _fused_convs_kernel,
        out_shape=(jax.ShapeDtypeStruct((B, H, W, cexp), jnp.bfloat16),
                   jax.ShapeDtypeStruct((B, n_rt, 1, cexp), jnp.float32)),
        grid=(B, n_rt),
        in_specs=[
            pl.BlockSpec((1, H + 2, W + 2, cin), lambda b, r: (b, 0, 0, 0)),
            pl.BlockSpec((cin, width), lambda b, r: (0, 0)),
            pl.BlockSpec((1, width), lambda b, r: (0, 0)),
            pl.BlockSpec((1, width), lambda b, r: (0, 0)),
            pl.BlockSpec((9, width, width), lambda b, r: (0, 0, 0)),
            pl.BlockSpec((1, width), lambda b, r: (0, 0)),
            pl.BlockSpec((1, width), lambda b, r: (0, 0)),
            pl.BlockSpec((width, cexp), lambda b, r: (0, 0)),
            pl.BlockSpec((1, cexp), lambda b, r: (0, 0)),
            pl.BlockSpec((1, cexp), lambda b, r: (0, 0)),
        ],
        out_specs=(
            pl.BlockSpec((1, th, W, cexp), lambda b, r: (b, r, 0, 0)),
            pl.BlockSpec((1, 1, 1, cexp), lambda b, r: (b, r, 0, 0)),
        ),
        compiler_params=pltpu.CompilerParams(
            dimension_semantics=("parallel", "parallel"),
            vmem_limit_bytes=vmem),
    )(x_pad, w1, p["bn1_s"], p["bn1_b"], w2, p["bn2_s"], p["bn2_b"],
      w3, p["bn3_s"], p["bn3_b"])

    # SE gate fused into the elementwise apply pass; one whole image per step.
    out = pl.pallas_call(
        functools.partial(_se_apply_kernel, inv_hw=1.0 / float(H * W)),
        out_shape=jax.ShapeDtypeStruct((B, H, W, cexp), jnp.float32),
        grid=(B,),
        in_specs=[
            pl.BlockSpec((1, n_rt, 1, cexp), lambda b: (b, 0, 0, 0)),
            pl.BlockSpec(p["se_w1"].shape, lambda b: (0, 0)),
            pl.BlockSpec(p["se_b1"].shape, lambda b: (0, 0)),
            pl.BlockSpec(p["se_w2"].shape, lambda b: (0, 0)),
            pl.BlockSpec(p["se_b2"].shape, lambda b: (0, 0)),
            pl.BlockSpec((1, H, W, cexp), lambda b: (b, 0, 0, 0)),
            pl.BlockSpec((1, H, W, cexp), lambda b: (b, 0, 0, 0)),
        ],
        out_specs=pl.BlockSpec((1, H, W, cexp), lambda b: (b, 0, 0, 0)),
        compiler_params=pltpu.CompilerParams(
            dimension_semantics=("parallel",),
            vmem_limit_bytes=vmem),
    )(sesum, p["se_w1"], p["se_b1"], p["se_w2"], p["se_b2"], y, x_nhwc)
    return out


# ------------------------------ Bottleneck forward --------------------------- #

def bottleneck_forward(x_nchw, p):
    """x_nchw: (B, inplanes, H, W); returns (B, planes*4, H, W)."""
    # NCHW <-> NHWC shims for PyTorch-layout callers; NHWC callers should use
    # bottleneck_forward_nhwc directly and skip both transposes.
    x = jnp.transpose(x_nchw, (0, 2, 3, 1)).astype(jnp.float32)
    out = bottleneck_forward_nhwc(x, p)
    return jnp.transpose(out, (0, 3, 1, 2))


# ------------------------------ pure-JAX reference --------------------------- #

def bottleneck_reference(x_nchw, p):
    """Reference that mirrors the kernel's bf16 rounding points exactly."""
    x = jnp.transpose(x_nchw, (0, 2, 3, 1)).astype(jnp.float32)
    bf = lambda a: a.astype(jnp.bfloat16).astype(jnp.float32)  # noqa: E731
    dn = ("NHWC", "HWIO", "NHWC")

    def conv1x1(v, w):
        return lax.conv_general_dilated(v, w[None, None], (1, 1), "VALID",
                                        dimension_numbers=dn)

    out = jnp.maximum(conv1x1(bf(x), bf(p["w1"])) * p["bn1_s"] + p["bn1_b"], 0.0)
    w3x3 = p["w2"].reshape(3, 3, *p["w2"].shape[1:])
    out = lax.conv_general_dilated(bf(out), bf(w3x3), (1, 1), "SAME",
                                   dimension_numbers=dn)
    out = jnp.maximum(out * p["bn2_s"] + p["bn2_b"], 0.0)
    out = conv1x1(bf(out), bf(p["w3"])) * p["bn3_s"] + p["bn3_b"]
    pooled = jnp.mean(out, axis=(1, 2))
    h = jnp.maximum(pooled @ p["se_w1"] + p["se_b1"], 0.0)
    g = jax.nn.sigmoid(h @ p["se_w2"] + p["se_b2"])
    out = bf(out) * g[:, None, None, :] + x
    out = jnp.maximum(out, 0.0)
    return jnp.transpose(out, (0, 3, 1, 2))


# ------------------------------ param init ---------------------------------- #

def make_params(key, inplanes, planes, se_ratio=16, eps=1e-5):
    expansion = 4
    width = planes                      # base_width=64, groups=1
    cexp = planes * expansion
    assert inplanes == cexp, "no-downsample residual requires inplanes == planes*4"
    cr = max(cexp // se_ratio, 1)

    keys = jax.random.split(key, 16)

    def bn(kg, kb, km, kv, c):
        gamma = 1.0 + 0.1 * jax.random.normal(kg, (c,), jnp.float32)
        beta = 0.1 * jax.random.normal(kb, (c,), jnp.float32)
        mean = 0.1 * jax.random.normal(km, (c,), jnp.float32)
        var = jnp.abs(jax.random.normal(kv, (c,), jnp.float32)) + 0.5
        s = gamma / jnp.sqrt(var + eps)
        b = beta - mean * s
        return s.reshape(1, c), b.reshape(1, c)

    bn1_s, bn1_b = bn(keys[3], keys[4], keys[5], keys[6], width)
    bn2_s, bn2_b = bn(keys[7], keys[8], keys[9], keys[10], width)
    bn3_s, bn3_b = bn(keys[11], keys[12], keys[13], keys[14], cexp)

    p = {
        "w1": 0.1 * jax.random.normal(keys[0], (inplanes, width), jnp.float32),
        "w2": 0.1 * jax.random.normal(keys[1], (9, width, width), jnp.float32),
        "w3": 0.1 * jax.random.normal(keys[2], (width, cexp), jnp.float32),
        "bn1_s": bn1_s, "bn1_b": bn1_b,
        "bn2_s": bn2_s, "bn2_b": bn2_b,
        "bn3_s": bn3_s, "bn3_b": bn3_b,
        "se_w1": 0.1 * jax.random.normal(keys[15], (cexp, cr), jnp.float32),
        "se_b1": jnp.zeros((1, cr), jnp.float32),
        "se_w2": 0.1 * jax.random.normal(
            jax.random.fold_in(keys[15], 1), (cr, cexp), jnp.float32),
        "se_b2": jnp.zeros((1, cexp), jnp.float32),
    }
    return p


# ------------------------------ main ----------------------------------------- #

if __name__ == "__main__":
    key = jax.random.PRNGKey(0)
    kx, kp = jax.random.split(key)

    B, inplanes, planes, H, W = 2, 32, 8, 16, 16
    x = jax.random.normal(kx, (B, inplanes, H, W), jnp.float32)
    params = make_params(kp, inplanes, planes)

    out = jax.jit(bottleneck_forward)(x, params)
    out = jax.block_until_ready(out)

    ref = jax.block_until_ready(bottleneck_reference(x, params))
    assert out.shape == (B, planes * 4, H, W)
    assert jnp.allclose(out, ref, rtol=2e-3, atol=2e-3), (
        float(jnp.max(jnp.abs(out - ref))))

    print("KERNEL_OK")
</pallas_src>

<mosaic_0001>
module attributes {stable_mosaic.version = 11 : i64} {
  func.func @_fused_convs_kernel(%arg0: i32, %arg1: i32, %arg2: memref<1x18x18x32xbf16, #tpu.memory_space<vmem>>, %arg3: memref<32x8xbf16, #tpu.memory_space<vmem>>, %arg4: memref<1x8xf32, #tpu.memory_space<vmem>>, %arg5: memref<1x8xf32, #tpu.memory_space<vmem>>, %arg6: memref<9x8x8xbf16, #tpu.memory_space<vmem>>, %arg7: memref<1x8xf32, #tpu.memory_space<vmem>>, %arg8: memref<1x8xf32, #tpu.memory_space<vmem>>, %arg9: memref<8x32xbf16, #tpu.memory_space<vmem>>, %arg10: memref<1x32xf32, #tpu.memory_space<vmem>>, %arg11: memref<1x32xf32, #tpu.memory_space<vmem>>, %arg12: memref<1x16x16x32xbf16, #tpu.memory_space<vmem>>, %arg13: memref<1x1x1x32xf32, #tpu.memory_space<vmem>>) attributes {dimension_semantics = [#tpu.dimension_semantics<parallel>, #tpu.dimension_semantics<parallel>], iteration_bounds = array<i64: 2, 1>, scalar_prefetch = 0 : i64, scratch_operands = 0 : i64, tpu.core_type = #tpu.core_type<tc>, window_params = [{transform_indices = @transform_0, window_bounds = array<i64: 1, 18, 18, 32>}, {pipeline_mode = #tpu.pipeline_mode<synchronous>, transform_indices = @transform_1, window_bounds = array<i64: 32, 8>}, {pipeline_mode = #tpu.pipeline_mode<synchronous>, transform_indices = @transform_2, window_bounds = array<i64: 1, 8>}, {pipeline_mode = #tpu.pipeline_mode<synchronous>, transform_indices = @transform_3, window_bounds = array<i64: 1, 8>}, {pipeline_mode = #tpu.pipeline_mode<synchronous>, transform_indices = @transform_4, window_bounds = array<i64: 9, 8, 8>}, {pipeline_mode = #tpu.pipeline_mode<synchronous>, transform_indices = @transform_5, window_bounds = array<i64: 1, 8>}, {pipeline_mode = #tpu.pipeline_mode<synchronous>, transform_indices = @transform_6, window_bounds = array<i64: 1, 8>}, {pipeline_mode = #tpu.pipeline_mode<synchronous>, transform_indices = @transform_7, window_bounds = array<i64: 8, 32>}, {pipeline_mode = #tpu.pipeline_mode<synchronous>, transform_indices = @transform_8, window_bounds = array<i64: 1, 32>}, {pipeline_mode = #tpu.pipeline_mode<synchronous>, transform_indices = @transform_9, window_bounds = array<i64: 1, 32>}, {transform_indices = @transform_10, window_bounds = array<i64: 1, 16, 16, 32>}, {transform_indices = @transform_11, window_bounds = array<i64: 1, 1, 1, 32>}]} {
    %c16_i32 = arith.constant 16 : i32
    %0 = arith.muli %arg1, %c16_i32 : i32
    %1 = tpu.assume_multiple %0, 16 : i32
    %c0 = arith.constant 0 : index
    %2 = arith.index_cast %1 : i32 to index
    %c0_0 = arith.constant 0 : index
    %c0_1 = arith.constant 0 : index
    %3 = vector.load %arg2[%c0, %2, %c0_0, %c0_1] : memref<1x18x18x32xbf16, #tpu.memory_space<vmem>>, vector<1x18x18x32xbf16>
    %4 = vector.shape_cast %3 : vector<1x18x18x32xbf16> to vector<324x32xbf16>
    %c0_2 = arith.constant 0 : index
    %c0_3 = arith.constant 0 : index
    %5 = vector.load %arg3[%c0_2, %c0_3] : memref<32x8xbf16, #tpu.memory_space<vmem>>, vector<32x8xbf16>
    %cst = arith.constant dense<0.000000e+00> : vector<324x8xf32>
    %6 = tpu.matmul %4, %5, %cst {dimension_numbers = #tpu.dot_dimension_numbers<[1], [0], [0], [1], [0, 0, 1, 1], [], []>} : vector<324x32xbf16>, vector<32x8xbf16>, vector<324x8xf32> -> vector<324x8xf32>
    %c0_4 = arith.constant 0 : index
    %c0_5 = arith.constant 0 : index
    %7 = vector.load %arg4[%c0_4, %c0_5] : memref<1x8xf32, #tpu.memory_space<vmem>>, vector<1x8xf32>
    %8 = vector.broadcast %7 : vector<1x8xf32> to vector<324x8xf32>
    %9 = arith.mulf %6, %8 : vector<324x8xf32>
    %c0_6 = arith.constant 0 : index
    %c0_7 = arith.constant 0 : index
    %10 = vector.load %arg5[%c0_6, %c0_7] : memref<1x8xf32, #tpu.memory_space<vmem>>, vector<1x8xf32>
    %11 = vector.broadcast %10 : vector<1x8xf32> to vector<324x8xf32>
    %12 = arith.addf %9, %11 : vector<324x8xf32>
    %cst_8 = arith.constant 0.000000e+00 : f32
    %13 = vector.broadcast %cst_8 : f32 to vector<324x8xf32>
    %14 = arith.maximumf %12, %13 : vector<324x8xf32>
    %15 = vector.shape_cast %14 : vector<324x8xf32> to vector<18x18x8xf32>
    %16 = tpu.iota {dimensions = array<i32: 0>} : vector<18x18x1xi32>
    %17 = vector.broadcast %1 : i32 to vector<18x18x1xi32>
    %18 = arith.addi %16, %17 : vector<18x18x1xi32>
    %19 = tpu.iota {dimensions = array<i32: 1>} : vector<18x18x1xi32>
    %c1_i32 = arith.constant 1 : i32
    %20 = vector.broadcast %c1_i32 : i32 to vector<18x18x1xi32>
    %21 = arith.cmpi sge, %18, %20 : vector<18x18x1xi32>
    %c16_i32_9 = arith.constant 16 : i32
    %22 = vector.broadcast %c16_i32_9 : i32 to vector<18x18x1xi32>
    %23 = arith.cmpi sle, %18, %22 : vector<18x18x1xi32>
    %24 = arith.andi %21, %23 : vector<18x18x1xi1>
    %c1_i32_10 = arith.constant 1 : i32
    %25 = vector.broadcast %c1_i32_10 : i32 to vector<18x18x1xi32>
    %26 = arith.cmpi sge, %19, %25 : vector<18x18x1xi32>
    %27 = arith.andi %24, %26 : vector<18x18x1xi1>
    %c16_i32_11 = arith.constant 16 : i32
    %28 = vector.broadcast %c16_i32_11 : i32 to vector<18x18x1xi32>
    %29 = arith.cmpi sle, %19, %28 : vector<18x18x1xi32>
    %30 = arith.andi %27, %29 : vector<18x18x1xi1>
    %cst_12 = arith.constant 0.000000e+00 : f32
    %31 = vector.shape_cast %30 : vector<18x18x1xi1> to vector<18x18x1xi1>
    %32 = vector.broadcast %31 : vector<18x18x1xi1> to vector<18x18x8xi1>
    %33 = vector.broadcast %cst_12 : f32 to vector<18x18x8xf32>
    %34 = arith.select %32, %15, %33 : vector<18x18x8xi1>, vector<18x18x8xf32>
    %cst_13 = arith.constant 0.000000e+00 : f32
    %35 = vector.broadcast %cst_13 : f32 to vector<256x8xf32>
    %36 = vector.extract_strided_slice %34 {offsets = [0, 0, 0], sizes = [16, 16, 8], strides = [1, 1, 1]} : vector<18x18x8xf32> to vector<16x16x8xf32>
    %37 = vector.shape_cast %36 : vector<16x16x8xf32> to vector<256x8xf32>
    %38 = arith.truncf %37 : vector<256x8xf32> to vector<256x8xbf16>
    %c0_14 = arith.constant 0 : index
    %c0_15 = arith.constant 0 : index
    %c0_16 = arith.constant 0 : index
    %39 = vector.load %arg6[%c0_14, %c0_15, %c0_16] : memref<9x8x8xbf16, #tpu.memory_space<vmem>>, vector<1x8x8xbf16>
    %40 = vector.shape_cast %39 : vector<1x8x8xbf16> to vector<8x8xbf16>
    %cst_17 = arith.constant dense<0.000000e+00> : vector<256x8xf32>
    %41 = tpu.matmul %38, %40, %cst_17 {dimension_numbers = #tpu.dot_dimension_numbers<[1], [0], [0], [1], [0, 0, 1, 1], [], []>} : vector<256x8xbf16>, vector<8x8xbf16>, vector<256x8xf32> -> vector<256x8xf32>
    %42 = arith.addf %35, %41 : vector<256x8xf32>
    %43 = vector.extract_strided_slice %34 {offsets = [0, 1, 0], sizes = [16, 16, 8], strides = [1, 1, 1]} : vector<18x18x8xf32> to vector<16x16x8xf32>
    %44 = vector.shape_cast %43 : vector<16x16x8xf32> to vector<256x8xf32>
    %45 = arith.truncf %44 : vector<256x8xf32> to vector<256x8xbf16>
    %c1 = arith.constant 1 : index
    %c0_18 = arith.constant 0 : index
    %c0_19 = arith.constant 0 : index
    %46 = vector.load %arg6[%c1, %c0_18, %c0_19] : memref<9x8x8xbf16, #tpu.memory_space<vmem>>, vector<1x8x8xbf16>
    %47 = vector.shape_cast %46 : vector<1x8x8xbf16> to vector<8x8xbf16>
    %cst_20 = arith.constant dense<0.000000e+00> : vector<256x8xf32>
    %48 = tpu.matmul %45, %47, %cst_20 {dimension_numbers = #tpu.dot_dimension_numbers<[1], [0], [0], [1], [0, 0, 1, 1], [], []>} : vector<256x8xbf16>, vector<8x8xbf16>, vector<256x8xf32> -> vector<256x8xf32>
    %49 = arith.addf %42, %48 : vector<256x8xf32>
    %50 = vector.extract_strided_slice %34 {offsets = [0, 2, 0], sizes = [16, 16, 8], strides = [1, 1, 1]} : vector<18x18x8xf32> to vector<16x16x8xf32>
    %51 = vector.shape_cast %50 : vector<16x16x8xf32> to vector<256x8xf32>
    %52 = arith.truncf %51 : vector<256x8xf32> to vector<256x8xbf16>
    %c2 = arith.constant 2 : index
    %c0_21 = arith.constant 0 : index
    %c0_22 = arith.constant 0 : index
    %53 = vector.load %arg6[%c2, %c0_21, %c0_22] : memref<9x8x8xbf16, #tpu.memory_space<vmem>>, vector<1x8x8xbf16>
    %54 = vector.shape_cast %53 : vector<1x8x8xbf16> to vector<8x8xbf16>
    %cst_23 = arith.constant dense<0.000000e+00> : vector<256x8xf32>
    %55 = tpu.matmul %52, %54, %cst_23 {dimension_numbers = #tpu.dot_dimension_numbers<[1], [0], [0], [1], [0, 0, 1, 1], [], []>} : vector<256x8xbf16>, vector<8x8xbf16>, vector<256x8xf32> -> vector<256x8xf32>
    %56 = arith.addf %49, %55 : vector<256x8xf32>
    %57 = vector.extract_strided_slice %34 {offsets = [1, 0, 0], sizes = [16, 16, 8], strides = [1, 1, 1]} : vector<18x18x8xf32> to vector<16x16x8xf32>
    %58 = vector.shape_cast %57 : vector<16x16x8xf32> to vector<256x8xf32>
    %59 = arith.truncf %58 : vector<256x8xf32> to vector<256x8xbf16>
    %c3 = arith.constant 3 : index
    %c0_24 = arith.constant 0 : index
    %c0_25 = arith.constant 0 : index
    %60 = vector.load %arg6[%c3, %c0_24, %c0_25] : memref<9x8x8xbf16, #tpu.memory_space<vmem>>, vector<1x8x8xbf16>
    %61 = vector.shape_cast %60 : vector<1x8x8xbf16> to vector<8x8xbf16>
    %cst_26 = arith.constant dense<0.000000e+00> : vector<256x8xf32>
    %62 = tpu.matmul %59, %61, %cst_26 {dimension_numbers = #tpu.dot_dimension_numbers<[1], [0], [0], [1], [0, 0, 1, 1], [], []>} : vector<256x8xbf16>, vector<8x8xbf16>, vector<256x8xf32> -> vector<256x8xf32>
    %63 = arith.addf %56, %62 : vector<256x8xf32>
    %64 = vector.extract_strided_slice %34 {offsets = [1, 1, 0], sizes = [16, 16, 8], strides = [1, 1, 1]} : vector<18x18x8xf32> to vector<16x16x8xf32>
    %65 = vector.shape_cast %64 : vector<16x16x8xf32> to vector<256x8xf32>
    %66 = arith.truncf %65 : vector<256x8xf32> to vector<256x8xbf16>
    %c4 = arith.constant 4 : index
    %c0_27 = arith.constant 0 : index
    %c0_28 = arith.constant 0 : index
    %67 = vector.load %arg6[%c4, %c0_27, %c0_28] : memref<9x8x8xbf16, #tpu.memory_space<vmem>>, vector<1x8x8xbf16>
    %68 = vector.shape_cast %67 : vector<1x8x8xbf16> to vector<8x8xbf16>
    %cst_29 = arith.constant dense<0.000000e+00> : vector<256x8xf32>
    %69 = tpu.matmul %66, %68, %cst_29 {dimension_numbers = #tpu.dot_dimension_numbers<[1], [0], [0], [1], [0, 0, 1, 1], [], []>} : vector<256x8xbf16>, vector<8x8xbf16>, vector<256x8xf32> -> vector<256x8xf32>
    %70 = arith.addf %63, %69 : vector<256x8xf32>
    %71 = vector.extract_strided_slice %34 {offsets = [1, 2, 0], sizes = [16, 16, 8], strides = [1, 1, 1]} : vector<18x18x8xf32> to vector<16x16x8xf32>
    %72 = vector.shape_cast %71 : vector<16x16x8xf32> to vector<256x8xf32>
    %73 = arith.truncf %72 : vector<256x8xf32> to vector<256x8xbf16>
    %c5 = arith.constant 5 : index
    %c0_30 = arith.constant 0 : index
    %c0_31 = arith.constant 0 : index
    %74 = vector.load %arg6[%c5, %c0_30, %c0_31] : memref<9x8x8xbf16, #tpu.memory_space<vmem>>, vector<1x8x8xbf16>
    %75 = vector.shape_cast %74 : vector<1x8x8xbf16> to vector<8x8xbf16>
    %cst_32 = arith.constant dense<0.000000e+00> : vector<256x8xf32>
    %76 = tpu.matmul %73, %75, %cst_32 {dimension_numbers = #tpu.dot_dimension_numbers<[1], [0], [0], [1], [0, 0, 1, 1], [], []>} : vector<256x8xbf16>, vector<8x8xbf16>, vector<256x8xf32> -> vector<256x8xf32>
    %77 = arith.addf %70, %76 : vector<256x8xf32>
    %78 = vector.extract_strided_slice %34 {offsets = [2, 0, 0], sizes = [16, 16, 8], strides = [1, 1, 1]} : vector<18x18x8xf32> to vector<16x16x8xf32>
    %79 = vector.shape_cast %78 : vector<16x16x8xf32> to vector<256x8xf32>
    %80 = arith.truncf %79 : vector<256x8xf32> to vector<256x8xbf16>
    %c6 = arith.constant 6 : index
    %c0_33 = arith.constant 0 : index
    %c0_34 = arith.constant 0 : index
    %81 = vector.load %arg6[%c6, %c0_33, %c0_34] : memref<9x8x8xbf16, #tpu.memory_space<vmem>>, vector<1x8x8xbf16>
    %82 = vector.shape_cast %81 : vector<1x8x8xbf16> to vector<8x8xbf16>
    %cst_35 = arith.constant dense<0.000000e+00> : vector<256x8xf32>
    %83 = tpu.matmul %80, %82, %cst_35 {dimension_numbers = #tpu.dot_dimension_numbers<[1], [0], [0], [1], [0, 0, 1, 1], [], []>} : vector<256x8xbf16>, vector<8x8xbf16>, vector<256x8xf32> -> vector<256x8xf32>
    %84 = arith.addf %77, %83 : vector<256x8xf32>
    %85 = vector.extract_strided_slice %34 {offsets = [2, 1, 0], sizes = [16, 16, 8], strides = [1, 1, 1]} : vector<18x18x8xf32> to vector<16x16x8xf32>
    %86 = vector.shape_cast %85 : vector<16x16x8xf32> to vector<256x8xf32>
    %87 = arith.truncf %86 : vector<256x8xf32> to vector<256x8xbf16>
    %c7 = arith.constant 7 : index
    %c0_36 = arith.constant 0 : index
    %c0_37 = arith.constant 0 : index
    %88 = vector.load %arg6[%c7, %c0_36, %c0_37] : memref<9x8x8xbf16, #tpu.memory_space<vmem>>, vector<1x8x8xbf16>
    %89 = vector.shape_cast %88 : vector<1x8x8xbf16> to vector<8x8xbf16>
    %cst_38 = arith.constant dense<0.000000e+00> : vector<256x8xf32>
    %90 = tpu.matmul %87, %89, %cst_38 {dimension_numbers = #tpu.dot_dimension_numbers<[1], [0], [0], [1], [0, 0, 1, 1], [], []>} : vector<256x8xbf16>, vector<8x8xbf16>, vector<256x8xf32> -> vector<256x8xf32>
    %91 = arith.addf %84, %90 : vector<256x8xf32>
    %92 = vector.extract_strided_slice %34 {offsets = [2, 2, 0], sizes = [16, 16, 8], strides = [1, 1, 1]} : vector<18x18x8xf32> to vector<16x16x8xf32>
    %93 = vector.shape_cast %92 : vector<16x16x8xf32> to vector<256x8xf32>
    %94 = arith.truncf %93 : vector<256x8xf32> to vector<256x8xbf16>
    %c8 = arith.constant 8 : index
    %c0_39 = arith.constant 0 : index
    %c0_40 = arith.constant 0 : index
    %95 = vector.load %arg6[%c8, %c0_39, %c0_40] : memref<9x8x8xbf16, #tpu.memory_space<vmem>>, vector<1x8x8xbf16>
    %96 = vector.shape_cast %95 : vector<1x8x8xbf16> to vector<8x8xbf16>
    %cst_41 = arith.constant dense<0.000000e+00> : vector<256x8xf32>
    %97 = tpu.matmul %94, %96, %cst_41 {dimension_numbers = #tpu.dot_dimension_numbers<[1], [0], [0], [1], [0, 0, 1, 1], [], []>} : vector<256x8xbf16>, vector<8x8xbf16>, vector<256x8xf32> -> vector<256x8xf32>
    %98 = arith.addf %91, %97 : vector<256x8xf32>
    %c0_42 = arith.constant 0 : index
    %c0_43 = arith.constant 0 : index
    %99 = vector.load %arg7[%c0_42, %c0_43] : memref<1x8xf32, #tpu.memory_space<vmem>>, vector<1x8xf32>
    %100 = vector.broadcast %99 : vector<1x8xf32> to vector<256x8xf32>
    %101 = arith.mulf %98, %100 : vector<256x8xf32>
    %c0_44 = arith.constant 0 : index
    %c0_45 = arith.constant 0 : index
    %102 = vector.load %arg8[%c0_44, %c0_45] : memref<1x8xf32, #tpu.memory_space<vmem>>, vector<1x8xf32>
    %103 = vector.broadcast %102 : vector<1x8xf32> to vector<256x8xf32>
    %104 = arith.addf %101, %103 : vector<256x8xf32>
    %cst_46 = arith.constant 0.000000e+00 : f32
    %105 = vector.broadcast %cst_46 : f32 to vector<256x8xf32>
    %106 = arith.maximumf %104, %105 : vector<256x8xf32>
    %107 = arith.truncf %106 : vector<256x8xf32> to vector<256x8xbf16>
    %c0_47 = arith.constant 0 : index
    %c0_48 = arith.constant 0 : index
    %108 = vector.load %arg9[%c0_47, %c0_48] : memref<8x32xbf16, #tpu.memory_space<vmem>>, vector<8x32xbf16>
    %cst_49 = arith.constant dense<0.000000e+00> : vector<256x32xf32>
    %109 = tpu.matmul %107, %108, %cst_49 {dimension_numbers = #tpu.dot_dimension_numbers<[1], [0], [0], [1], [0, 0, 1, 1], [], []>} : vector<256x8xbf16>, vector<8x32xbf16>, vector<256x32xf32> -> vector<256x32xf32>
    %c0_50 = arith.constant 0 : index
    %c0_51 = arith.constant 0 : index
    %110 = vector.load %arg10[%c0_50, %c0_51] : memref<1x32xf32, #tpu.memory_space<vmem>>, vector<1x32xf32>
    %111 = vector.broadcast %110 : vector<1x32xf32> to vector<256x32xf32>
    %112 = arith.mulf %109, %111 : vector<256x32xf32>
    %c0_52 = arith.constant 0 : index
    %c0_53 = arith.constant 0 : index
    %113 = vector.load %arg11[%c0_52, %c0_53] : memref<1x32xf32, #tpu.memory_space<vmem>>, vector<1x32xf32>
    %114 = vector.broadcast %113 : vector<1x32xf32> to vector<256x32xf32>
    %115 = arith.addf %112, %114 : vector<256x32xf32>
    %116 = vector.shape_cast %115 : vector<256x32xf32> to vector<1x16x16x32xf32>
    %117 = arith.truncf %116 : vector<1x16x16x32xf32> to vector<1x16x16x32xbf16>
    %c0_54 = arith.constant 0 : index
    %c0_55 = arith.constant 0 : index
    %c0_56 = arith.constant 0 : index
    %c0_57 = arith.constant 0 : index
    %118 = vector.load %arg12[%c0_54, %c0_55, %c0_56, %c0_57] : memref<1x16x16x32xbf16, #tpu.memory_space<vmem>>, vector<1x16x16x32xbf16>
    tpu.vector_store %arg12[%c0_54, %c0_55, %c0_56, %c0_57], %117 {strides = array<i32>} : memref<1x16x16x32xbf16, #tpu.memory_space<vmem>>, vector<1x16x16x32xbf16>,
    %cst_58 = arith.constant dense<0.000000e+00> : vector<32xf32>
    %119 = vector.multi_reduction <add>, %115, %cst_58 [0] : vector<256x32xf32> to vector<32xf32>
    %120 = vector.shape_cast %119 : vector<32xf32> to vector<1x1x1x32xf32>
    %c0_59 = arith.constant 0 : index
    %c0_60 = arith.constant 0 : index
    %c0_61 = arith.constant 0 : index
    %c0_62 = arith.constant 0 : index
    %121 = vector.load %arg13[%c0_59, %c0_60, %c0_61, %c0_62] : memref<1x1x1x32xf32, #tpu.memory_space<vmem>>, vector<1x1x1x32xf32>
    tpu.vector_store %arg13[%c0_59, %c0_60, %c0_61, %c0_62], %120 {strides = array<i32>} : memref<1x1x1x32xf32, #tpu.memory_space<vmem>>, vector<1x1x1x32xf32>,
    return
  }
  func.func @transform_0(%arg0: i32, %arg1: i32) -> (i32, i32, i32, i32) {
    %c0_i32 = arith.constant 0 : i32
    %c0_i32_0 = arith.constant 0 : i32
    %c0_i32_1 = arith.constant 0 : i32
    %c0_i32_2 = arith.constant 0 : i32
    return %arg0, %c0_i32, %c0_i32_0, %c0_i32_1 : i32, i32, i32, i32
  }
  func.func @transform_1(%arg0: i32, %arg1: i32) -> (i32, i32) {
    %c0_i32 = arith.constant 0 : i32
    %c0_i32_0 = arith.constant 0 : i32
    %c0_i32_1 = arith.constant 0 : i32
    return %c0_i32, %c0_i32_0 : i32, i32
  }
  func.func @transform_2(%arg0: i32, %arg1: i32) -> (i32, i32) {
    %c0_i32 = arith.constant 0 : i32
    %c0_i32_0 = arith.constant 0 : i32
    %c0_i32_1 = arith.constant 0 : i32
    return %c0_i32, %c0_i32_0 : i32, i32
  }
  func.func @transform_3(%arg0: i32, %arg1: i32) -> (i32, i32) {
    %c0_i32 = arith.constant 0 : i32
    %c0_i32_0 = arith.constant 0 : i32
    %c0_i32_1 = arith.constant 0 : i32
    return %c0_i32, %c0_i32_0 : i32, i32
  }
  func.func @transform_4(%arg0: i32, %arg1: i32) -> (i32, i32, i32) {
    %c0_i32 = arith.constant 0 : i32
    %c0_i32_0 = arith.constant 0 : i32
    %c0_i32_1 = arith.constant 0 : i32
    %c0_i32_2 = arith.constant 0 : i32
    return %c0_i32, %c0_i32_0, %c0_i32_1 : i32, i32, i32
  }
  func.func @transform_5(%arg0: i32, %arg1: i32) -> (i32, i32) {
    %c0_i32 = arith.constant 0 : i32
    %c0_i32_0 = arith.constant 0 : i32
    %c0_i32_1 = arith.constant 0 : i32
    return %c0_i32, %c0_i32_0 : i32, i32
  }
  func.func @transform_6(%arg0: i32, %arg1: i32) -> (i32, i32) {
    %c0_i32 = arith.constant 0 : i32
    %c0_i32_0 = arith.constant 0 : i32
    %c0_i32_1 = arith.constant 0 : i32
    return %c0_i32, %c0_i32_0 : i32, i32
  }
  func.func @transform_7(%arg0: i32, %arg1: i32) -> (i32, i32) {
    %c0_i32 = arith.constant 0 : i32
    %c0_i32_0 = arith.constant 0 : i32
    %c0_i32_1 = arith.constant 0 : i32
    return %c0_i32, %c0_i32_0 : i32, i32
  }
  func.func @transform_8(%arg0: i32, %arg1: i32) -> (i32, i32) {
    %c0_i32 = arith.constant 0 : i32
    %c0_i32_0 = arith.constant 0 : i32
    %c0_i32_1 = arith.constant 0 : i32
    return %c0_i32, %c0_i32_0 : i32, i32
  }
  func.func @transform_9(%arg0: i32, %arg1: i32) -> (i32, i32) {
    %c0_i32 = arith.constant 0 : i32
    %c0_i32_0 = arith.constant 0 : i32
    %c0_i32_1 = arith.constant 0 : i32
    return %c0_i32, %c0_i32_0 : i32, i32
  }
  func.func @transform_10(%arg0: i32, %arg1: i32) -> (i32, i32, i32, i32) {
    %c0_i32 = arith.constant 0 : i32
    %c0_i32_0 = arith.constant 0 : i32
    %c0_i32_1 = arith.constant 0 : i32
    return %arg0, %arg1, %c0_i32, %c0_i32_0 : i32, i32, i32, i32
  }
  func.func @transform_11(%arg0: i32, %arg1: i32) -> (i32, i32, i32, i32) {
    %c0_i32 = arith.constant 0 : i32
    %c0_i32_0 = arith.constant 0 : i32
    %c0_i32_1 = arith.constant 0 : i32
    return %arg0, %arg1, %c0_i32, %c0_i32_0 : i32, i32, i32, i32
  }
}

module attributes {stable_mosaic.version = 11 : i64} {
  func.func @_se_apply_kernel(%arg0: i32, %arg1: memref<1x1x1x32xf32, #tpu.memory_space<vmem>>, %arg2: memref<32x2xf32, #tpu.memory_space<vmem>>, %arg3: memref<1x2xf32, #tpu.memory_space<vmem>>, %arg4: memref<2x32xf32, #tpu.memory_space<vmem>>, %arg5: memref<1x32xf32, #tpu.memory_space<vmem>>, %arg6: memref<1x16x16x32xbf16, #tpu.memory_space<vmem>>, %arg7: memref<1x16x16x32xf32, #tpu.memory_space<vmem>>, %arg8: memref<1x16x16x32xf32, #tpu.memory_space<vmem>>) attributes {dimension_semantics = [#tpu.dimension_semantics<parallel>], iteration_bounds = array<i64: 2>, scalar_prefetch = 0 : i64, scratch_operands = 0 : i64, tpu.core_type = #tpu.core_type<tc>, window_params = [{transform_indices = @transform_0, window_bounds = array<i64: 1, 1, 1, 32>}, {pipeline_mode = #tpu.pipeline_mode<synchronous>, transform_indices = @transform_1, window_bounds = array<i64: 32, 2>}, {pipeline_mode = #tpu.pipeline_mode<synchronous>, transform_indices = @transform_2, window_bounds = array<i64: 1, 2>}, {pipeline_mode = #tpu.pipeline_mode<synchronous>, transform_indices = @transform_3, window_bounds = array<i64: 2, 32>}, {pipeline_mode = #tpu.pipeline_mode<synchronous>, transform_indices = @transform_4, window_bounds = array<i64: 1, 32>}, {transform_indices = @transform_5, window_bounds = array<i64: 1, 16, 16, 32>}, {transform_indices = @transform_6, window_bounds = array<i64: 1, 16, 16, 32>}, {transform_indices = @transform_7, window_bounds = array<i64: 1, 16, 16, 32>}]} {
    %c0 = arith.constant 0 : index
    %c0_0 = arith.constant 0 : index
    %c0_1 = arith.constant 0 : index
    %c0_2 = arith.constant 0 : index
    %0 = vector.load %arg1[%c0, %c0_0, %c0_1, %c0_2] : memref<1x1x1x32xf32, #tpu.memory_space<vmem>>, vector<1x1x1x32xf32>
    %cst = arith.constant dense<0.000000e+00> : vector<32xf32>
    %1 = vector.multi_reduction <add>, %0, %cst [0, 1, 2] : vector<1x1x1x32xf32> to vector<32xf32>
    %cst_3 = arith.constant 3.906250e-03 : f32
    %2 = vector.broadcast %cst_3 : f32 to vector<32xf32>
    %3 = arith.mulf %1, %2 : vector<32xf32>
    %4 = vector.shape_cast %3 : vector<32xf32> to vector<1x32xf32>
    %c0_4 = arith.constant 0 : index
    %c0_5 = arith.constant 0 : index
    %5 = vector.load %arg2[%c0_4, %c0_5] : memref<32x2xf32, #tpu.memory_space<vmem>>, vector<32x2xf32>
    %cst_6 = arith.constant dense<0.000000e+00> : vector<1x2xf32>
    %6 = tpu.matmul %4, %5, %cst_6 {dimension_numbers = #tpu.dot_dimension_numbers<[1], [0], [0], [1], [0, 0, 1, 1], [], []>} : vector<1x32xf32>, vector<32x2xf32>, vector<1x2xf32> -> vector<1x2xf32>
    %c0_7 = arith.constant 0 : index
    %c0_8 = arith.constant 0 : index
    %7 = vector.load %arg3[%c0_7, %c0_8] : memref<1x2xf32, #tpu.memory_space<vmem>>, vector<1x2xf32>
    %8 = arith.addf %6, %7 : vector<1x2xf32>
    %cst_9 = arith.constant 0.000000e+00 : f32
    %9 = vector.broadcast %cst_9 : f32 to vector<1x2xf32>
    %10 = arith.maximumf %8, %9 : vector<1x2xf32>
    %c0_10 = arith.constant 0 : index
    %c0_11 = arith.constant 0 : index
    %11 = vector.load %arg4[%c0_10, %c0_11] : memref<2x32xf32, #tpu.memory_space<vmem>>, vector<2x32xf32>
    %cst_12 = arith.constant dense<0.000000e+00> : vector<1x32xf32>
    %12 = tpu.matmul %10, %11, %cst_12 {dimension_numbers = #tpu.dot_dimension_numbers<[1], [0], [0], [1], [0, 0, 1, 1], [], []>} : vector<1x2xf32>, vector<2x32xf32>, vector<1x32xf32> -> vector<1x32xf32>
    %c0_13 = arith.constant 0 : index
    %c0_14 = arith.constant 0 : index
    %13 = vector.load %arg5[%c0_13, %c0_14] : memref<1x32xf32, #tpu.memory_space<vmem>>, vector<1x32xf32>
    %14 = arith.addf %12, %13 : vector<1x32xf32>
    %15 = arith.negf %14 : vector<1x32xf32>
    %16 = math.exp %15 : vector<1x32xf32>
    %cst_15 = arith.constant 1.000000e+00 : f32
    %17 = vector.broadcast %cst_15 : f32 to vector<1x32xf32>
    %18 = arith.addf %17, %16 : vector<1x32xf32>
    %19 = arith.divf %17, %18 : vector<1x32xf32>
    %20 = vector.shape_cast %19 : vector<1x32xf32> to vector<1x1x1x32xf32>
    %c0_16 = arith.constant 0 : index
    %c0_17 = arith.constant 0 : index
    %c0_18 = arith.constant 0 : index
    %c0_19 = arith.constant 0 : index
    %21 = vector.load %arg6[%c0_16, %c0_17, %c0_18, %c0_19] : memref<1x16x16x32xbf16, #tpu.memory_space<vmem>>, vector<1x16x16x32xbf16>
    %22 = arith.extf %21 : vector<1x16x16x32xbf16> to vector<1x16x16x32xf32>
    %23 = vector.broadcast %20 : vector<1x1x1x32xf32> to vector<1x16x16x32xf32>
    %24 = arith.mulf %22, %23 : vector<1x16x16x32xf32>
    %c0_20 = arith.constant 0 : index
    %c0_21 = arith.constant 0 : index
    %c0_22 = arith.constant 0 : index
    %c0_23 = arith.constant 0 : index
    %25 = vector.load %arg7[%c0_20, %c0_21, %c0_22, %c0_23] : memref<1x16x16x32xf32, #tpu.memory_space<vmem>>, vector<1x16x16x32xf32>
    %26 = arith.addf %24, %25 : vector<1x16x16x32xf32>
    %cst_24 = arith.constant 0.000000e+00 : f32
    %27 = vector.broadcast %cst_24 : f32 to vector<1x16x16x32xf32>
    %28 = arith.maximumf %26, %27 : vector<1x16x16x32xf32>
    %c0_25 = arith.constant 0 : index
    %c0_26 = arith.constant 0 : index
    %c0_27 = arith.constant 0 : index
    %c0_28 = arith.constant 0 : index
    %29 = vector.load %arg8[%c0_25, %c0_26, %c0_27, %c0_28] : memref<1x16x16x32xf32, #tpu.memory_space<vmem>>, vector<1x16x16x32xf32>
    tpu.vector_store %arg8[%c0_25, %c0_26, %c0_27, %c0_28], %28 {strides = array<i32>} : memref<1x16x16x32xf32, #tpu.memory_space<vmem>>, vector<1x16x16x32xf32>,
    return
  }
  func.func @transform_0(%arg0: i32) -> (i32, i32, i32, i32) {
    %c0_i32 = arith.constant 0 : i32
    %c0_i32_0 = arith.constant 0 : i32
    %c0_i32_1 = arith.constant 0 : i32
    %c0_i32_2 = arith.constant 0 : i32
    return %arg0, %c0_i32, %c0_i32_0, %c0_i32_1 : i32, i32, i32, i32
  }
  func.func @transform_1(%arg0: i32) -> (i32, i32) {
    %c0_i32 = arith.constant 0 : i32
    %c0_i32_0 = arith.constant 0 : i32
    %c0_i32_1 = arith.constant 0 : i32
    return %c0_i32, %c0_i32_0 : i32, i32
  }
  func.func @transform_2(%arg0: i32) -> (i32, i32) {
    %c0_i32 = arith.constant 0 : i32
    %c0_i32_0 = arith.constant 0 : i32
    %c0_i32_1 = arith.constant 0 : i32
    return %c0_i32, %c0_i32_0 : i32, i32
  }
  func.func @transform_3(%arg0: i32) -> (i32, i32) {
    %c0_i32 = arith.constant 0 : i32
    %c0_i32_0 = arith.constant 0 : i32
    %c0_i32_1 = arith.constant 0 : i32
    return %c0_i32, %c0_i32_0 : i32, i32
  }
  func.func @transform_4(%arg0: i32) -> (i32, i32) {
    %c0_i32 = arith.constant 0 : i32
    %c0_i32_0 = arith.constant 0 : i32
    %c0_i32_1 = arith.constant 0 : i32
    return %c0_i32, %c0_i32_0 : i32, i32
  }
  func.func @transform_5(%arg0: i32) -> (i32, i32, i32, i32) {
    %c0_i32 = arith.constant 0 : i32
    %c0_i32_0 = arith.constant 0 : i32
    %c0_i32_1 = arith.constant 0 : i32
    %c0_i32_2 = arith.constant 0 : i32
    return %arg0, %c0_i32, %c0_i32_0, %c0_i32_1 : i32, i32, i32, i32
  }
  func.func @transform_6(%arg0: i32) -> (i32, i32, i32, i32) {
    %c0_i32 = arith.constant 0 : i32
    %c0_i32_0 = arith.constant 0 : i32
    %c0_i32_1 = arith.constant 0 : i32
    %c0_i32_2 = arith.constant 0 : i32
    return %arg0, %c0_i32, %c0_i32_0, %c0_i32_1 : i32, i32, i32, i32
  }
  func.func @transform_7(%arg0: i32) -> (i32, i32, i32, i32) {
    %c0_i32 = arith.constant 0 : i32
    %c0_i32_0 = arith.constant 0 : i32
    %c0_i32_1 = arith.constant 0 : i32
    %c0_i32_2 = arith.constant 0 : i32
    return %arg0, %c0_i32, %c0_i32_0, %c0_i32_1 : i32, i32, i32, i32
  }
}

</mosaic_0001>

<bundles_post_ra>
// kernel: bottleneck_forward.3
= control target key start
LH: loop header
LB: loop body
LE: loop exit
PB: predicated region body
PF: predicated region fallthrough
CT: control target
= control target key end

     0   :  { %12 = vsyncpa [#allocation3], 0  ;;  %s1455_s0 = inlined_call_operand.vmem [shape: f32[2,1,1,32], index: 0, kind: input, shape index: {}]   ;;  %s1456_s1 = inlined_call_operand.vmem [shape: f32[32,2], index: 1, kind: input, shape index: {}]   ;;  %s1457_s2 = inlined_call_operand.vmem [shape: f32[1,2], index: 2, kind: input, shape index: {}]   ;;  %s1458_s3 = inlined_call_operand.vmem [shape: f32[2,32], index: 3, kind: input, shape index: {}]   ;;  %s1459_s4 = inlined_call_operand.vmem [shape: f32[1,32], index: 4, kind: input, shape index: {}]   ;;  %s1460_s5 = inlined_call_operand.vmem [shape: bf16[2,16,16,32], index: 5, kind: input, shape index: {}]   ;;  %s1461_s6 = inlined_call_operand.vmem [shape: f32[2,16,16,32], index: 6, kind: input, shape index: {}]   ;;  %s1462_s7 = inlined_call_operand.hbm [shape: f32[2,16,16,32], index: 7, kind: output, shape index: {}]  }
   0x1   :  { %14 = vsyncpa [#allocation3 + $0x1], 0  ;;  %s1092_s24 = smov 0   ;;  %s1094_s25 = smov 0  }
   0x2   :  { %s1096_s26 = smov 0   ;;  %s1098_s27 = smov 0  }
   0x3 LB: > { %s1113_s28 = sadd.s32 4294967295, %s1044_s27   ;;  %s805_s29 = sadd.s32 4294967294, %s1044_s27   ;;  %s1044_s27 = sphi %s1098_s27, %s1468_s27   ;;  %s1040_s26 = sphi %s1096_s26, %s1467_s26   ;;  %s1036_s25 = sphi %s1094_s25, %s1466_s25   ;;  %s1032_s24 = sphi %s1092_s24, %s1465_s24  }
   0x4   : > { %s1117_s30 = sadd.s32 1, %s1044_s27   ;;  %s189_s8 = sadd.s32 1, %s1040_s26 }
   0x5   : > { %s186_s9 = ssub.s32 %s1044_s27, %s1117_s30  ;;  %p199_p0 = scmp.ne.s32.totalorder %s1040_s26, %s1036_s25 }
   0x6   : > { %p187_p1 = scmp.eq.s32.totalorder %s186_s9, 0  ;;  %p200_p2 = scmp.eq.s32.totalorder %s1113_s28, 1 }
   0x7   : > { %p205_p3 = scmp.ne.s32.totalorder %s1036_s25, %s1032_s24  ;;  %p206_p4 = scmp.eq.s32.totalorder %s805_s29, 1 }
   0x8   : > { %s1128_s10 = scalar_select %p187_p1, %s1040_s26, %s189_s8  }
   0x9   : > { %p1130_p5 = por %p200_p2, %p199_p0  ;;  %p1134_p6 = por %p206_p4, %p205_p3 }
   0xa   : > { %p808_p7 = scmp.ge.s32.totalorder %s1044_s27, 1  ;;  %p258_p8 = scmp.lt.s32.totalorder %s1044_s27, 3 }
   0xc   : > { %p259_p9 = pnand %p808_p7, %p258_p8 }
   0xd   : > { %v314_v0 = vld [vmem:[%s1456_s1] sm:$0xff] (!%p259_p9)  ;;  %v315_v1 = vld [vmem:[%s1456_s1 + $0x8] sm:$0xff] (!%p259_p9)  ;;  %v316_v2 = vld [vmem:[%s1456_s1 + $0x10] sm:$0xff] (!%p259_p9)  ;;  %v1046_v3 = vmov (!%p259_p9), 0.0|0.0   ;;  %vm1047_vm0 = vmmov (!%p259_p9), 0   ;;  %v1048_v6 = vmov (!%p259_p9), 0.0   ;;  %v544_v23 = vlaneseq (!%p259_p9) }
   0xe   : > { %262 = sbr.rel (%p259_p9) target bundleno = 533 (0x215), region = 48  ;;  %928 = vmatprep.subr.bf16.mxu0 (!%p259_p9), %v1046_v3  ;;  %v929_v4 = vpack.c.bf16 (!%p259_p9), %v315_v1, %v314_v0  ;;  %v317_v5 = vld [vmem:[%s1456_s1 + $0x18] sm:$0xff] (!%p259_p9)  ;;  %920 = vmatprep.mubr.msk.f32.mxu0 (!%p259_p9), %vm1047_vm0, %v1048_v6  ;;  %p298_p10 = scmp.lt.s32.totalorder (!%p259_p9), %s1113_s28, 1  ;;  %vm319_vm1 = vcmask (!%p259_p9), 261120   ;;  %v394_v10 = vld [vmem:[%s1458_s3] sm:$0x3] (!%p259_p9) }
   0xf   : > { %923 = vmatprep.subr.mxu1 (!%p259_p9), %v1048_v6  ;;  %925 = vmatprep.mubr.msk.f32.mxu1 (!%p259_p9), %vm1047_vm0, %v1048_v6  ;;  %v932_v7 = vpack.c.bf16 (!%p259_p9), %v317_v5, %v316_v2  ;;  %vm400_vm2 = vcmask (!%p259_p9), 1041408   ;;  %v318_v11 = vld [vmem:[%s1457_s2] sm:$0x1] (!%p259_p9)  ;;  %vm396_vm3 = vcmask (!%p259_p9), 15360   ;;  %v545_v29 = vshrl.u32 (!%p259_p9), %v544_v23, 7  ;;  %s295_s8 = sand.u32 (!%p259_p9), 1, %s1036_s25  }
  0x10   : > { %930 = vmatpush3.bf16.msra.mxu0 (!%p259_p9), %v929_v4  ;;  %924 = vmatpush3.msk.msra.mxu1 (!%p259_p9), %vm400_vm2, %v394_v10  ;;  %v395_v16 = vld [vmem:[%s1459_s4] sm:$0x1] (!%p259_p9)  ;;  %s809_s9 = sshll.u32 (!%p259_p9), %s295_s8, 8  ;;  %s825_s14 = sshll.u32 (!%p259_p9), %s1113_s28, 12 }
  0x11   : > { %931 = vmatprep.subr.bf16.mxu0 (!%p259_p9), %v1046_v3  ;;  %v546_v51 = vsub.s32 (!%p259_p9), 0, %v545_v29  ;;  %s1317_s13 = scalar_lea.vmem (!%p259_p9), [#allocation2], %s809_s9  ;;  %s1414_s18 = scalar_lea.sflag (!%p259_p9), [#allocation3], %s295_s8 }
  0x12   : > { %s722_s15 = sshll.u32 (!%p259_p9), %s1317_s13, 4  ;;  %s1382_s15 = int_to_ptr.vmem [resolvable:$true] %s722_s15 }
  0x13   : > { %s982_s19 = scalar_lea.vmem (!%p259_p9), %s1382_s15, 4096 }
  0x14   : > { %933 = vmatpush3.bf16.msra.mxu0 (!%p259_p9), %v932_v7  ;;  %p983_p11 = scmp.ne.s32.totalorder (!%p259_p9), %s1382_s15, %s982_s19 }
  0x15   : > { %s1154_s21 = scalar_select %p298_p10, %s1113_s28, 1 }
  0x16   : > { %p984_p12 = pnand %p983_p11, %p1130_p5 }
  0x17   : > { %s300_s29 = scalar_lea.vmem %s1455_s0, %s1154_s21  ;;  %s823_s17 = sshll.u32 %s1154_s21, 7 }
  0x18   : > { %v311_v8 = vld [vmem:[%s300_s29] sm:$0x1]  ;;  %s1174_s20 = scalar_lea.vmem %s1460_s5, %s823_s17  ;;  %s824_s22 = sshll.u32 %s1154_s21, 8 }
  0x19   : > { %v313_v9 = vmul.f32 0.00390625, %v311_v8  ;;  %v827_v24 = vld [vmem:[%s1174_s20] sm:$0xff]   ;;  %v890_v25 = vld [vmem:[%s1174_s20 + $0x8] sm:$0xff]   ;;  %v891_v26 = vld [vmem:[%s1174_s20 + $0x10] sm:$0xff]   ;;  %s1228_s29 = scalar_lea.vmem %s1461_s6, %s824_s22  ;;  %s1380_s17 = scalar_lea.hbm %s1462_s7, %s825_s14 }
  0x1a   : > { %v892_v27 = vld [vmem:[%s1174_s20 + $0x18] sm:$0xff]   ;;  %v893_v28 = vld [vmem:[%s1174_s20 + $0x20] sm:$0xff]   ;;  %v828_v30 = vunpack.c.l.bf16 %v827_v24  ;;  %v829_v31 = vunpack.c.h.bf16 %v827_v24  ;;  %v894_v32 = vld [vmem:[%s1174_s20 + $0x28] sm:$0xff]   ;;  %v832_v34 = vunpack.c.l.bf16 %v890_v25  ;;  %v833_v35 = vunpack.c.h.bf16 %v890_v25  ;;  %p985_p13 = pneg %p984_p12 }
  0x1b   : > { %921 = vmatmul.mubr.msk.f32.vlgmr.msra.gmra.mrb[0].mxu0 %vm319_vm1, %v313_v9  ;;  %v1183_v33 = vld [vmem:[%s1174_s20 + $0x30] sm:$0xff]   ;;  %v836_v36 = vunpack.c.l.bf16 %v891_v26  ;;  %v837_v37 = vunpack.c.h.bf16 %v891_v26  ;;  %v896_v38 = vld [vmem:[%s1174_s20 + $0x38] sm:$0xff]   ;;  %v1187_v39 = vld [vmem:[%s1174_s20 + $0x40] sm:$0xff]   ;;  %v840_v40 = vunpack.c.l.bf16 %v892_v27  ;;  %v841_v41 = vunpack.c.h.bf16 %v892_v27 }
  0x1c   : > { %v844_v42 = vunpack.c.l.bf16 %v893_v28  ;;  %v845_v43 = vunpack.c.h.bf16 %v893_v28  ;;  %v898_v44 = vld [vmem:[%s1174_s20 + $0x48] sm:$0xff]   ;;  %v1191_v45 = vld [vmem:[%s1174_s20 + $0x50] sm:$0xff]   ;;  %v848_v46 = vunpack.c.l.bf16 %v894_v32  ;;  %v849_v47 = vunpack.c.h.bf16 %v894_v32  ;;  %v1195_v49 = vld [vmem:[%s1174_s20 + $0x58] sm:$0xff]  }
  0x1d   : > { %v852_v48 = vunpack.c.l.bf16 %v1183_v33  ;;  %v1198_v50 = vld [vmem:[%s1174_s20 + $0x60] sm:$0xff]   ;;  %v853_v52 = vunpack.c.h.bf16 %v1183_v33  ;;  %v856_v53 = vunpack.c.l.bf16 %v896_v38  ;;  %v857_v54 = vunpack.c.h.bf16 %v896_v38  ;;  %v1203_v56 = vld [vmem:[%s1174_s20 + $0x68] sm:$0xff]   ;;  %v1208_v61 = vld [vmem:[%s1174_s20 + $0x70] sm:$0xff]  }
  0x1e   : > { %v860_v55 = vunpack.c.l.bf16 %v1187_v39  ;;  %v861_v57 = vunpack.c.h.bf16 %v1187_v39  ;;  %v864_v58 = vunpack.c.l.bf16 %v898_v44  ;;  %v865_v59 = vunpack.c.h.bf16 %v898_v44  ;;  %v1211_v62 = vld [vmem:[%s1174_s20 + $0x78] sm:$0xff]   ;;  %v580_v24 = vld [vmem:[%s1228_s29] sm:$0xff]  ;;  %v581_v25 = vld [vmem:[%s1228_s29 + $0x8] sm:$0xff]  ;;  %s1049_s20 = smov [#allocation2]  }
  0x1f   : > { %v868_v60 = vunpack.c.l.bf16 %v1191_v45  ;;  %v869_v0 = vunpack.c.h.bf16 %v1191_v45  ;;  %v872_v1 = vunpack.c.l.bf16 %v1195_v49  ;;  %v873_v2 = vunpack.c.h.bf16 %v1195_v49  ;;  %v582_v26 = vld [vmem:[%s1228_s29 + $0x10] sm:$0xff]  ;;  %v583_v27 = vld [vmem:[%s1228_s29 + $0x18] sm:$0xff]  ;;  %v584_v32 = vld [vmem:[%s1228_s29 + $0x20] sm:$0xff]  ;;  %s986_s22 = sshll.u32 %s1049_s20, 4  ;;  %s987_s22 = int_to_ptr.vmem [resolvable:$false] %s986_s22 }
  0x20   : > { %v876_v3 = vunpack.c.l.bf16 %v1198_v50  ;;  %v877_v4 = vunpack.c.h.bf16 %v1198_v50  ;;  %v880_v5 = vunpack.c.l.bf16 %v1203_v56  ;;  %v881_v6 = vunpack.c.h.bf16 %v1203_v56  ;;  %v585_v33 = vld [vmem:[%s1228_s29 + $0x28] sm:$0xff]  ;;  %v596_v56 = vld [vmem:[%s1228_s29 + $0x80] sm:$0xff]  ;;  %s988_s21 = scalar_lea.vmem %s987_s22, 8192  ;;  %p989_p0 = scmp.lt.s32.totalorder %s1382_s15, %s987_s22 }
  0x21   : > { %v884_v8 = vunpack.c.l.bf16 %v1208_v61  ;;  %v885_v9 = vunpack.c.h.bf16 %v1208_v61  ;;  %v888_v10 = vunpack.c.l.bf16 %v1211_v62  ;;  %v593_v49 = vld [vmem:[%s1228_s29 + $0x68] sm:$0xff]  ;;  %p990_p1 = scmp.lt.s32.totalorder %s988_s21, %s982_s19 }
  0x22   : > { %v597_v61 = vld [vmem:[%s1228_s29 + $0x88] sm:$0xff] }
  0x23   : > { %p991_p2 = por %p990_p1, %p989_p0 }
  0x25   : > { %p992_p3 = pnand %p991_p2, %p985_p13 }
  0xee   : > { %v389_v12 = vpop.f32.mrb[0].mxu0 }
  0xef   : > { %v390_v13 = vadd.f32 %v389_v12, %v318_v11  ;;  %v922_v14 = vpop.f32.mrb[1].mxu0  ;;  %v889_v11 = vunpack.c.h.bf16 %v1211_v62  ;;  %v598_v62 = vld [vmem:[%s1228_s29 + $0x90] sm:$0xff] }
  0xf1   : > { %v393_v15 = vmax.f32 %v390_v13, 0.0 }
  0xf3   : > { %926 = vmatmul.mubr.msk.f32.vlgmr.msra.gmra.mrb[0].mxu1 %vm396_vm3, %v393_v15 }
 0x1c6   : > { %v470_v17 = vpop.f32.mrb[0].mxu1 }
 0x1c7   : > { %v471_v18 = vadd.f32 %v470_v17, %v395_v16  ;;  %v927_v19 = vpop.f32.mrb[1].mxu1 }
 0x1c9   : > { %v817_v20 = vmul.f32 -1.442695, %v471_v18 }
 0x1cb   : > { %978 = vpow2.f32 %v817_v20 }
 0x1d5   : > { %v979_v21 = vpop.eup %978 }
 0x1d6   : > { %v477_v22 = vadd.f32 1.0, %v979_v21 }
 0x1d8   : > { %980 = vrcp.f32 %v477_v22 }
 0x1e2   : > { %v981_v63 = vpop.eup %980 }
 0x1e3   : > { %v547_v7 = vrot.slane %v981_v63, %v546_v51  ;;  %v599_v63 = vld [vmem:[%s1228_s29 + $0x98] sm:$0xff] }
 0x1e5   : > { %v548_v12 = vmul.f32 %v828_v30, %v547_v7  ;;  %v549_v13 = vmul.f32 %v829_v31, %v547_v7  ;;  %v550_v14 = vmul.f32 %v832_v34, %v547_v7  ;;  %v551_v15 = vmul.f32 %v833_v35, %v547_v7  ;;  %v586_v34 = vld [vmem:[%s1228_s29 + $0x30] sm:$0xff]  ;;  %v587_v35 = vld [vmem:[%s1228_s29 + $0x38] sm:$0xff] }
 0x1e6   : > { %v552_v16 = vmul.f32 %v836_v36, %v547_v7  ;;  %v553_v17 = vmul.f32 %v837_v37, %v547_v7  ;;  %v554_v18 = vmul.f32 %v840_v40, %v547_v7  ;;  %v555_v19 = vmul.f32 %v841_v41, %v547_v7  ;;  %v588_v40 = vld [vmem:[%s1228_s29 + $0x40] sm:$0xff]  ;;  %v589_v41 = vld [vmem:[%s1228_s29 + $0x48] sm:$0xff] }
 0x1e7   : > { %v556_v20 = vmul.f32 %v844_v42, %v547_v7  ;;  %v557_v21 = vmul.f32 %v845_v43, %v547_v7  ;;  %v558_v22 = vmul.f32 %v848_v46, %v547_v7  ;;  %v559_v23 = vmul.f32 %v849_v47, %v547_v7  ;;  %v590_v42 = vld [vmem:[%s1228_s29 + $0x50] sm:$0xff]  ;;  %v591_v47 = vld [vmem:[%s1228_s29 + $0x58] sm:$0xff] }
 0x1e8   : > { %v560_v28 = vmul.f32 %v852_v48, %v547_v7  ;;  %v561_v29 = vmul.f32 %v853_v52, %v547_v7  ;;  %v562_v30 = vmul.f32 %v856_v53, %v547_v7  ;;  %v563_v31 = vmul.f32 %v857_v54, %v547_v7  ;;  %v592_v48 = vld [vmem:[%s1228_s29 + $0x60] sm:$0xff]  ;;  %v594_v54 = vld [vmem:[%s1228_s29 + $0x70] sm:$0xff] }
 0x1e9   : > { %v564_v36 = vmul.f32 %v860_v55, %v547_v7  ;;  %v565_v37 = vmul.f32 %v861_v57, %v547_v7  ;;  %v566_v38 = vmul.f32 %v864_v58, %v547_v7  ;;  %v567_v39 = vmul.f32 %v865_v59, %v547_v7  ;;  %v595_v55 = vld [vmem:[%s1228_s29 + $0x78] sm:$0xff] }
 0x1ea   : > { %v568_v43 = vmul.f32 %v868_v60, %v547_v7  ;;  %v569_v44 = vmul.f32 %v869_v0, %v547_v7  ;;  %v570_v45 = vmul.f32 %v872_v1, %v547_v7  ;;  %v571_v46 = vmul.f32 %v873_v2, %v547_v7 }
 0x1eb   : > { %v572_v50 = vmul.f32 %v876_v3, %v547_v7  ;;  %v573_v51 = vmul.f32 %v877_v4, %v547_v7  ;;  %v574_v52 = vmul.f32 %v880_v5, %v547_v7  ;;  %v575_v53 = vmul.f32 %v881_v6, %v547_v7  ;;  %v600_v4 = vld [vmem:[%s1228_s29 + $0xa0] sm:$0xff]  ;;  %v601_v5 = vld [vmem:[%s1228_s29 + $0xa8] sm:$0xff]  ;;  %v602_v6 = vld [vmem:[%s1228_s29 + $0xb0] sm:$0xff] }
 0x1ec   : > { %v576_v57 = vmul.f32 %v884_v8, %v547_v7  ;;  %v577_v58 = vmul.f32 %v885_v9, %v547_v7  ;;  %v578_v59 = vmul.f32 %v888_v10, %v547_v7  ;;  %v579_v60 = vmul.f32 %v889_v11, %v547_v7  ;;  %v603_v11 = vld [vmem:[%s1228_s29 + $0xb8] sm:$0xff] }
 0x1ed   : > { %v612_v0 = vadd.f32 %v580_v24, %v548_v12  ;;  %v613_v1 = vadd.f32 %v581_v25, %v549_v13  ;;  %v614_v2 = vadd.f32 %v582_v26, %v550_v14  ;;  %v615_v3 = vadd.f32 %v583_v27, %v551_v15  ;;  %v604_v12 = vld [vmem:[%s1228_s29 + $0xc0] sm:$0xff]  ;;  %v605_v24 = vld [vmem:[%s1228_s29 + $0xc8] sm:$0xff] }
 0x1ee   : > { %v616_v8 = vadd.f32 %v584_v32, %v552_v16  ;;  %v617_v9 = vadd.f32 %v585_v33, %v553_v17  ;;  %v618_v10 = vadd.f32 %v586_v34, %v554_v18  ;;  %v619_v7 = vadd.f32 %v587_v35, %v555_v19  ;;  %v606_v16 = vld [vmem:[%s1228_s29 + $0xd0] sm:$0xff]  ;;  %v607_v17 = vld [vmem:[%s1228_s29 + $0xd8] sm:$0xff]  ;;  %v608_v18 = vld [vmem:[%s1228_s29 + $0xe0] sm:$0xff] }
 0x1ef   : > { %v1257_v13 = vadd.f32 %v588_v40, %v556_v20  ;;  %v1259_v14 = vadd.f32 %v589_v41, %v557_v21  ;;  %v1261_v15 = vadd.f32 %v590_v42, %v558_v22  ;;  %v1263_v25 = vadd.f32 %v591_v47, %v559_v23  ;;  %v609_v20 = vld [vmem:[%s1228_s29 + $0xe8] sm:$0xff]  ;;  %v610_v33 = vld [vmem:[%s1228_s29 + $0xf0] sm:$0xff]  ;;  %v611_v21 = vld [vmem:[%s1228_s29 + $0xf8] sm:$0xff] }
 0x1f0   : > { %v1268_v19 = vadd.f32 %v592_v48, %v560_v28  ;;  %v1270_v26 = vadd.f32 %v593_v49, %v561_v29  ;;  %v1272_v27 = vadd.f32 %v594_v54, %v562_v30  ;;  %v1274_v32 = vadd.f32 %v595_v55, %v563_v31 }
 0x1f1   : > { %v1279_v34 = vadd.f32 %v596_v56, %v564_v36  ;;  %v1281_v22 = vadd.f32 %v597_v61, %v565_v37  ;;  %v1283_v23 = vadd.f32 %v598_v62, %v566_v38  ;;  %v1285_v35 = vadd.f32 %v599_v63, %v567_v39 }
 0x1f2   : > { %v1289_v28 = vadd.f32 %v600_v4, %v568_v43  ;;  %v1291_v29 = vadd.f32 %v601_v5, %v569_v44  ;;  %v1293_v30 = vadd.f32 %v602_v6, %v570_v45  ;;  %v1295_v31 = vadd.f32 %v603_v11, %v571_v46 }
 0x1f3   : > { %v1297_v40 = vadd.f32 %v604_v12, %v572_v50  ;;  %v1299_v36 = vadd.f32 %v605_v24, %v573_v51  ;;  %v1301_v37 = vadd.f32 %v606_v16, %v574_v52  ;;  %v1303_v38 = vadd.f32 %v607_v17, %v575_v53 }
 0x1f4   : > { %v1305_v39 = vadd.f32 %v608_v18, %v576_v57  ;;  %v1307_v41 = vadd.f32 %v609_v20, %v577_v58  ;;  %v1309_v42 = vadd.f32 %v610_v33, %v578_v59  ;;  %v1311_v43 = vadd.f32 %v611_v21, %v579_v60 }
 0x1f5   : > { %v644_v44 = vmax.f32 %v612_v0, 0.0  ;;  %v645_v45 = vmax.f32 %v613_v1, 0.0  ;;  %v646_v46 = vmax.f32 %v614_v2, 0.0  ;;  %v647_v47 = vmax.f32 %v615_v3, 0.0 }
 0x1f6   : > { %v648_v48 = vmax.f32 %v616_v8, 0.0  ;;  %v649_v49 = vmax.f32 %v617_v9, 0.0  ;;  %v650_v50 = vmax.f32 %v618_v10, 0.0  ;;  %v651_v51 = vmax.f32 %v619_v7, 0.0 }
 0x1f7   : > { %v652_v52 = vmax.f32 %v1257_v13, 0.0  ;;  %v653_v53 = vmax.f32 %v1259_v14, 0.0  ;;  %v654_v54 = vmax.f32 %v1261_v15, 0.0  ;;  %v655_v55 = vmax.f32 %v1263_v25, 0.0  ;;  %676 = vst.msk [vmem:[%s1317_s13] sm:$0xff] %vm319_vm1, %v644_v44  ;;  %677 = vst.msk [vmem:[%s1317_s13 + $0x8] sm:$0xff] %vm319_vm1, %v645_v45 }
 0x1f8   : > { %678 = vst.msk [vmem:[%s1317_s13 + $0x10] sm:$0xff] %vm319_vm1, %v646_v46  ;;  %679 = vst.msk [vmem:[%s1317_s13 + $0x18] sm:$0xff] %vm319_vm1, %v647_v47  ;;  %v656_v56 = vmax.f32 %v1268_v19, 0.0  ;;  %v657_v57 = vmax.f32 %v1270_v26, 0.0  ;;  %v658_v58 = vmax.f32 %v1272_v27, 0.0  ;;  %v659_v59 = vmax.f32 %v1274_v32, 0.0 }
 0x1f9   : > { %680 = vst.msk [vmem:[%s1317_s13 + $0x20] sm:$0xff] %vm319_vm1, %v648_v48  ;;  %681 = vst.msk [vmem:[%s1317_s13 + $0x28] sm:$0xff] %vm319_vm1, %v649_v49  ;;  %v660_v60 = vmax.f32 %v1279_v34, 0.0  ;;  %v661_v61 = vmax.f32 %v1281_v22, 0.0  ;;  %v662_v62 = vmax.f32 %v1283_v23, 0.0  ;;  %v663_v63 = vmax.f32 %v1285_v35, 0.0 }
 0x1fa   : > { %682 = vst.msk [vmem:[%s1317_s13 + $0x30] sm:$0xff] %vm319_vm1, %v650_v50  ;;  %683 = vst.msk [vmem:[%s1317_s13 + $0x38] sm:$0xff] %vm319_vm1, %v651_v51  ;;  %v664_v0 = vmax.f32 %v1289_v28, 0.0  ;;  %v665_v1 = vmax.f32 %v1291_v29, 0.0  ;;  %v666_v2 = vmax.f32 %v1293_v30, 0.0  ;;  %v667_v3 = vmax.f32 %v1295_v31, 0.0 }
 0x1fb   : > { %684 = vst.msk [vmem:[%s1317_s13 + $0x40] sm:$0xff] %vm319_vm1, %v652_v52  ;;  %685 = vst.msk [vmem:[%s1317_s13 + $0x48] sm:$0xff] %vm319_vm1, %v653_v53  ;;  %v668_v4 = vmax.f32 %v1297_v40, 0.0  ;;  %v669_v5 = vmax.f32 %v1299_v36, 0.0  ;;  %v670_v6 = vmax.f32 %v1301_v37, 0.0  ;;  %v671_v8 = vmax.f32 %v1303_v38, 0.0 }
 0x1fc   : > { %686 = vst.msk [vmem:[%s1317_s13 + $0x50] sm:$0xff] %vm319_vm1, %v654_v54  ;;  %687 = vst.msk [vmem:[%s1317_s13 + $0x58] sm:$0xff] %vm319_vm1, %v655_v55  ;;  %v672_v9 = vmax.f32 %v1305_v39, 0.0  ;;  %v673_v10 = vmax.f32 %v1307_v41, 0.0  ;;  %v674_v7 = vmax.f32 %v1309_v42, 0.0  ;;  %v675_v11 = vmax.f32 %v1311_v43, 0.0 }
 0x1fd   : > { %688 = vst.msk [vmem:[%s1317_s13 + $0x60] sm:$0xff] %vm319_vm1, %v656_v56  ;;  %689 = vst.msk [vmem:[%s1317_s13 + $0x68] sm:$0xff] %vm319_vm1, %v657_v57 }
 0x1fe   : > { %690 = vst.msk [vmem:[%s1317_s13 + $0x70] sm:$0xff] %vm319_vm1, %v658_v58  ;;  %691 = vst.msk [vmem:[%s1317_s13 + $0x78] sm:$0xff] %vm319_vm1, %v659_v59 }
 0x1ff   : > { %692 = vst.msk [vmem:[%s1317_s13 + $0x80] sm:$0xff] %vm319_vm1, %v660_v60  ;;  %693 = vst.msk [vmem:[%s1317_s13 + $0x88] sm:$0xff] %vm319_vm1, %v661_v61 }
 0x200   : > { %694 = vst.msk [vmem:[%s1317_s13 + $0x90] sm:$0xff] %vm319_vm1, %v662_v62  ;;  %695 = vst.msk [vmem:[%s1317_s13 + $0x98] sm:$0xff] %vm319_vm1, %v663_v63 }
 0x201   : > { %696 = vst.msk [vmem:[%s1317_s13 + $0xa0] sm:$0xff] %vm319_vm1, %v664_v0  ;;  %697 = vst.msk [vmem:[%s1317_s13 + $0xa8] sm:$0xff] %vm319_vm1, %v665_v1 }
 0x202   : > { %698 = vst.msk [vmem:[%s1317_s13 + $0xb0] sm:$0xff] %vm319_vm1, %v666_v2  ;;  %699 = vst.msk [vmem:[%s1317_s13 + $0xb8] sm:$0xff] %vm319_vm1, %v667_v3 }
 0x203   : > { %700 = vst.msk [vmem:[%s1317_s13 + $0xc0] sm:$0xff] %vm319_vm1, %v668_v4  ;;  %701 = vst.msk [vmem:[%s1317_s13 + $0xc8] sm:$0xff] %vm319_vm1, %v669_v5 }
 0x204   : > { %702 = vst.msk [vmem:[%s1317_s13 + $0xd0] sm:$0xff] %vm319_vm1, %v670_v6  ;;  %703 = vst.msk [vmem:[%s1317_s13 + $0xd8] sm:$0xff] %vm319_vm1, %v671_v8 }
 0x205   : > { %704 = vst.msk [vmem:[%s1317_s13 + $0xe0] sm:$0xff] %vm319_vm1, %v672_v9  ;;  %705 = vst.msk [vmem:[%s1317_s13 + $0xe8] sm:$0xff] %vm319_vm1, %v673_v10 }
 0x206   : > { %706 = vst.msk [vmem:[%s1317_s13 + $0xf0] sm:$0xff] %vm319_vm1, %v674_v7  ;;  %707 = vst.msk [vmem:[%s1317_s13 + $0xf8] sm:$0xff] %vm319_vm1, %v675_v11 }
 0x207   : > { %995 = shalt.err (!%p992_p3)
}
 0x208   : > { %s996_s23 = scalar_lea.hbm %s1380_s17, 4096  ;;  %s1000_s9 = scalar_lea.hbm %s1462_s7, 8192 }
 0x209   : > { %p997_p4 = scmp.ne.s32.totalorder %s1380_s17, %s996_s23  ;;  %p1001_p9 = scmp.lt.u32.totalorder %s1380_s17, %s1462_s7 }
 0x20a   : > { %p1002_p10 = scmp.lt.u32.totalorder %s1000_s9, %s996_s23  ;;  %p1004_p12 = scmp.lt.u32.totalorder %s996_s23, %s1380_s17 }
 0x20b   : > { %p998_p7 = pnand %p997_p4, %p1130_p5 }
 0x20c   : > { %p1003_p11 = por %p1002_p10, %p1001_p9 }
 0x20d   : > { %p999_p8 = pneg %p998_p7 }
 0x20e   : > { %p1005_p13 = por %p1004_p12, %p1003_p11 }
 0x210   : > { %p1006_p0 = pnand %p1005_p13, %p999_p8 }
 0x212   : > { %1009 = shalt.err (!%p1006_p0)
}
 0x213   : > { %s1050_s28 = smov 128   ;;  %s1051_s16 = smov 8  }
 0x214   : > { %934 = dma.vmem_to_hbm [thread:$0]  (%p1130_p5), %s1382_s15, 4096, %s1380_s17, %s1414_s18, %s1050_s28, %s1050_s28, %s1051_s16  }
 0x215 PF: > { %p940_p1 = scmp.ge.s32.totalorder %s1044_s27, 2  ;;  %s737_s19 = sand.u32 1, %s1032_s24  }
 0x216   : > { %s738_s20 = scalar_lea.sflag [#allocation3], %s737_s19 }
 0x217   : > { %p937_p2 = pnand %p940_p1, %p1134_p6 }
 0x219   : > { %1027 = dma.done.wait (!%p937_p2), %s738_s20, 4096  }
 0x21a   : > { %1029 = vsyncadd (!%p937_p2), %s738_s20, 4294963200  ;;  %p17_p3 = scmp.ge.s32.totalorder %s1117_s30, 4   ;;  %s1465_s24 = smov %s1036_s25 }
 0x21b   : > { %s1466_s25 = smov %s1040_s26  ;;  %s1467_s26 = smov %s1128_s10 }
 0x21c   : > { %s1468_s27 = smov %s1117_s30  ;;  %19 = sbr.rel (!%p17_p3) target bundleno = 3 (0x3), region = 89 }
 0x223   :  { %743 = vsyncpa [#allocation3], 1 }
 0x224   :  { %745 = vsyncpa [#allocation3 + $0x1], 1 }

// kernel: bottleneck_forward.2
= control target key start
LH: loop header
LB: loop body
LE: loop exit
PB: predicated region body
PF: predicated region fallthrough
CT: control target
= control target key end

     0   :  { %s9317_s17 = smov 0   ;;  %s9319_s18 = smov 0   ;;  %s11094_s0 = inlined_call_operand.vmem [shape: bf16[2,18,18,32], index: 0, kind: input, shape index: {}]   ;;  %s11095_s1 = inlined_call_operand.vmem [shape: bf16[32,8], index: 1, kind: input, shape index: {}]   ;;  %s11096_s2 = inlined_call_operand.vmem [shape: f32[1,8], index: 2, kind: input, shape index: {}]   ;;  %s11097_s3 = inlined_call_operand.vmem [shape: f32[1,8], index: 3, kind: input, shape index: {}]   ;;  %s11098_s4 = inlined_call_operand.vmem [shape: bf16[9,8,8], index: 4, kind: input, shape index: {}]   ;;  %s11099_s5 = inlined_call_operand.vmem [shape: f32[1,8], index: 5, kind: input, shape index: {}]   ;;  %s11100_s6 = inlined_call_operand.vmem [shape: f32[1,8], index: 6, kind: input, shape index: {}]   ;;  %s11101_s7 = inlined_call_operand.vmem [shape: bf16[8,32], index: 7, kind: input, shape index: {}]   ;;  %s11102_s8 = inlined_call_operand.vmem [shape: f32[1,32], index: 8, kind: input, shape index: {}]   ;;  %s11103_s9 = inlined_call_operand.vmem [shape: f32[1,32], index: 9, kind: input, shape index: {}]   ;;  %s11104_s10 = inlined_call_operand.vmem [shape: bf16[2,16,16,32], index: 10, kind: output, shape index: {0}]   ;;  %s11105_s11 = inlined_call_operand.vmem [shape: f32[2,1,1,32], index: 11, kind: output, shape index: {1}]  }
   0x1   :  { %s9321_s19 = smov 0  }
   0x2 LB: > { %s34_s20 = sadd.s32 1, %s9246_s18  ;;  %p7963_p0 = scmp.ge.s32.totalorder %s9250_s19, 1  ;;  %s9250_s19 = sphi %s9321_s19, %s22_s19   ;;  %s9246_s18 = sphi %s9319_s18, %s11196_s18   ;;  %s9242_s17 = sphi %s9317_s17, %s11195_s17  }
   0x3   : > { %p36_p1 = scmp.ge.s32.totalorder %s34_s20, 2  ;;  %p356_p2 = scmp.lt.s32.totalorder %s9250_s19, 3 }
   0x5   : > { %s11198_s20 = smov (%p36_p1, %s34_s20), 0  ;;  %p357_p3 = pnand %p7963_p0, %p356_p2 }
   0x7   : > { %360 = sbr.rel (%p357_p3) target bundleno = 1269 (0x4f5), region = 60 }
   0xe   : > { %v9221_v0 = vld [vmem:[%s11095_s1] sm:$0xff]   ;;  %v553_v1 = vlaneseq  ;;  %v11106_v2 = vmov 0.0   ;;  %v9222_v3 = vld [vmem:[%s11095_s1 + $0x8] sm:$0xff]   ;;  %vm9253_vm0 = vmmov 0   ;;  %p407_p4 = scmp.lt.s32.totalorder %s9242_s17, 1  ;;  %vm2669_vm1 = vcmask 261120  }
   0xf   : > { %8494 = vmatprep.subr.bf16.mxu0 %v11106_v2  ;;  %8498 = vmatprep.mubr.msk.bf16.mxu0 %vm9253_vm0, %v11106_v2  ;;  %v9254_v4 = vmov 1966171168   ;;  %vm5188_vm2 = vcmask 1043456   ;;  %vm5139_vm3 = vcmask 64512   ;;  %vm5008_vm6 = vcmask 1046528  }
  0x10   : > { %8495 = vmatpush3.bf16.msra.mxu0 %v9221_v0  ;;  %v551_v5 = vunpack.c.l.s4 %v9254_v4  ;;  %v9345_v6 = vshrl.u32 %v553_v1, 7  ;;  %s11200_s17 = smov (!%p407_p4, %s9242_s17), 1  ;;  %vm5565_vm7 = vcmask 1045504   ;;  %vm7731_vm8 = vcmask 257024  }
  0x11   : > { %8496 = vmatprep.subr.bf16.mxu0 %v11106_v2  ;;  %s9191_s25 = smul.u32 216, %s11200_s17  ;;  %s8268_s26 = sshll.u32 %s11200_s17, 7  ;;  %vm7833_vm9 = vcmask 253952  }
  0x12   : > { %v552_v7 = vunpack.c.0.s8 %v551_v5  ;;  %vm3875_vm5 = vcmp.ge.s32.totalorder %v9345_v6, 1  ;;  %s10923_s29 = scalar_lea.vmem %s11104_s10, %s8268_s26  ;;  %s428_s13 = scalar_lea.vmem %s11105_s11, %s11200_s17 }
  0x13   : > { %s9356_s28 = scalar_lea.vmem %s11094_s0, %s9191_s25 }
  0x14   : > { %8497 = vmatpush3.bf16.msra.mxu0 %v9222_v3  ;;  %v9351_v8 = vsub.s32 %v552_v7, %v9345_v6  ;;  %v7967_v9 = vld.sshfl [vmem:[%s9356_s28] sm:$0x33 pattern:$0x75316420] }
  0x15   : > { %v7968_v10 = vld.sshfl [vmem:[%s9356_s28 + $0x4] sm:$0x33 pattern:$0x75316420]  ;;  %v549_v11 = vcombine.high %v7967_v9, %v7967_v9 }
  0x16   : > { %v556_v12 = vrot.slane %v7967_v9, %v9351_v8  ;;  %v573_v13 = vcombine.high %v7968_v10, %v7968_v10  ;;  %v580_v14 = vrot.slane %v7968_v10, %v9351_v8  ;;  %v7969_v15 = vld.sshfl [vmem:[%s9356_s28 + $0x8] sm:$0x1 pattern:$0x75316420] }
  0x17   : > { %v563_v16 = vrot.slane %v549_v11, %v9351_v8  ;;  %v7970_v17 = vld.sshfl [vmem:[%s9356_s28 + $0xc] sm:$0x33 pattern:$0x75316420]  ;;  %v603_v20 = vrot.slane %v7969_v15, %v9351_v8 }
  0x18   : > { %v587_v18 = vrot.slane %v573_v13, %v9351_v8  ;;  %v7971_v19 = vld.sshfl [vmem:[%s9356_s28 + $0x10] sm:$0x33 pattern:$0x75316420]  ;;  %v611_v21 = vcombine.high %v7970_v17, %v7970_v17  ;;  %v618_v22 = vrot.slane %v7970_v17, %v9351_v8 }
  0x19   : > { %v1662_v23 = vcombine.low %v556_v12, %v563_v16  ;;  %v8021_v24 = vcombine.high %v556_v12, %v563_v16  ;;  %v635_v25 = vcombine.high %v7971_v19, %v7971_v19  ;;  %v642_v26 = vrot.slane %v7971_v19, %v9351_v8  ;;  %v7972_v35 = vld.sshfl [vmem:[%s9356_s28 + $0x14] sm:$0x1 pattern:$0x75316420] }
  0x1a   : > { %v1664_v27 = vcombine.low %v580_v14, %v587_v18  ;;  %v8022_v28 = vcombine.high %v580_v14, %v587_v18  ;;  %v625_v29 = vrot.slane %v611_v21, %v9351_v8  ;;  %v626_v30 = vcombine.high %v618_v22, %v618_v22  ;;  %v7973_v40 = vld.sshfl [vmem:[%s9356_s28 + $0x18] sm:$0x33 pattern:$0x75316420] }
  0x1b   : > { %v1672_v31 = vrot.slane %v1662_v23, %v9351_v8  ;;  %v1679_v32 = vrot.slane %v8021_v24, %v9351_v8  ;;  %v649_v33 = vrot.slane %v635_v25, %v9351_v8  ;;  %v650_v34 = vcombine.high %v642_v26, %v642_v26  ;;  %v7974_v44 = vld.sshfl [vmem:[%s9356_s28 + $0x1c] sm:$0x33 pattern:$0x75316420] }
  0x1c   : > { %v1686_v36 = vrot.slane %v1664_v27, %v9351_v8  ;;  %v1693_v37 = vrot.slane %v8022_v28, %v9351_v8  ;;  %v627_v38 = vcombine.high %v625_v29, %v625_v29  ;;  %v1711_v39 = vcombine.low %v603_v20, %v618_v22  ;;  %v7975_v54 = vld.sshfl [vmem:[%s9356_s28 + $0x20] sm:$0x1 pattern:$0x75316420] }
  0x1d   : > { %v1694_v41 = vcombine.low %v1672_v31, %v1679_v32  ;;  %v1712_v42 = vcombine.low %v625_v29, %v626_v30  ;;  %v1714_v43 = vcombine.low %v649_v33, %v650_v34  ;;  %v651_v45 = vcombine.high %v649_v33, %v649_v33  ;;  %v7976_v63 = vld.sshfl [vmem:[%s9356_s28 + $0x24] sm:$0x33 pattern:$0x75316420] }
  0x1e   : > { %v1695_v46 = vcombine.low %v1686_v36, %v1693_v37  ;;  %v1713_v47 = vcombine.low %v627_v38, %v642_v26  ;;  %v1721_v48 = vrot.slane %v1711_v39, %v9351_v8  ;;  %v665_v49 = vrot.slane %v7972_v35, %v9351_v8  ;;  %v7977_v4 = vld.sshfl [vmem:[%s9356_s28 + $0x28] sm:$0x33 pattern:$0x75316420] }
  0x1f   : > { %v1702_v50 = vrot.slane %v1694_v41, %v9351_v8  ;;  %v1728_v51 = vrot.slane %v1712_v42, %v9351_v8  ;;  %v1742_v52 = vrot.slane %v1714_v43, %v9351_v8  ;;  %v673_v53 = vcombine.high %v7973_v40, %v7973_v40  ;;  %v7978_v23 = vld.sshfl [vmem:[%s9356_s28 + $0x2c] sm:$0x1 pattern:$0x75316420] }
  0x20   : > { %v1709_v55 = vrot.slane %v1695_v46, %v9351_v8  ;;  %v1735_v56 = vrot.slane %v1713_v47, %v9351_v8  ;;  %v680_v57 = vrot.slane %v7973_v40, %v9351_v8  ;;  %v697_v58 = vcombine.high %v7974_v44, %v7974_v44  ;;  %v7979_v26 = vld.sshfl [vmem:[%s9356_s28 + $0x30] sm:$0x33 pattern:$0x75316420] }
  0x21   : > { %v1743_v59 = vcombine.low %v1721_v48, %v1728_v51  ;;  %v687_v60 = vrot.slane %v673_v53, %v9351_v8  ;;  %v704_v61 = vrot.slane %v7974_v44, %v9351_v8  ;;  %v1760_v62 = vcombine.low %v651_v45, %v665_v49  ;;  %v7980_v42 = vld.sshfl [vmem:[%s9356_s28 + $0x34] sm:$0x33 pattern:$0x75316420] }
  0x22   : > { %v1710_v0 = vcombine.low %v1702_v50, %v1709_v55  ;;  %v1744_v1 = vcombine.low %v1735_v56, %v1742_v52  ;;  %v711_v3 = vrot.slane %v697_v58, %v9351_v8  ;;  %v727_v5 = vrot.slane %v7975_v54, %v9351_v8  ;;  %v7982_v47 = vld.sshfl [vmem:[%s9356_s28 + $0x3c] sm:$0x33 pattern:$0x75316420] }
  0x23   : > { %v1751_v7 = vrot.slane %v1743_v59, %v9351_v8  ;;  %v1761_v9 = vcombine.low %v680_v57, %v687_v60  ;;  %v8023_v10 = vcombine.high %v680_v57, %v687_v60  ;;  %v1770_v11 = vrot.slane %v1760_v62, %v9351_v8  ;;  %v7981_v53 = vld.sshfl [vmem:[%s9356_s28 + $0x38] sm:$0x1 pattern:$0x75316420] }
  0x24   : > { %8499 = vmatmul.mubr.msk.bf16.vlgmr.msra.gmra.mrb[0].mxu0 %vm2669_vm1, %v1710_v0  ;;  %v1758_v12 = vrot.slane %v1744_v1, %v9351_v8  ;;  %v1763_v13 = vcombine.low %v704_v61, %v711_v3  ;;  %v735_v14 = vcombine.high %v7976_v63, %v7976_v63  ;;  %v742_v15 = vrot.slane %v7976_v63, %v9351_v8  ;;  %v7983_v60 = vld.sshfl [vmem:[%s9356_s28 + $0x40] sm:$0x33 pattern:$0x75316420] }
  0x25   : > { %8502 = vmatprep.mubr.msk.bf16.mxu0 %vm9253_vm0, %v11106_v2  ;;  %v1777_v16 = vrot.slane %v1761_v9, %v9351_v8  ;;  %v1784_v17 = vrot.slane %v8023_v10, %v9351_v8  ;;  %v766_v18 = vrot.slane %v7977_v4, %v9351_v8  ;;  %v8024_v22 = vcombine.high %v704_v61, %v711_v3 }
  0x26   : > { %v1791_v19 = vrot.slane %v1763_v13, %v9351_v8  ;;  %v749_v20 = vrot.slane %v735_v14, %v9351_v8  ;;  %v750_v21 = vcombine.high %v742_v15, %v742_v15  ;;  %v1810_v25 = vcombine.low %v727_v5, %v742_v15 }
  0x27   : > { %v1792_v24 = vcombine.low %v1770_v11, %v1777_v16  ;;  %v759_v27 = vcombine.high %v7977_v4, %v7977_v4  ;;  %v1759_v28 = vcombine.low %v1751_v7, %v1758_v12  ;;  %v774_v33 = vcombine.high %v766_v18, %v766_v18  ;;  %v7985_v11 = vld.sshfl [vmem:[%s9356_s28 + $0x48] sm:$0x33 pattern:$0x75316420] }
  0x28   : > { %v1793_v29 = vcombine.low %v1784_v17, %v1791_v19  ;;  %v751_v30 = vcombine.high %v749_v20, %v749_v20  ;;  %v1811_v31 = vcombine.low %v749_v20, %v750_v21  ;;  %v1819_v35 = vrot.slane %v8024_v22, %v9351_v8  ;;  %v7984_v22 = vld.sshfl [vmem:[%s9356_s28 + $0x44] sm:$0x1 pattern:$0x75316420] }
  0x29   : > { %v773_v32 = vrot.slane %v759_v27, %v9351_v8  ;;  %v789_v36 = vrot.slane %v7978_v23, %v9351_v8  ;;  %v797_v37 = vcombine.high %v7979_v26, %v7979_v26  ;;  %v1800_v38 = vrot.slane %v1792_v24, %v9351_v8 }
  0x2a   : > { %v1812_v34 = vcombine.low %v751_v30, %v766_v18  ;;  %v1826_v39 = vrot.slane %v1810_v25, %v9351_v8  ;;  %v804_v41 = vrot.slane %v7979_v26, %v9351_v8  ;;  %v1807_v43 = vrot.slane %v1793_v29, %v9351_v8 }
  0x2b   : > { %v775_v40 = vcombine.high %v773_v32, %v773_v32  ;;  %v1833_v44 = vrot.slane %v1811_v31, %v9351_v8  ;;  %v811_v46 = vrot.slane %v797_v37, %v9351_v8  ;;  %v1858_v48 = vcombine.low %v773_v32, %v774_v33 }
  0x2c   : > { %8503 = vmatmul.mubr.msk.bf16.gmra.mrb[4].mxu0 %vm2669_vm1, %v1759_v28  ;;  %v1840_v45 = vrot.slane %v1812_v34, %v9351_v8  ;;  %v821_v50 = vcombine.high %v7980_v42, %v7980_v42  ;;  %v859_v54 = vcombine.high %v7982_v47, %v7982_v47  ;;  %v866_v55 = vrot.slane %v7982_v47, %v9351_v8 }
  0x2d   : > { %8506 = vmatprep.mubr.msk.bf16.mxu0 %vm9253_vm0, %v11106_v2  ;;  %v1859_v49 = vcombine.low %v775_v40, %v789_v36  ;;  %v1860_v51 = vcombine.low %v804_v41, %v811_v46  ;;  %v8025_v52 = vcombine.high %v804_v41, %v811_v46  ;;  %v1808_v56 = vcombine.low %v1800_v38, %v1807_v43  ;;  %v7989_v46 = vld.sshfl [vmem:[%s9356_s28 + $0x58] sm:$0x33 pattern:$0x75316420] }
  0x2e   : > { %v1841_v57 = vcombine.low %v1819_v35, %v1826_v39  ;;  %v1842_v58 = vcombine.low %v1833_v44, %v1840_v45  ;;  %v1868_v59 = vrot.slane %v1858_v48, %v9351_v8  ;;  %v828_v62 = vrot.slane %v7980_v42, %v9351_v8  ;;  %v7986_v35 = vld.sshfl [vmem:[%s9356_s28 + $0x4c] sm:$0x33 pattern:$0x75316420] }
  0x2f   : > { %v1875_v61 = vrot.slane %v1859_v49, %v9351_v8  ;;  %v835_v63 = vrot.slane %v821_v50, %v9351_v8  ;;  %v851_v0 = vrot.slane %v7981_v53, %v9351_v8  ;;  %v1882_v1 = vrot.slane %v1860_v51, %v9351_v8  ;;  %v7987_v39 = vld.sshfl [vmem:[%s9356_s28 + $0x50] sm:$0x1 pattern:$0x75316420] }
  0x30   : > { %v1889_v3 = vrot.slane %v8025_v52, %v9351_v8  ;;  %v873_v4 = vrot.slane %v859_v54, %v9351_v8  ;;  %v874_v5 = vcombine.high %v866_v55, %v866_v55  ;;  %v1849_v7 = vrot.slane %v1841_v57, %v9351_v8  ;;  %v7988_v45 = vld.sshfl [vmem:[%s9356_s28 + $0x54] sm:$0x33 pattern:$0x75316420] }
  0x31   : > { %v1856_v9 = vrot.slane %v1842_v58, %v9351_v8  ;;  %v883_v10 = vcombine.high %v7983_v60, %v7983_v60  ;;  %v1907_v12 = vcombine.low %v828_v62, %v835_v63  ;;  %v8026_v13 = vcombine.high %v828_v62, %v835_v63 }
  0x32   : > { %v890_v14 = vrot.slane %v7983_v60, %v9351_v8  ;;  %v1890_v15 = vcombine.low %v1868_v59, %v1875_v61  ;;  %v1891_v16 = vcombine.low %v1882_v1, %v1889_v3  ;;  %v1909_v17 = vcombine.low %v851_v0, %v866_v55 }
  0x33   : > { %v1910_v18 = vcombine.low %v873_v4, %v874_v5  ;;  %v1857_v19 = vcombine.low %v1849_v7, %v1856_v9  ;;  %v897_v20 = vrot.slane %v883_v10, %v9351_v8  ;;  %v921_v21 = vcombine.high %v7985_v11, %v7985_v11  ;;  %v7990_v7 = vld.sshfl [vmem:[%s9356_s28 + $0x5c] sm:$0x1 pattern:$0x75316420] }
  0x34   : > { %8507 = vmatmul.mubr.msk.bf16.gmra.mrb[8].mxu0 %vm2669_vm1, %v1808_v56  ;;  %v1917_v23 = vrot.slane %v1907_v12, %v9351_v8  ;;  %v1924_v24 = vrot.slane %v8026_v13, %v9351_v8  ;;  %v875_v25 = vcombine.high %v873_v4, %v873_v4  ;;  %v898_v26 = vcombine.high %v890_v14, %v890_v14  ;;  %v7991_v12 = vld.sshfl [vmem:[%s9356_s28 + $0x60] sm:$0x33 pattern:$0x75316420] }
  0x35   : > { %8510 = vmatprep.mubr.msk.bf16.mxu0 %vm9253_vm0, %v11106_v2  ;;  %v1898_v27 = vrot.slane %v1890_v15, %v9351_v8  ;;  %v1905_v28 = vrot.slane %v1891_v16, %v9351_v8  ;;  %v1931_v29 = vrot.slane %v1909_v17, %v9351_v8  ;;  %v1938_v30 = vrot.slane %v1910_v18, %v9351_v8  ;;  %v7992_v17 = vld.sshfl [vmem:[%s9356_s28 + $0x64] sm:$0x33 pattern:$0x75316420] }
  0x36   : > { %v899_v31 = vcombine.high %v897_v20, %v897_v20  ;;  %v913_v32 = vrot.slane %v7984_v22, %v9351_v8  ;;  %v928_v33 = vrot.slane %v7985_v11, %v9351_v8  ;;  %v935_v34 = vrot.slane %v921_v21, %v9351_v8 }
  0x37   : > { %v1939_v36 = vcombine.low %v1917_v23, %v1924_v24  ;;  %v1956_v37 = vcombine.low %v875_v25, %v890_v14  ;;  %v1957_v38 = vcombine.low %v897_v20, %v898_v26  ;;  %v945_v40 = vcombine.high %v7986_v35, %v7986_v35 }
  0x38   : > { %v1906_v41 = vcombine.low %v1898_v27, %v1905_v28  ;;  %v1940_v42 = vcombine.low %v1931_v29, %v1938_v30  ;;  %v1958_v43 = vcombine.low %v899_v31, %v913_v32  ;;  %v1959_v44 = vcombine.low %v928_v33, %v935_v34  ;;  %v7994_v31 = vld.sshfl [vmem:[%s9356_s28 + $0x6c] sm:$0x33 pattern:$0x75316420] }
  0x39   : > { %v1947_v47 = vrot.slane %v1939_v36, %v9351_v8  ;;  %v1966_v48 = vrot.slane %v1956_v37, %v9351_v8  ;;  %v1973_v49 = vrot.slane %v1957_v38, %v9351_v8  ;;  %v952_v50 = vrot.slane %v7986_v35, %v9351_v8 }
  0x3a   : > { %v959_v51 = vrot.slane %v945_v40, %v9351_v8  ;;  %v975_v52 = vrot.slane %v7987_v39, %v9351_v8  ;;  %v990_v53 = vrot.slane %v7988_v45, %v9351_v8  ;;  %v983_v54 = vcombine.high %v7988_v45, %v7988_v45 }
  0x3b   : > { %v1954_v55 = vrot.slane %v1940_v42, %v9351_v8  ;;  %v1980_v56 = vrot.slane %v1958_v43, %v9351_v8  ;;  %v1987_v57 = vrot.slane %v1959_v44, %v9351_v8  ;;  %v1007_v58 = vcombine.high %v7989_v46, %v7989_v46  ;;  %v7995_v43 = vld.sshfl [vmem:[%s9356_s28 + $0x70] sm:$0x33 pattern:$0x75316420] }
  0x3c   : > { %8511 = vmatmul.mubr.msk.bf16.gmra.mrb[12].mxu0 %vm2669_vm1, %v1857_v19  ;;  %v1988_v59 = vcombine.low %v1966_v48, %v1973_v49  ;;  %v8027_v60 = vcombine.high %v928_v33, %v935_v34  ;;  %v2006_v61 = vcombine.low %v952_v50, %v959_v51  ;;  %v8028_v62 = vcombine.high %v952_v50, %v959_v51  ;;  %v7993_v49 = vld.sshfl [vmem:[%s9356_s28 + $0x68] sm:$0x1 pattern:$0x75316420] }
  0x3d   : > { %8514 = vmatprep.mubr.msk.bf16.mxu0 %vm9253_vm0, %v11106_v2  ;;  %v2008_v63 = vcombine.low %v975_v52, %v990_v53  ;;  %v997_v0 = vrot.slane %v983_v54, %v9351_v8  ;;  %v1955_v1 = vcombine.low %v1947_v47, %v1954_v55  ;;  %v1989_v3 = vcombine.low %v1980_v56, %v1987_v57 }
  0x3e   : > { %v1014_v4 = vrot.slane %v7989_v46, %v9351_v8  ;;  %v1021_v5 = vrot.slane %v1007_v58, %v9351_v8  ;;  %v1996_v9 = vrot.slane %v1988_v59, %v9351_v8  ;;  %v2015_v10 = vrot.slane %v8027_v60, %v9351_v8 }
  0x3f   : > { %v998_v11 = vcombine.high %v990_v53, %v990_v53  ;;  %v2022_v13 = vrot.slane %v2006_v61, %v9351_v8  ;;  %v2029_v14 = vrot.slane %v8028_v62, %v9351_v8  ;;  %v2036_v15 = vrot.slane %v2008_v63, %v9351_v8 }
  0x40   : > { %v999_v16 = vcombine.high %v997_v0, %v997_v0  ;;  %v2003_v18 = vrot.slane %v1989_v3, %v9351_v8  ;;  %v1022_v19 = vcombine.high %v1014_v4, %v1014_v4  ;;  %v1023_v20 = vcombine.high %v1021_v5, %v1021_v5 }
  0x41   : > { %v1037_v21 = vrot.slane %v7990_v7, %v9351_v8  ;;  %v1045_v22 = vcombine.high %v7991_v12, %v7991_v12  ;;  %v1069_v23 = vcombine.high %v7992_v17, %v7992_v17  ;;  %v2037_v24 = vcombine.low %v2015_v10, %v2022_v13  ;;  %v7998_v7 = vld.sshfl [vmem:[%s9356_s28 + $0x7c] sm:$0x33 pattern:$0x75316420] }
  0x42   : > { %v2038_v25 = vcombine.low %v2029_v14, %v2036_v15  ;;  %v2054_v26 = vcombine.low %v997_v0, %v998_v11  ;;  %v2004_v27 = vcombine.low %v1996_v9, %v2003_v18  ;;  %v2055_v28 = vcombine.low %v999_v16, %v1014_v4  ;;  %v7997_v4 = vld.sshfl [vmem:[%s9356_s28 + $0x78] sm:$0x33 pattern:$0x75316420] }
  0x43   : > { %v2056_v29 = vcombine.low %v1021_v5, %v1022_v19  ;;  %v2057_v30 = vcombine.low %v1023_v20, %v1037_v21  ;;  %v1052_v32 = vrot.slane %v7991_v12, %v9351_v8  ;;  %v1059_v33 = vrot.slane %v1045_v22, %v9351_v8  ;;  %v7996_v15 = vld.sshfl [vmem:[%s9356_s28 + $0x74] sm:$0x1 pattern:$0x75316420] }
  0x44   : > { %8515 = vmatmul.mubr.msk.bf16.gmra.mrb[16].mxu0 %vm2669_vm1, %v1906_v41  ;;  %v1076_v34 = vrot.slane %v7992_v17, %v9351_v8  ;;  %v1083_v35 = vrot.slane %v1069_v23, %v9351_v8  ;;  %v2045_v36 = vrot.slane %v2037_v24, %v9351_v8  ;;  %v2064_v37 = vrot.slane %v2054_v26, %v9351_v8  ;;  %v8000_v19 = vld.sshfl [vmem:[%s9356_s28 + $0x84] sm:$0x33 pattern:$0x75316420] }
  0x45   : > { %8518 = vmatprep.mubr.msk.bf16.mxu0 %vm9253_vm0, %v11106_v2  ;;  %v1107_v38 = vcombine.high %v7994_v31, %v7994_v31  ;;  %v2052_v39 = vrot.slane %v2038_v25, %v9351_v8  ;;  %v2071_v40 = vrot.slane %v2055_v28, %v9351_v8  ;;  %v2078_v41 = vrot.slane %v2056_v29, %v9351_v8 }
  0x46   : > { %v2085_v42 = vrot.slane %v2057_v30, %v9351_v8  ;;  %v2103_v44 = vcombine.low %v1052_v32, %v1059_v33  ;;  %v8029_v45 = vcombine.high %v1052_v32, %v1059_v33  ;;  %v2105_v46 = vcombine.low %v1076_v34, %v1083_v35 }
  0x47   : > { %v8030_v47 = vcombine.high %v1076_v34, %v1083_v35  ;;  %v1114_v48 = vrot.slane %v7994_v31, %v9351_v8  ;;  %v1121_v50 = vrot.slane %v1107_v38, %v9351_v8  ;;  %v1131_v51 = vcombine.high %v7995_v43, %v7995_v43 }
  0x48   : > { %v1138_v52 = vrot.slane %v7995_v43, %v9351_v8  ;;  %v2053_v53 = vcombine.low %v2045_v36, %v2052_v39  ;;  %v2086_v54 = vcombine.low %v2064_v37, %v2071_v40  ;;  %v2087_v55 = vcombine.low %v2078_v41, %v2085_v42  ;;  %v7999_v36 = vld.sshfl [vmem:[%s9356_s28 + $0x80] sm:$0x1 pattern:$0x75316420] }
  0x49   : > { %v2113_v56 = vrot.slane %v2103_v44, %v9351_v8  ;;  %v2120_v57 = vrot.slane %v8029_v45, %v9351_v8  ;;  %v2127_v58 = vrot.slane %v2105_v46, %v9351_v8  ;;  %v2134_v59 = vrot.slane %v8030_v47, %v9351_v8  ;;  %v8001_v41 = vld.sshfl [vmem:[%s9356_s28 + $0x88] sm:$0x33 pattern:$0x75316420] }
  0x4a   : > { %v1099_v60 = vrot.slane %v7993_v49, %v9351_v8  ;;  %v1122_v61 = vcombine.high %v1114_v48, %v1114_v48  ;;  %v1123_v62 = vcombine.high %v1121_v50, %v1121_v50  ;;  %v1145_v63 = vrot.slane %v1131_v51, %v9351_v8 }
  0x4b   : > { %v1146_v0 = vcombine.high %v1138_v52, %v1138_v52  ;;  %v2101_v3 = vrot.slane %v2087_v55, %v9351_v8  ;;  %v2135_v5 = vcombine.low %v2113_v56, %v2120_v57  ;;  %v2136_v9 = vcombine.low %v2127_v58, %v2134_v59  ;;  %v8002_v59 = vld.sshfl [vmem:[%s9356_s28 + $0x8c] sm:$0x1 pattern:$0x75316420] }
  0x4c   : > { %8519 = vmatmul.mubr.msk.bf16.gmra.mrb[20].mxu0 %vm2669_vm1, %v1955_v1  ;;  %v2094_v1 = vrot.slane %v2086_v54, %v9351_v8  ;;  %v2152_v10 = vcombine.low %v1099_v60, %v1114_v48  ;;  %v2153_v11 = vcombine.low %v1121_v50, %v1122_v61  ;;  %v2154_v12 = vcombine.low %v1123_v62, %v1138_v52  ;;  %v8003_v54 = vld.sshfl [vmem:[%s9356_s28 + $0x90] sm:$0x33 pattern:$0x75316420] }
  0x4d   : > { %8522 = vmatprep.mubr.msk.bf16.mxu0 %vm9253_vm0, %v11106_v2  ;;  %v2155_v13 = vcombine.low %v1145_v63, %v1146_v0  ;;  %v1169_v16 = vcombine.high %v7997_v4, %v7997_v4  ;;  %v1193_v17 = vcombine.high %v7998_v7, %v7998_v7  ;;  %v2143_v18 = vrot.slane %v2135_v5, %v9351_v8 }
  0x4e   : > { %v2102_v14 = vcombine.low %v2094_v1, %v2101_v3  ;;  %v2150_v20 = vrot.slane %v2136_v9, %v9351_v8  ;;  %v2162_v21 = vrot.slane %v2152_v10, %v9351_v8  ;;  %v2169_v22 = vrot.slane %v2153_v11, %v9351_v8  ;;  %v8004_v11 = vld.sshfl [vmem:[%s9356_s28 + $0x94] sm:$0x33 pattern:$0x75316420] }
  0x4f   : > { %v1147_v23 = vcombine.high %v1145_v63, %v1145_v63  ;;  %v2176_v24 = vrot.slane %v2154_v12, %v9351_v8  ;;  %v2183_v25 = vrot.slane %v2155_v13, %v9351_v8  ;;  %v1161_v26 = vrot.slane %v7996_v15, %v9351_v8 }
  0x50   : > { %v1183_v28 = vrot.slane %v1169_v16, %v9351_v8  ;;  %v1200_v29 = vrot.slane %v7998_v7, %v9351_v8  ;;  %v1207_v30 = vrot.slane %v1193_v17, %v9351_v8  ;;  %v1231_v31 = vcombine.high %v8000_v19, %v8000_v19  ;;  %v8006_v16 = vld.sshfl [vmem:[%s9356_s28 + $0x9c] sm:$0x33 pattern:$0x75316420] }
  0x51   : > { %v2184_v32 = vcombine.low %v2162_v21, %v2169_v22  ;;  %v2151_v33 = vcombine.low %v2143_v18, %v2150_v20  ;;  %v2185_v34 = vcombine.low %v2176_v24, %v2183_v25  ;;  %v2201_v35 = vcombine.low %v1147_v23, %v1161_v26  ;;  %v8005_v22 = vld.sshfl [vmem:[%s9356_s28 + $0x98] sm:$0x1 pattern:$0x75316420] }
  0x52   : > { %v1238_v37 = vrot.slane %v8000_v19, %v9351_v8  ;;  %v2204_v40 = vcombine.low %v1200_v29, %v1207_v30  ;;  %v1245_v42 = vrot.slane %v1231_v31, %v9351_v8  ;;  %v1223_v44 = vrot.slane %v7999_v36, %v9351_v8 }
  0x53   : > { %v2192_v43 = vrot.slane %v2184_v32, %v9351_v8  ;;  %v1255_v45 = vcombine.high %v8001_v41, %v8001_v41  ;;  %v2199_v46 = vrot.slane %v2185_v34, %v9351_v8  ;;  %v2211_v47 = vrot.slane %v2201_v35, %v9351_v8 }
  0x54   : > { %8523 = vmatmul.mubr.msk.bf16.gmra.mrb[24].mxu0 %vm2669_vm1, %v2004_v27  ;;  %v1176_v27 = vrot.slane %v7997_v4, %v9351_v8  ;;  %v1246_v48 = vcombine.high %v1238_v37, %v1238_v37  ;;  %v1262_v49 = vrot.slane %v8001_v41, %v9351_v8  ;;  %v2232_v52 = vrot.slane %v2204_v40, %v9351_v8  ;;  %v8009_v41 = vld.sshfl [vmem:[%s9356_s28 + $0xa8] sm:$0x33 pattern:$0x75316420] }
  0x55   : > { %8526 = vmatprep.mubr.msk.bf16.mxu0 %vm9253_vm0, %v11106_v2  ;;  %v1269_v55 = vrot.slane %v1255_v45, %v9351_v8  ;;  %v2200_v56 = vcombine.low %v2192_v43, %v2199_v46  ;;  %v8032_v57 = vcombine.high %v1200_v29, %v1207_v30  ;;  %v2251_v58 = vcombine.low %v1223_v44, %v1238_v37  ;;  %v8007_v29 = vld.sshfl [vmem:[%s9356_s28 + $0xa0] sm:$0x33 pattern:$0x75316420] }
  0x56   : > { %v2202_v38 = vcombine.low %v1176_v27, %v1183_v28  ;;  %v8031_v39 = vcombine.high %v1176_v27, %v1183_v28  ;;  %v1293_v60 = vcombine.high %v8003_v54, %v8003_v54  ;;  %v2252_v63 = vcombine.low %v1245_v42, %v1246_v48 }
  0x57   : > { %v1270_v1 = vcombine.high %v1262_v49, %v1262_v49  ;;  %v1271_v3 = vcombine.high %v1269_v55, %v1269_v55  ;;  %v1285_v4 = vrot.slane %v8002_v59, %v9351_v8  ;;  %v2260_v5 = vrot.slane %v8032_v57, %v9351_v8  ;;  %v8010_v57 = vld.sshfl [vmem:[%s9356_s28 + $0xac] sm:$0x33 pattern:$0x75316420] }
  0x58   : > { %v2218_v50 = vrot.slane %v2202_v38, %v9351_v8  ;;  %v2225_v51 = vrot.slane %v8031_v39, %v9351_v8  ;;  %v2267_v7 = vrot.slane %v2251_v58, %v9351_v8  ;;  %v1300_v9 = vrot.slane %v8003_v54, %v9351_v8 }
  0x59   : > { %v1307_v10 = vrot.slane %v1293_v60, %v9351_v8  ;;  %v2299_v17 = vcombine.low %v1269_v55, %v1270_v1  ;;  %v2300_v18 = vcombine.low %v1271_v3, %v1285_v4  ;;  %v1317_v19 = vcombine.high %v8004_v11, %v8004_v11  ;;  %v8011_v3 = vld.sshfl [vmem:[%s9356_s28 + $0xb0] sm:$0x1 pattern:$0x75316420] }
  0x5a   : > { %v2233_v61 = vcombine.low %v2211_v47, %v2218_v50  ;;  %v2234_v62 = vcombine.low %v2225_v51, %v2232_v52  ;;  %v1355_v23 = vcombine.high %v8006_v16, %v8006_v16  ;;  %v1362_v24 = vrot.slane %v8006_v16, %v9351_v8  ;;  %v8008_v52 = vld.sshfl [vmem:[%s9356_s28 + $0xa4] sm:$0x1 pattern:$0x75316420] }
  0x5b   : > { %v2301_v20 = vcombine.low %v1300_v9, %v1307_v10  ;;  %v8033_v21 = vcombine.high %v1300_v9, %v1307_v10  ;;  %v2282_v26 = vcombine.low %v2260_v5, %v2267_v7  ;;  %v1324_v28 = vrot.slane %v8004_v11, %v9351_v8  ;;  %v8012_v5 = vld.sshfl [vmem:[%s9356_s28 + $0xb4] sm:$0x33 pattern:$0x75316420] }
  0x5c   : > { %8527 = vmatmul.mubr.msk.bf16.gmra.mrb[28].mxu0 %vm2669_vm1, %v2053_v53  ;;  %v1247_v53 = vcombine.high %v1245_v42, %v1245_v42  ;;  %v2241_v12 = vrot.slane %v2233_v61, %v9351_v8  ;;  %v2248_v13 = vrot.slane %v2234_v62, %v9351_v8  ;;  %v2309_v30 = vrot.slane %v2299_v17, %v9351_v8 }
  0x5d   : > { %8530 = vmatprep.mubr.msk.bf16.mxu0 %vm9253_vm0, %v11106_v2  ;;  %v2316_v31 = vrot.slane %v2300_v18, %v9351_v8  ;;  %v1331_v32 = vrot.slane %v1317_v19, %v9351_v8  ;;  %v2323_v34 = vrot.slane %v2301_v20, %v9351_v8  ;;  %v2330_v35 = vrot.slane %v8033_v21, %v9351_v8  ;;  %v8013_v19 = vld.sshfl [vmem:[%s9356_s28 + $0xb8] sm:$0x33 pattern:$0x75316420] }
  0x5e   : > { %v2253_v0 = vcombine.low %v1247_v53, %v1262_v49  ;;  %v2249_v25 = vcombine.low %v2241_v12, %v2248_v13  ;;  %v1369_v36 = vrot.slane %v1355_v23, %v9351_v8  ;;  %v1370_v37 = vcombine.high %v1362_v24, %v1362_v24 }
  0x5f   : > { %v2290_v38 = vrot.slane %v2282_v26, %v9351_v8  ;;  %v1379_v40 = vcombine.high %v8007_v29, %v8007_v29  ;;  %v2331_v42 = vcombine.low %v2309_v30, %v2316_v31  ;;  %v2348_v43 = vcombine.low %v1324_v28, %v1331_v32 }
  0x60   : > { %v2281_v15 = vrot.slane %v2253_v0, %v9351_v8  ;;  %v8034_v44 = vcombine.high %v1324_v28, %v1331_v32  ;;  %v2332_v45 = vcombine.low %v2323_v34, %v2330_v35  ;;  %v2351_v47 = vcombine.low %v1369_v36, %v1370_v37 }
  0x61   : > { %v1386_v48 = vrot.slane %v8007_v29, %v9351_v8  ;;  %v1393_v50 = vrot.slane %v1379_v40, %v9351_v8  ;;  %v1417_v51 = vcombine.high %v8009_v41, %v8009_v41  ;;  %v2339_v53 = vrot.slane %v2331_v42, %v9351_v8  ;;  %v8014_v42 = vld.sshfl [vmem:[%s9356_s28 + $0xbc] sm:$0x1 pattern:$0x75316420] }
  0x62   : > { %v2358_v54 = vrot.slane %v2348_v43, %v9351_v8  ;;  %v2365_v55 = vrot.slane %v8034_v44, %v9351_v8  ;;  %v2346_v58 = vrot.slane %v2332_v45, %v9351_v8  ;;  %v2379_v60 = vrot.slane %v2351_v47, %v9351_v8 }
  0x63   : > { %v1394_v61 = vcombine.high %v1386_v48, %v1386_v48  ;;  %v1395_v62 = vcombine.high %v1393_v50, %v1393_v50  ;;  %v1424_v0 = vrot.slane %v8009_v41, %v9351_v8  ;;  %v1431_v1 = vrot.slane %v1417_v51, %v9351_v8  ;;  %v8016_v51 = vld.sshfl [vmem:[%s9356_s28 + $0xc4] sm:$0x33 pattern:$0x75316420] }
  0x64   : > { %8531 = vmatmul.mubr.msk.bf16.gmra.mrb[32].mxu0 %vm2669_vm1, %v2102_v14  ;;  %v2274_v14 = vrot.slane %v2252_v63, %v9351_v8  ;;  %v1409_v63 = vrot.slane %v8008_v52, %v9351_v8  ;;  %v1441_v4 = vcombine.high %v8010_v57, %v8010_v57  ;;  %v2380_v7 = vcombine.low %v2358_v54, %v2365_v55 }
  0x65   : > { %8534 = vmatprep.mubr.msk.bf16.mxu0 %vm9253_vm0, %v11106_v2  ;;  %v2398_v11 = vcombine.low %v1393_v50, %v1394_v61  ;;  %v2347_v12 = vcombine.low %v2339_v53, %v2346_v58  ;;  %v1471_v17 = vrot.slane %v8011_v3, %v9351_v8  ;;  %v1486_v18 = vrot.slane %v8012_v5, %v9351_v8  ;;  %v8018_v61 = vld.sshfl [vmem:[%s9356_s28 + $0xcc] sm:$0x33 pattern:$0x75316420] }
  0x66   : > { %v2283_v27 = vcombine.low %v2274_v14, %v2281_v15  ;;  %v2399_v13 = vcombine.low %v1395_v62, %v1409_v63  ;;  %v2400_v14 = vcombine.low %v1424_v0, %v1431_v1  ;;  %v1448_v15 = vrot.slane %v8010_v57, %v9351_v8 }
  0x67   : > { %v1455_v16 = vrot.slane %v1441_v4, %v9351_v8  ;;  %v1479_v20 = vcombine.high %v8012_v5, %v8012_v5  ;;  %v2388_v21 = vrot.slane %v2380_v7, %v9351_v8  ;;  %v1503_v28 = vcombine.high %v8013_v19, %v8013_v19 }
  0x68   : > { %v2297_v39 = vrot.slane %v2283_v27, %v9351_v8  ;;  %v2428_v26 = vrot.slane %v2400_v14, %v9351_v8  ;;  %v8035_v27 = vcombine.high %v1424_v0, %v1431_v1  ;;  %v2449_v31 = vcombine.low %v1471_v17, %v1486_v18  ;;  %v8064_v1 = vld [vmem:[%s11098_s4 + $0x4] sm:$0xf]  ;;  %v8019_v14 = vld.sshfl [vmem:[%s9356_s28 + $0xd0] sm:$0x33 pattern:$0x75316420] }
  0x69   : > { %v2447_v29 = vcombine.low %v1448_v15, %v1455_v16  ;;  %v8036_v30 = vcombine.high %v1448_v15, %v1455_v16  ;;  %v1493_v32 = vrot.slane %v1479_v20, %v9351_v8  ;;  %v1510_v37 = vrot.slane %v8013_v19, %v9351_v8  ;;  %9180 = vmatprep.subr.msk.bf16.mxu0 %vm5188_vm2, %v8064_v1 }
  0x6a   : > { %v2298_v49 = vcombine.low %v2290_v38, %v2297_v39  ;;  %v1517_v38 = vrot.slane %v1503_v28, %v9351_v8  ;;  %v2477_v41 = vrot.slane %v2449_v31, %v9351_v8  ;;  %v1494_v43 = vcombine.high %v1486_v18, %v1486_v18 }
  0x6b   : > { %v2463_v39 = vrot.slane %v2447_v29, %v9351_v8  ;;  %v2470_v40 = vrot.slane %v8036_v30, %v9351_v8  ;;  %v1495_v44 = vcombine.high %v1493_v32, %v1493_v32  ;;  %v1533_v50 = vrot.slane %v8014_v42, %v9351_v8 }
  0x6c   : > { %8535 = vmatmul.mubr.msk.bf16.gmra.mrb[36].mxu0 %vm2669_vm1, %v2151_v33  ;;  %v1347_v33 = vrot.slane %v8005_v22, %v9351_v8  ;;  %v2495_v54 = vcombine.low %v1493_v32, %v1494_v43  ;;  %v1565_v57 = vcombine.high %v8016_v51, %v8016_v51  ;;  %v5190_v7 = vsel %vm5188_vm2, %v8064_v1, 0 }
  0x6d   : > { %8538 = vmatprep.mubr.msk.bf16.mxu0 %vm9253_vm0, %v11106_v2  ;;  %v2479_v53 = vcombine.low %v2470_v40, %v2477_v41  ;;  %v2496_v55 = vcombine.low %v1495_v44, %v1510_v37  ;;  %8583 = vmatpush3.bf16.msra.mxu0 %v5190_v7  ;;  %v9255_v7 = vmov 1983009808  }
  0x6e   : > { %v2350_v46 = vcombine.low %v1347_v33, %v1362_v24  ;;  %v2414_v24 = vrot.slane %v2398_v11, %v9351_v8  ;;  %v2505_v0 = vrot.slane %v2495_v54, %v9351_v8  ;;  %v8020_v54 = vld.sshfl [vmem:[%s9356_s28 + $0xd4] sm:$0x1 pattern:$0x75316420] }
  0x6f   : > { %v2493_v63 = vrot.slane %v2479_v53, %v9351_v8  ;;  %v2512_v3 = vrot.slane %v2496_v55, %v9351_v8 }
  0x70   : > { %v2372_v59 = vrot.slane %v2350_v46, %v9351_v8  ;;  %v8015_v46 = vld.sshfl [vmem:[%s9356_s28 + $0xc0] sm:$0x33 pattern:$0x75316420] }
  0x71   : > { %v1548_v4 = vrot.slane %v8015_v46, %v9351_v8  ;;  %v2527_v16 = vcombine.low %v2505_v0, %v2512_v3 }
  0x72   : > { %v2381_v9 = vcombine.low %v2372_v59, %v2379_v60 }
  0x74   : > { %8539 = vmatmul.mubr.msk.bf16.gmra.mrb[40].mxu0 %vm2669_vm1, %v2200_v56  ;;  %v1371_v56 = vcombine.high %v1369_v36, %v1369_v36  ;;  %v2395_v22 = vrot.slane %v2381_v9, %v9351_v8  ;;  %v2456_v36 = vrot.slane %v8035_v27, %v9351_v8  ;;  %v1572_v9 = vrot.slane %v8016_v51, %v9351_v8 }
  0x75   : > { %8542 = vmatprep.mubr.msk.bf16.mxu0 %vm9253_vm0, %v11106_v2  ;;  %v2535_v27 = vrot.slane %v2527_v16, %v9351_v8 }
  0x76   : > { %v2397_v10 = vcombine.low %v1371_v56, %v1386_v48  ;;  %v2396_v33 = vcombine.low %v2388_v21, %v2395_v22  ;;  %v1518_v48 = vcombine.high %v1510_v37, %v1510_v37  ;;  %v2478_v52 = vcombine.low %v2456_v36, %v2463_v39  ;;  %v8017_v21 = vld.sshfl [vmem:[%s9356_s28 + $0xc8] sm:$0x1 pattern:$0x75316420] }
  0x77   : > { %v1541_v56 = vcombine.high %v8015_v46, %v8015_v46  ;;  %v1610_v22 = vrot.slane %v8018_v61, %v9351_v8  ;;  %v1595_v29 = vrot.slane %v8017_v21, %v9351_v8 }
  0x78   : > { %v2407_v23 = vrot.slane %v2397_v10, %v9351_v8  ;;  %v2497_v59 = vcombine.low %v1517_v38, %v1518_v48  ;;  %v2486_v62 = vrot.slane %v2478_v52, %v9351_v8  ;;  %v1579_v10 = vrot.slane %v1565_v57, %v9351_v8 }
  0x79   : > { %v1555_v5 = vrot.slane %v1541_v56, %v9351_v8  ;;  %v2593_v40 = vcombine.low %v1595_v29, %v1610_v22 }
  0x7a   : > { %v2429_v34 = vcombine.low %v2407_v23, %v2414_v24  ;;  %v2519_v11 = vrot.slane %v2497_v59, %v9351_v8  ;;  %v2494_v15 = vcombine.low %v2486_v62, %v2493_v63  ;;  %v2546_v19 = vcombine.low %v1572_v9, %v1579_v10 }
  0x7b   : > { %v2544_v17 = vcombine.low %v1548_v4, %v1555_v5  ;;  %v8037_v18 = vcombine.high %v1548_v4, %v1555_v5  ;;  %v8038_v20 = vcombine.high %v1572_v9, %v1579_v10  ;;  %v2603_v46 = vrot.slane %v2593_v40, %v9351_v8  ;;  %v9698_v10 = vld [vmem:[%s11096_s2] ss:$0 sm:$0xff] }
  0x7c   : > { %8543 = vmatmul.mubr.msk.bf16.gmra.mrb[44].mxu0 %vm2669_vm1, %v2249_v25  ;;  %v2421_v25 = vrot.slane %v2399_v13, %v9351_v8  ;;  %v2437_v45 = vrot.slane %v2429_v34, %v9351_v8  ;;  %v1603_v13 = vcombine.high %v8018_v61, %v8018_v61  ;;  %v2568_v31 = vrot.slane %v2546_v19, %v9351_v8 }
  0x7d   : > { %8546 = vmatprep.mubr.msk.bf16.mxu0 %vm9253_vm0, %v11106_v2  ;;  %v2554_v28 = vrot.slane %v2544_v17, %v9351_v8  ;;  %v2561_v30 = vrot.slane %v8037_v18, %v9351_v8  ;;  %v2575_v32 = vrot.slane %v8038_v20, %v9351_v8  ;;  %v5009_v62 = vrot.slane %v11106_v2, 1 }
  0x7e   : > { %v2430_v35 = vcombine.low %v2421_v25, %v2428_v26  ;;  %v1617_v24 = vrot.slane %v1603_v13, %v9351_v8  ;;  %v1627_v25 = vcombine.high %v8019_v14, %v8019_v14  ;;  %v1634_v26 = vrot.slane %v8019_v14, %v9351_v8 }
  0x7f   : > { %v2577_v39 = vcombine.low %v2568_v31, %v2575_v32  ;;  %v9690_v0 = vpack.c.bf16 %v5009_v62, %v5009_v62  ;;  %v3147_v9 = vunpack.c.l.s4 %v9255_v7 }
  0x80   : > { %v2444_v47 = vrot.slane %v2430_v35, %v9351_v8  ;;  %v1619_v35 = vcombine.high %v1617_v24, %v1617_v24  ;;  %v1641_v36 = vrot.slane %v1627_v25, %v9351_v8  ;;  %v1642_v37 = vcombine.high %v1634_v26, %v1634_v26 }
  0x81   : > { %11145 = vst [vmem:[#allocation2_spill] sm:$0xff] %v9690_v0 }
  0x82   : > { %v2445_v58 = vcombine.low %v2437_v45, %v2444_v47  ;;  %v2595_v43 = vcombine.low %v1619_v35, %v1634_v26  ;;  %v2596_v44 = vcombine.low %v1641_v36, %v1642_v37  ;;  %v2591_v47 = vrot.slane %v2577_v39, %v9351_v8 }
  0x83   : > { %v1643_v57 = vcombine.high %v1641_v36, %v1641_v36 }
  0x84   : > { %8547 = vmatmul.mubr.msk.bf16.gmra.mrb[48].mxu0 %vm2669_vm1, %v2298_v49  ;;  %v1519_v49 = vcombine.high %v1517_v38, %v1517_v38  ;;  %v2576_v38 = vcombine.low %v2554_v28, %v2561_v30 }
  0x85   : > { %8550 = vmatprep.mubr.msk.bf16.mxu0 %vm9253_vm0, %v11106_v2 }
  0x86   : > { %v2498_v60 = vcombine.low %v1519_v49, %v1533_v50  ;;  %v2584_v45 = vrot.slane %v2576_v38, %v9351_v8  ;;  %v2617_v49 = vrot.slane %v2595_v43, %v9351_v8  ;;  %v2624_v50 = vrot.slane %v2596_v44, %v9351_v8 }
  0x88   : > { %v2592_v51 = vcombine.low %v2584_v45, %v2591_v47  ;;  %v2626_v53 = vcombine.low %v2617_v49, %v2624_v50 }
  0x8a   : > { %v2640_v56 = vrot.slane %v2626_v53, %v9351_v8 }
  0x8c   : > { %8551 = vmatmul.mubr.msk.bf16.gmra.mrb[52].mxu0 %vm2669_vm1, %v2347_v12  ;;  %v2526_v12 = vrot.slane %v2498_v60, %v9351_v8 }
  0x8d   : > { %8554 = vmatprep.mubr.msk.bf16.mxu0 %vm9253_vm0, %v11106_v2 }
  0x8e   : > { %v2528_v23 = vcombine.low %v2519_v11, %v2526_v12  ;;  %v9703_v12 = vld [vmem:[%s11097_s3] ss:$0 sm:$0xff] }
  0x90   : > { %v2542_v34 = vrot.slane %v2528_v23, %v9351_v8 }
  0x92   : > { %v2543_v41 = vcombine.low %v2535_v27, %v2542_v34 }
  0x94   : > { %8555 = vmatmul.mubr.msk.bf16.gmra.mrb[56].mxu0 %vm2669_vm1, %v2396_v33  ;;  %v1618_v33 = vcombine.high %v1610_v22, %v1610_v22  ;;  %v8096_v22 = vld [vmem:[%s11098_s4 + $0x8] sm:$0xf] }
  0x95   : > { %8558 = vmatprep.mubr.msk.bf16.mxu0 %vm9253_vm0, %v11106_v2  ;;  %9183 = vmatprep.subr.msk.bf16.mxu1 %vm5188_vm2, %v8096_v22  ;;  %v9718_v26 = vsel %vm5188_vm2, %v8096_v22, 0 }
  0x96   : > { %v2594_v42 = vcombine.low %v1617_v24, %v1618_v33  ;;  %8923 = vmatpush3.bf16.msra.mxu1 %v9718_v26 }
  0x98   : > { %v2610_v48 = vrot.slane %v2594_v42, %v9351_v8 }
  0x9a   : > { %v2625_v52 = vcombine.low %v2603_v46, %v2610_v48  ;;  %v9731_v48 = vadd.s32 16, %v9345_v6 }
  0x9c   : > { %8559 = vmatmul.mubr.msk.bf16.gmra.mrb[60].mxu0 %vm2669_vm1, %v2445_v58  ;;  %v2633_v55 = vrot.slane %v2625_v52, %v9351_v8  ;;  %v1657_v58 = vrot.slane %v8020_v54, %v9351_v8  ;;  %vm3934_vm4 = vcmp.le.s32.totalorder %v9731_v48, 16 }
  0x9d   : > { %8562 = vmatprep.mubr.msk.bf16.mxu0 %vm9253_vm0, %v11106_v2 }
  0x9e   : > { %v2641_v59 = vcombine.low %v2633_v55, %v2640_v56  ;;  %v2642_v60 = vcombine.low %v1643_v57, %v1657_v58 }
  0xa0   : > { %v2649_v61 = vrot.slane %v2642_v60, %v9351_v8 }
  0xa2   : > { %v2656_v63 = vrot.slane %v2649_v61, %v9351_v8  ;;  %v3148_v8 = vunpack.c.0.s8 %v3147_v9 }
  0xa4   : > { %8563 = vmatmul.mubr.msk.bf16.gmra.mrb[64].mxu0 %vm2669_vm1, %v2494_v15  ;;  %v9708_v17 = vsub.s32 %v3148_v8, %v9345_v6 }
  0xa5   : > { %8566 = vmatprep.mubr.msk.bf16.mxu0 %vm9253_vm0, %v11106_v2 }
  0xac   : > { %8567 = vmatmul.mubr.msk.bf16.gmra.mrb[68].mxu0 %vm2669_vm1, %v2543_v41 }
  0xad   : > { %8570 = vmatprep.mubr.msk.bf16.mxu0 %vm9253_vm0, %v11106_v2 }
  0xb4   : > { %8571 = vmatmul.mubr.msk.bf16.gmra.mrb[72].mxu0 %vm2669_vm1, %v2592_v51 }
  0xb5   : > { %8574 = vmatprep.mubr.msk.bf16.mxu0 %vm9253_vm0, %v11106_v2 }
  0xbc   : > { %8575 = vmatmul.mubr.msk.bf16.gmra.mrb[76].mxu0 %vm2669_vm1, %v2641_v59 }
  0xbd   : > { %8578 = vmatprep.mubr.msk.bf16.mxu0 %vm9253_vm0, %v11106_v2 }
  0xc4   : > { %8579 = vmatmul.mubr.msk.bf16.gmra.mrb[80].mxu0 %vm2669_vm1, %v2656_v63 }
  0xc5   : > { %8584 = vmatprep.mubr.msk.bf16.mxu0 %vm5139_vm3, %v9690_v0 }
  0xf7   : > { %v2767_v1 = vpop.f32.mrb[0].mxu0 }
  0xf8   : > { %v8500_v3 = vpop.f32.mrb[1].mxu0 }
  0xf9   : > { %v2770_v4 = vpop.f32.mrb[2].mxu0 }
  0xfa   : > { %v8501_v5 = vpop.f32.mrb[3].mxu0 }
  0xff   : > { %v2775_v11 = vpop.f32.mrb[4].mxu0 }
 0x100   : > { %v2942_v13 = vmul.f32 %v9698_v10, %v2775_v11  ;;  %v8504_v14 = vpop.f32.mrb[5].mxu0 }
 0x101   : > { %v2778_v15 = vpop.f32.mrb[6].mxu0 }
 0x102   : > { %v2990_v16 = vadd.f32 %v9703_v12, %v2942_v13  ;;  %v2943_v18 = vmul.f32 %v9698_v10, %v2778_v15  ;;  %v8505_v19 = vpop.f32.mrb[7].mxu0 }
 0x104   : > { %v3031_v20 = vmax.f32 %v2990_v16, 0.0  ;;  %v2991_v21 = vadd.f32 %v9703_v12, %v2943_v18 }
 0x106   : > { %v3145_v23 = vcombine.high %v3031_v20, %v3031_v20  ;;  %v3152_v24 = vrot.slane %v3031_v20, %v9708_v17  ;;  %v3032_v25 = vmax.f32 %v2991_v21, 0.0 }
 0x107   : > { %v2783_v27 = vpop.f32.mrb[8].mxu0 }
 0x108   : > { %v3159_v28 = vrot.slane %v3145_v23, %v9708_v17  ;;  %v3160_v29 = vcombine.high %v3152_v24, %v3152_v24  ;;  %v3162_v30 = vcombine.high %v3032_v25, %v3032_v25  ;;  %v3169_v31 = vrot.slane %v3032_v25, %v9708_v17  ;;  %v8508_v32 = vpop.f32.mrb[9].mxu0 }
 0x109   : > { %v2944_v33 = vmul.f32 %v9698_v10, %v2783_v27  ;;  %v2786_v34 = vpop.f32.mrb[10].mxu0 }
 0x10a   : > { %v4138_v35 = vcombine.low %v3160_v29, %v3159_v28  ;;  %v3161_v36 = vcombine.high %v3159_v28, %v3159_v28  ;;  %v3176_v37 = vrot.slane %v3162_v30, %v9708_v17  ;;  %v3177_v38 = vcombine.high %v3169_v31, %v3169_v31  ;;  %v8509_v39 = vpop.f32.mrb[11].mxu0 }
 0x10b   : > { %v2992_v40 = vadd.f32 %v9703_v12, %v2944_v33  ;;  %v2945_v41 = vmul.f32 %v9698_v10, %v2786_v34 }
 0x10c   : > { %v4139_v42 = vcombine.low %v3161_v36, %v3169_v31  ;;  %v4146_v45 = vrot.slane %v4138_v35, %v9708_v17  ;;  %v4155_v47 = vcombine.low %v3177_v38, %v3176_v37  ;;  %v3178_v49 = vcombine.high %v3176_v37, %v3176_v37 }
 0x10d   : > { %v3033_v43 = vmax.f32 %v2992_v40, 0.0  ;;  %v2993_v44 = vadd.f32 %v9703_v12, %v2945_v41 }
 0x10e   : > { %v4153_v46 = vrot.slane %v4139_v42, %v9708_v17  ;;  %v4163_v4 = vrot.slane %v4155_v47, %v9708_v17 }
 0x10f   : > { %v3179_v50 = vcombine.high %v3033_v43, %v3033_v43  ;;  %v3186_v51 = vrot.slane %v3033_v43, %v9708_v17  ;;  %v3034_v52 = vmax.f32 %v2993_v44, 0.0  ;;  %v2791_v53 = vpop.f32.mrb[12].mxu0 }
 0x110   : > { %v4154_v54 = vcombine.low %v4146_v45, %v4153_v46  ;;  %v2946_v55 = vmul.f32 %v9698_v10, %v2791_v53  ;;  %v8512_v56 = vpop.f32.mrb[13].mxu0 }
 0x111   : > { %v3193_v57 = vrot.slane %v3179_v50, %v9708_v17  ;;  %v3194_v58 = vcombine.high %v3186_v51, %v3186_v51  ;;  %v4156_v59 = vcombine.low %v3178_v49, %v3186_v51  ;;  %v3196_v60 = vcombine.high %v3034_v52, %v3034_v52  ;;  %v2794_v61 = vpop.f32.mrb[14].mxu0 }
 0x112   : > { %v3203_v62 = vrot.slane %v3034_v52, %v9708_v17  ;;  %v2994_v63 = vadd.f32 %v9703_v12, %v2946_v55  ;;  %v2947_v1 = vmul.f32 %v9698_v10, %v2794_v61  ;;  %v8513_v3 = vpop.f32.mrb[15].mxu0  ;;  %v9755_v24 = vsel %vm3875_vm5, %v4154_v54, 0.0 }
 0x113   : > { %v3195_v5 = vcombine.high %v3193_v57, %v3193_v57  ;;  %v4170_v7 = vrot.slane %v4156_v59, %v9708_v17  ;;  %v4178_v9 = vrot.slane %v3194_v58, %v9708_v17  ;;  %v3210_v8 = vrot.slane %v3196_v60, %v9708_v17  ;;  %v8113_v60 = vld [vmem:[%s11098_s4 + $0xc] sm:$0xf] }
 0x114   : > { %v3211_v11 = vcombine.high %v3203_v62, %v3203_v62  ;;  %v3035_v13 = vmax.f32 %v2994_v63, 0.0  ;;  %v2995_v16 = vadd.f32 %v9703_v12, %v2947_v1  ;;  %v5014_v42 = vrot.slane %v9755_v24, 1  ;;  %9184 = vmatprep.subr.msk.bf16.mxu1 %vm5188_vm2, %v8113_v60 }
 0x115   : > { %v9745_v14 = vcombine.low %v4163_v4, %v4170_v7  ;;  %v4179_v15 = vcombine.low %v3193_v57, %v3195_v5  ;;  %v9750_v18 = vsel %vm3934_vm4, %v4178_v9, 0.0  ;;  %v3212_v19 = vcombine.high %v3210_v8, %v3210_v8 }
 0x116   : > { %v4180_v20 = vcombine.low %v3203_v62, %v3211_v11  ;;  %v3213_v21 = vcombine.high %v3035_v13, %v3035_v13  ;;  %v3220_v28 = vrot.slane %v3035_v13, %v9708_v17  ;;  %v5017_v30 = vrot.slane %v9750_v18, 1 }
 0x117   : > { %v4187_v22 = vrot.slane %v4179_v15, %v9708_v17  ;;  %v2799_v23 = vpop.f32.mrb[16].mxu0  ;;  %v5015_v25 = vrot.slane %v9745_v14, 1  ;;  %v3036_v32 = vmax.f32 %v2995_v16, 0.0  ;;  %v4196_v36 = vcombine.low %v3210_v8, %v3212_v19 }
 0x118   : > { %v4194_v27 = vrot.slane %v4180_v20, %v9708_v17  ;;  %v8516_v29 = vpop.f32.mrb[17].mxu0  ;;  %v3227_v31 = vrot.slane %v3213_v21, %v9708_v17  ;;  %v2948_v33 = vmul.f32 %v9698_v10, %v2799_v23  ;;  %v3228_v37 = vcombine.high %v3220_v28, %v3220_v28 }
 0x119   : > { %v2802_v34 = vpop.f32.mrb[18].mxu0  ;;  %v3230_v40 = vcombine.high %v3036_v32, %v3036_v32  ;;  %v3237_v41 = vrot.slane %v3036_v32, %v9708_v17  ;;  %v5018_v46 = vsel %vm5008_vm6, %v5015_v25, %v5017_v30  ;;  %v4204_v51 = vrot.slane %v4196_v36, %v9708_v17 }
 0x11a   : > { %v4195_v35 = vcombine.low %v4187_v22, %v4194_v27  ;;  %v8517_v38 = vpop.f32.mrb[19].mxu0  ;;  %v3229_v39 = vcombine.high %v3227_v31, %v3227_v31  ;;  %v4197_v43 = vcombine.low %v3220_v28, %v3228_v37  ;;  %v2996_v44 = vadd.f32 %v9703_v12, %v2948_v33 }
 0x11b   : > { %v2949_v45 = vmul.f32 %v9698_v10, %v2802_v34  ;;  %v3244_v47 = vrot.slane %v3230_v40, %v9708_v17  ;;  %v3245_v49 = vcombine.high %v3237_v41, %v3237_v41  ;;  %v4219_v53 = vrot.slane %v3227_v31, %v9708_v17 }
 0x11c   : > { %v4220_v50 = vcombine.low %v3229_v39, %v3237_v41  ;;  %v4211_v52 = vrot.slane %v4197_v43, %v9708_v17  ;;  %v3037_v54 = vmax.f32 %v2996_v44, 0.0  ;;  %v5016_v1 = vsel %vm5008_vm6, %v5014_v42, %v5015_v25  ;;  %v4959_v42 = vld [vmem:[%s11098_s4] sm:$0xf] }
 0x11d   : > { %v4221_v55 = vcombine.low %v3245_v49, %v3244_v47  ;;  %v3246_v57 = vcombine.high %v3244_v47, %v3244_v47  ;;  %v2997_v58 = vadd.f32 %v9703_v12, %v2949_v45  ;;  %v9783_v7 = vpack.c.bf16 %v5018_v46, %v5016_v1  ;;  %9181 = vmatprep.subr.msk.bf16.mxu0 %vm5188_vm2, %v4959_v42 }
 0x11e   : > { %v4228_v56 = vrot.slane %v4220_v50, %v9708_v17  ;;  %v9777_v61 = vcombine.low %v4204_v51, %v4211_v52  ;;  %v3247_v62 = vcombine.high %v3037_v54, %v3037_v54  ;;  %v3254_v63 = vrot.slane %v3037_v54, %v9708_v17 }
 0x11f   : > { %v2807_v59 = vpop.f32.mrb[20].mxu0  ;;  %v4235_v4 = vrot.slane %v4221_v55, %v9708_v17  ;;  %v3038_v5 = vmax.f32 %v2997_v58, 0.0  ;;  %11146 = vst [vmem:[#allocation3_spill] sm:$0xff] %v9783_v7  ;;  %v9788_v11 = vsel %vm3934_vm4, %v4219_v53, 0.0  ;;  %8585 = vmatmul.mubr.msk.bf16.vlgmr.msra.gmra.mrb[84].mxu0 %vm5139_vm3, %v9783_v7  ;;  %v9798_v29 = vsel %vm3875_vm5, %v4195_v35, 0.0 }
 0x120   : > { %v8520_v3 = vpop.f32.mrb[21].mxu0  ;;  %v2950_v9 = vmul.f32 %v9698_v10, %v2807_v59  ;;  %11147 = vst [vmem:[#allocation4_spill] sm:$0xff] %v9788_v11  ;;  %v3261_v13 = vrot.slane %v3247_v62, %v9708_v17  ;;  %v3262_v15 = vcombine.high %v3254_v63, %v3254_v63  ;;  %v4237_v16 = vcombine.low %v3246_v57, %v3254_v63 }
 0x121   : > { %v2810_v8 = vpop.f32.mrb[22].mxu0  ;;  %v4236_v20 = vcombine.low %v4228_v56, %v4235_v4  ;;  %v3264_v21 = vcombine.high %v3038_v5, %v3038_v5  ;;  %v3271_v22 = vrot.slane %v3038_v5, %v9708_v17  ;;  %v5022_v33 = vrot.slane %v9788_v11, 1 }
 0x122   : > { %v8521_v19 = vpop.f32.mrb[23].mxu0  ;;  %v2998_v23 = vadd.f32 %v9703_v12, %v2950_v9  ;;  %v3263_v25 = vcombine.high %v3261_v13, %v3261_v13  ;;  %v4238_v27 = vcombine.low %v3262_v15, %v3261_v13  ;;  %v2951_v28 = vmul.f32 %v9698_v10, %v2810_v8 }
 0x123   : > { %v3278_v30 = vrot.slane %v3264_v21, %v9708_v17  ;;  %v3279_v31 = vcombine.high %v3271_v22, %v3271_v22  ;;  %v4245_v34 = vrot.slane %v4237_v16, %v9708_v17  ;;  %v5019_v45 = vrot.slane %v9798_v29, 1 }
 0x124   : > { %v3039_v32 = vmax.f32 %v2998_v23, 0.0  ;;  %v4252_v36 = vrot.slane %v4238_v27, %v9708_v17  ;;  %v2999_v37 = vadd.f32 %v9703_v12, %v2951_v28  ;;  %v4260_v38 = vrot.slane %v3263_v25, %v9708_v17 }
 0x125   : > { %v3280_v39 = vcombine.high %v3278_v30, %v3278_v30  ;;  %v5020_v46 = vrot.slane %v9777_v61, 1  ;;  %v4261_v49 = vcombine.low %v3271_v22, %v3279_v31  ;;  %v9831_v15 = vsel %vm3875_vm5, %v4236_v20, 0.0 }
 0x126   : > { %v3281_v40 = vcombine.high %v3039_v32, %v3039_v32  ;;  %v3288_v41 = vrot.slane %v3039_v32, %v9708_v17  ;;  %v9810_v43 = vcombine.low %v4245_v34, %v4252_v36  ;;  %v3040_v44 = vmax.f32 %v2999_v37, 0.0 }
 0x127   : > { %v2815_v35 = vpop.f32.mrb[24].mxu0  ;;  %v4262_v50 = vcombine.low %v3278_v30, %v3280_v39  ;;  %v5021_v56 = vsel %vm5008_vm6, %v5019_v45, %v5020_v46  ;;  %v5023_v57 = vsel %vm5008_vm6, %v5020_v46, %v5022_v33  ;;  %v4269_v9 = vrot.slane %v4261_v49, %v9708_v17 }
 0x128   : > { %v8524_v47 = vpop.f32.mrb[25].mxu0  ;;  %v3295_v51 = vrot.slane %v3281_v40, %v9708_v17  ;;  %v3296_v52 = vcombine.high %v3288_v41, %v3288_v41  ;;  %v3298_v54 = vcombine.high %v3040_v44, %v3040_v44  ;;  %v3305_v55 = vrot.slane %v3040_v44, %v9708_v17 }
 0x129   : > { %v2818_v53 = vpop.f32.mrb[26].mxu0  ;;  %v4276_v59 = vrot.slane %v4262_v50, %v9708_v17  ;;  %v9820_v63 = vpack.c.bf16 %v5023_v57, %v5021_v56  ;;  %v2952_v5 = vmul.f32 %v9698_v10, %v2815_v35  ;;  %v9835_v16 = vsel %vm3934_vm4, %v4260_v38, 0.0 }
 0x12a   : > { %v8525_v58 = vpop.f32.mrb[27].mxu0  ;;  %v3297_v60 = vcombine.high %v3295_v51, %v3295_v51  ;;  %v4278_v62 = vcombine.low %v3288_v41, %v3296_v52  ;;  %v3312_v1 = vrot.slane %v3298_v54, %v9708_v17  ;;  %v3313_v3 = vcombine.high %v3305_v55, %v3305_v55  ;;  %11149 = vst [vmem:[#allocation6_spill] sm:$0xff] %v9835_v16 }
 0x12b   : > { %11148 = vst [vmem:[#allocation5_spill] sm:$0xff] %v9820_v63  ;;  %v4301_v4 = vrot.slane %v3305_v55, %v9708_v17  ;;  %8588 = vmatprep.mubr.msk.bf16.mxu0 %vm5139_vm3, %v9820_v63  ;;  %v2953_v13 = vmul.f32 %v9698_v10, %v2818_v53  ;;  %v3000_v19 = vadd.f32 %v9703_v12, %v2952_v5  ;;  %v5024_v33 = vrot.slane %v9831_v15, 1 }
 0x12c   : > { %v4279_v8 = vcombine.low %v3295_v51, %v3297_v60  ;;  %v4277_v21 = vcombine.low %v4269_v9, %v4276_v59  ;;  %v4286_v22 = vrot.slane %v4278_v62, %v9708_v17  ;;  %v4302_v23 = vcombine.low %v3313_v3, %v3312_v1 }
 0x12d   : > { %v9841_v25 = vsel %vm3934_vm4, %v4301_v4, 0.0  ;;  %v3041_v30 = vmax.f32 %v3000_v19, 0.0  ;;  %v3314_v20 = vcombine.high %v3312_v1, %v3312_v1  ;;  %v3001_v31 = vadd.f32 %v9703_v12, %v2953_v13 }
 0x12e   : > { %11150 = vst [vmem:[#allocation7_spill] sm:$0xff] %v9841_v25  ;;  %v4293_v28 = vrot.slane %v4279_v8, %v9708_v17  ;;  %v5025_v34 = vrot.slane %v9810_v43, 1  ;;  %v5027_v36 = vrot.slane %v9835_v16, 1  ;;  %v4310_v44 = vrot.slane %v4302_v23, %v9708_v17 }
 0x12f   : > { %v2823_v27 = vpop.f32.mrb[28].mxu0  ;;  %v3315_v39 = vcombine.high %v3041_v30, %v3041_v30  ;;  %v3322_v40 = vrot.slane %v3041_v30, %v9708_v17  ;;  %v3042_v41 = vmax.f32 %v3001_v31, 0.0 }
 0x130   : > { %v8528_v32 = vpop.f32.mrb[29].mxu0  ;;  %v2954_v37 = vmul.f32 %v9698_v10, %v2823_v27  ;;  %v5026_v45 = vsel %vm5008_vm6, %v5024_v33, %v5025_v34  ;;  %v5028_v46 = vsel %vm5008_vm6, %v5025_v34, %v5027_v36  ;;  %v9865_v9 = vcombine.low %v4286_v22, %v4293_v28 }
 0x131   : > { %v2826_v38 = vpop.f32.mrb[30].mxu0  ;;  %v3329_v49 = vrot.slane %v3315_v39, %v9708_v17  ;;  %v3330_v50 = vcombine.high %v3322_v40, %v3322_v40  ;;  %v4303_v51 = vcombine.low %v3314_v20, %v3322_v40  ;;  %v3332_v52 = vcombine.high %v3042_v41, %v3042_v41 }
 0x132   : > { %v2955_v35 = vmul.f32 %v9698_v10, %v2826_v38  ;;  %v8529_v42 = vpop.f32.mrb[31].mxu0  ;;  %v3002_v47 = vadd.f32 %v9703_v12, %v2954_v37  ;;  %v3339_v53 = vrot.slane %v3042_v41, %v9708_v17  ;;  %v9857_v54 = vpack.c.bf16 %v5028_v46, %v5026_v45 }
 0x133   : > { %v4317_v57 = vrot.slane %v4303_v51, %v9708_v17  ;;  %v4319_v58 = vcombine.low %v3330_v50, %v3329_v49  ;;  %v3331_v59 = vcombine.high %v3329_v49, %v3329_v49  ;;  %v3346_v60 = vrot.slane %v3332_v52, %v9708_v17 }
 0x134   : > { %11151 = vst [vmem:[#allocation8_spill] sm:$0xff] %v9857_v54  ;;  %v3043_v55 = vmax.f32 %v3002_v47, 0.0  ;;  %v3003_v56 = vadd.f32 %v9703_v12, %v2955_v35  ;;  %v3347_v62 = vcombine.high %v3339_v53, %v3339_v53  ;;  %8589 = vmatmul.mubr.msk.bf16.gmra.mrb[88].mxu0 %vm5139_vm3, %v9857_v54  ;;  %v9874_v28 = vsel %vm3875_vm5, %v4277_v21, 0.0 }
 0x135   : > { %v4318_v8 = vcombine.low %v4310_v44, %v4317_v57  ;;  %v3348_v13 = vcombine.high %v3346_v60, %v3346_v60  ;;  %v4320_v19 = vcombine.low %v3331_v59, %v3339_v53  ;;  %v4327_v33 = vrot.slane %v4319_v58, %v9708_v17 }
 0x136   : > { %v3349_v1 = vcombine.high %v3043_v55, %v3043_v55  ;;  %v3356_v3 = vrot.slane %v3043_v55, %v9708_v17  ;;  %v3044_v4 = vmax.f32 %v3003_v56, 0.0  ;;  %v4342_v27 = vrot.slane %v3347_v62, %v9708_v17 }
 0x137   : > { %v2831_v5 = vpop.f32.mrb[32].mxu0  ;;  %v4334_v34 = vrot.slane %v4320_v19, %v9708_v17  ;;  %v4343_v36 = vcombine.low %v3346_v60, %v3348_v13  ;;  %v5032_v41 = vrot.slane %v9841_v25, 1  ;;  %v5029_v50 = vrot.slane %v9874_v28, 1 }
 0x138   : > { %v8532_v23 = vpop.f32.mrb[33].mxu0  ;;  %v3363_v30 = vrot.slane %v3349_v1, %v9708_v17  ;;  %v3364_v20 = vcombine.high %v3356_v3, %v3356_v3  ;;  %v3366_v31 = vcombine.high %v3044_v4, %v3044_v4  ;;  %v3373_v37 = vrot.slane %v3044_v4, %v9708_v17 }
 0x139   : > { %v2834_v32 = vpop.f32.mrb[34].mxu0  ;;  %v9878_v35 = vcombine.low %v4327_v33, %v4334_v34  ;;  %v4351_v42 = vrot.slane %v4343_v36, %v9708_v17  ;;  %v9883_v44 = vsel %vm3934_vm4, %v4342_v27, 0.0  ;;  %v2956_v49 = vmul.f32 %v9698_v10, %v2831_v5 }
 0x13a   : > { %v8533_v22 = vpop.f32.mrb[35].mxu0  ;;  %v3365_v38 = vcombine.high %v3363_v30, %v3363_v30  ;;  %v4344_v39 = vcombine.low %v3356_v3, %v3364_v20  ;;  %v3380_v40 = vrot.slane %v3366_v31, %v9708_v17  ;;  %11152 = vst [vmem:[#allocation9_spill] sm:$0xff] %v9883_v44  ;;  %v3381_v47 = vcombine.high %v3373_v37, %v3373_v37 }
 0x13b   : > { %v5030_v51 = vrot.slane %v9865_v9, 1  ;;  %v2957_v52 = vmul.f32 %v9698_v10, %v2834_v32  ;;  %v9893_v53 = vsel %vm3875_vm5, %v4318_v8, 0.0  ;;  %v5037_v59 = vrot.slane %v9883_v44, 1 }
 0x13c   : > { %v4358_v45 = vrot.slane %v4344_v39, %v9708_v17  ;;  %v4360_v46 = vcombine.low %v3363_v30, %v3365_v38  ;;  %v4383_v21 = vrot.slane %v3380_v40, %v9708_v17  ;;  %v4361_v57 = vcombine.low %v3373_v37, %v3381_v47 }
 0x13d   : > { %v3004_v60 = vadd.f32 %v9703_v12, %v2956_v49  ;;  %v3382_v62 = vcombine.high %v3380_v40, %v3380_v40  ;;  %v5031_v1 = vsel %vm5008_vm6, %v5029_v50, %v5030_v51  ;;  %v5033_v8 = vsel %vm5008_vm6, %v5030_v51, %v5032_v41 }
 0x13e   : > { %v4359_v55 = vcombine.low %v4351_v42, %v4358_v45  ;;  %v4368_v56 = vrot.slane %v4360_v46, %v9708_v17  ;;  %v4375_v4 = vrot.slane %v4361_v57, %v9708_v17  ;;  %v9902_v5 = vsel %vm3934_vm4, %v4383_v21, 0.0 }
 0x13f   : > { %v2839_v58 = vpop.f32.mrb[36].mxu0  ;;  %11153 = vst [vmem:[#allocation10_spill] sm:$0xff] %v9902_v5  ;;  %v3005_v13 = vadd.f32 %v9703_v12, %v2957_v52  ;;  %v3045_v23 = vmax.f32 %v3004_v60, 0.0  ;;  %v9906_v27 = vpack.c.bf16 %v5033_v8, %v5031_v1  ;;  %v5034_v20 = vrot.slane %v9893_v53, 1 }
 0x140   : > { %v8536_v3 = vpop.f32.mrb[37].mxu0  ;;  %v2958_v30 = vmul.f32 %v9698_v10, %v2839_v58  ;;  %v9910_v32 = vcombine.low %v4368_v56, %v4375_v4  ;;  %v5035_v34 = vrot.slane %v9878_v35, 1  ;;  %v9916_v37 = vsel %vm3875_vm5, %v4359_v55, 0.0 }
 0x141   : > { %v2842_v19 = vpop.f32.mrb[38].mxu0  ;;  %11154 = vst [vmem:[#allocation11_spill] sm:$0xff] %v9906_v27  ;;  %v3046_v33 = vmax.f32 %v3005_v13, 0.0  ;;  %v3383_v22 = vcombine.high %v3045_v23, %v3045_v23  ;;  %v3390_v38 = vrot.slane %v3045_v23, %v9708_v17  ;;  %8592 = vmatprep.mubr.msk.bf16.mxu0 %vm5139_vm3, %v9906_v27 }
 0x142   : > { %v8537_v31 = vpop.f32.mrb[39].mxu0  ;;  %v2959_v36 = vmul.f32 %v9698_v10, %v2842_v19  ;;  %v3006_v39 = vadd.f32 %v9703_v12, %v2958_v30  ;;  %v5036_v42 = vsel %vm5008_vm6, %v5034_v20, %v5035_v34  ;;  %v5038_v45 = vsel %vm5008_vm6, %v5035_v34, %v5037_v59 }
 0x143   : > { %v3400_v40 = vcombine.high %v3046_v33, %v3046_v33  ;;  %v3407_v41 = vrot.slane %v3046_v33, %v9708_v17  ;;  %v3397_v46 = vrot.slane %v3383_v22, %v9708_v17  ;;  %v3398_v47 = vcombine.high %v3390_v38, %v3390_v38 }
 0x144   : > { %v4384_v21 = vcombine.low %v3382_v62, %v3390_v38  ;;  %v3047_v49 = vmax.f32 %v3006_v39, 0.0  ;;  %v9927_v52 = vpack.c.bf16 %v5038_v45, %v5036_v42  ;;  %v3007_v55 = vadd.f32 %v9703_v12, %v2959_v36 }
 0x145   : > { %v3414_v50 = vrot.slane %v3400_v40, %v9708_v17  ;;  %v3415_v51 = vcombine.high %v3407_v41, %v3407_v41  ;;  %v4385_v57 = vcombine.low %v3398_v47, %v3397_v46  ;;  %v3399_v60 = vcombine.high %v3397_v46, %v3397_v46 }
 0x146   : > { %11155 = vst [vmem:[#allocation12_spill] sm:$0xff] %v9927_v52  ;;  %v4392_v58 = vrot.slane %v4384_v21, %v9708_v17  ;;  %v3417_v1 = vcombine.high %v3047_v49, %v3047_v49  ;;  %v3424_v8 = vrot.slane %v3047_v49, %v9708_v17  ;;  %8593 = vmatmul.mubr.msk.bf16.gmra.mrb[92].mxu0 %vm5139_vm3, %v9927_v52  ;;  %v3048_v62 = vmax.f32 %v3007_v55, 0.0 }
 0x147   : > { %v2847_v56 = vpop.f32.mrb[40].mxu0  ;;  %v3416_v59 = vcombine.high %v3414_v50, %v3414_v50  ;;  %v4402_v4 = vcombine.low %v3415_v51, %v3414_v50  ;;  %v4399_v19 = vrot.slane %v4385_v57, %v9708_v17  ;;  %v4401_v23 = vcombine.low %v3399_v60, %v3407_v41 }
 0x148   : > { %v8540_v3 = vpop.f32.mrb[41].mxu0  ;;  %v3431_v30 = vrot.slane %v3417_v1, %v9708_v17  ;;  %v2960_v20 = vmul.f32 %v9698_v10, %v2847_v56  ;;  %v5042_v33 = vrot.slane %v9902_v5, 1  ;;  %v3432_v36 = vcombine.high %v3424_v8, %v3424_v8 }
 0x149   : > { %v2850_v13 = vpop.f32.mrb[42].mxu0  ;;  %v4416_v34 = vrot.slane %v4402_v4, %v9708_v17  ;;  %v3434_v22 = vcombine.high %v3048_v62, %v3048_v62  ;;  %v4400_v38 = vcombine.low %v4392_v58, %v4399_v19  ;;  %v4409_v39 = vrot.slane %v4401_v23, %v9708_v17 }
 0x14a   : > { %v8541_v31 = vpop.f32.mrb[43].mxu0  ;;  %v3433_v40 = vcombine.high %v3431_v30, %v3431_v30  ;;  %v3441_v42 = vrot.slane %v3048_v62, %v9708_v17  ;;  %v4425_v45 = vcombine.low %v3424_v8, %v3432_v36  ;;  %v3008_v46 = vadd.f32 %v9703_v12, %v2960_v20 }
 0x14b   : > { %v3448_v41 = vrot.slane %v3434_v22, %v9708_v17  ;;  %v5039_v47 = vrot.slane %v9916_v37, 1  ;;  %v9944_v21 = vcombine.low %v4409_v39, %v4416_v34  ;;  %v4424_v49 = vrot.slane %v3416_v59, %v9708_v17 }
 0x14c   : > { %v4426_v50 = vcombine.low %v3431_v30, %v3433_v40  ;;  %v3449_v51 = vcombine.high %v3441_v42, %v3441_v42  ;;  %v4433_v55 = vrot.slane %v4425_v45, %v9708_v17  ;;  %v3049_v57 = vmax.f32 %v3008_v46, 0.0 }
 0x14d   : > { %v3450_v56 = vcombine.high %v3448_v41, %v3448_v41  ;;  %v5040_v58 = vrot.slane %v9910_v32, 1  ;;  %v2961_v4 = vmul.f32 %v9698_v10, %v2850_v13  ;;  %v9958_v39 = vsel %vm3934_vm4, %v4424_v49, 0.0 }
 0x14e   : > { %v4440_v1 = vrot.slane %v4426_v50, %v9708_v17  ;;  %v4442_v3 = vcombine.low %v3441_v42, %v3449_v51  ;;  %v3451_v23 = vcombine.high %v3049_v57, %v3049_v57  ;;  %v3458_v59 = vrot.slane %v3049_v57, %v9708_v17  ;;  %11156 = vst [vmem:[#allocation13_spill] sm:$0xff] %v9958_v39 }
 0x14f   : > { %v2855_v60 = vpop.f32.mrb[44].mxu0  ;;  %v4443_v19 = vcombine.low %v3448_v41, %v3450_v56  ;;  %v5041_v30 = vsel %vm5008_vm6, %v5039_v47, %v5040_v58  ;;  %v5043_v34 = vsel %vm5008_vm6, %v5040_v58, %v5042_v33  ;;  %v3009_v36 = vadd.f32 %v9703_v12, %v2961_v4 }
 0x150   : > { %v2962_v8 = vmul.f32 %v9698_v10, %v2855_v60  ;;  %v8544_v62 = vpop.f32.mrb[45].mxu0  ;;  %v4441_v31 = vcombine.low %v4433_v55, %v4440_v1  ;;  %v3465_v13 = vrot.slane %v3451_v23, %v9708_v17  ;;  %v3466_v40 = vcombine.high %v3458_v59, %v3458_v59 }
 0x151   : > { %v2858_v20 = vpop.f32.mrb[46].mxu0  ;;  %v4465_v42 = vrot.slane %v3458_v59, %v9708_v17  ;;  %v9964_v45 = vsel %vm3875_vm5, %v4400_v38, 0.0  ;;  %v9966_v41 = vpack.c.bf16 %v5043_v34, %v5041_v30  ;;  %v3050_v46 = vmax.f32 %v3009_v36, 0.0 }
 0x152   : > { %v8545_v22 = vpop.f32.mrb[47].mxu0  ;;  %v3010_v33 = vadd.f32 %v9703_v12, %v2962_v8  ;;  %v4450_v47 = vrot.slane %v4442_v3, %v9708_v17  ;;  %v4457_v50 = vrot.slane %v4443_v19, %v9708_v17  ;;  %v4466_v49 = vcombine.low %v3466_v40, %v3465_v13 }
 0x153   : > { %11157 = vst [vmem:[#allocation14_spill] sm:$0xff] %v9966_v41  ;;  %v3467_v51 = vcombine.high %v3465_v13, %v3465_v13  ;;  %v9973_v55 = vsel %vm3875_vm5, %v4441_v31, 0.0  ;;  %v9977_v56 = vsel %vm3934_vm4, %v4465_v42, 0.0  ;;  %8596 = vmatprep.mubr.msk.bf16.mxu0 %vm5139_vm3, %v9966_v41  ;;  %v3468_v38 = vcombine.high %v3050_v46, %v3050_v46 }
 0x154   : > { %11158 = vst [vmem:[#allocation15_spill] sm:$0xff] %v9977_v56  ;;  %v3475_v57 = vrot.slane %v3050_v46, %v9708_v17  ;;  %v4474_v58 = vrot.slane %v4466_v49, %v9708_v17  ;;  %v3051_v60 = vmax.f32 %v3010_v33, 0.0  ;;  %v5044_v1 = vrot.slane %v9964_v45, 1 }
 0x155   : > { %v5045_v3 = vrot.slane %v9944_v21, 1  ;;  %v3482_v8 = vrot.slane %v3468_v38, %v9708_v17  ;;  %v5047_v23 = vrot.slane %v9958_v39, 1  ;;  %v2963_v36 = vmul.f32 %v9698_v10, %v2858_v20 }
 0x156   : > { %v3483_v62 = vcombine.high %v3475_v57, %v3475_v57  ;;  %v4467_v19 = vcombine.low %v3467_v51, %v3475_v57  ;;  %v3485_v30 = vcombine.high %v3051_v60, %v3051_v60  ;;  %v3492_v31 = vrot.slane %v3051_v60, %v9708_v17 }
 0x157   : > { %v2863_v4 = vpop.f32.mrb[48].mxu0  ;;  %v5046_v34 = vsel %vm5008_vm6, %v5044_v1, %v5045_v3  ;;  %v3484_v42 = vcombine.high %v3482_v8, %v3482_v8  ;;  %v5048_v46 = vsel %vm5008_vm6, %v5045_v3, %v5047_v23  ;;  %v3011_v57 = vadd.f32 %v9703_v12, %v2963_v36 }
 0x158   : > { %v8548_v59 = vpop.f32.mrb[49].mxu0  ;;  %v4481_v13 = vrot.slane %v4467_v19, %v9708_v17  ;;  %v4483_v40 = vcombine.low %v3483_v62, %v3482_v8  ;;  %v3499_v49 = vrot.slane %v3485_v30, %v9708_v17  ;;  %v3500_v51 = vcombine.high %v3492_v31, %v3492_v31 }
 0x159   : > { %v2866_v22 = vpop.f32.mrb[50].mxu0  ;;  %v9993_v38 = vpack.c.bf16 %v5048_v46, %v5046_v34  ;;  %v9996_v60 = vcombine.low %v4450_v47, %v4457_v50  ;;  %v4484_v59 = vcombine.low %v3484_v42, %v3492_v31  ;;  %v2964_v20 = vmul.f32 %v9698_v10, %v2863_v4 }
 0x15a   : > { %v8549_v33 = vpop.f32.mrb[51].mxu0  ;;  %v4482_v1 = vcombine.low %v4474_v58, %v4481_v13  ;;  %v3501_v2 = vcombine.high %v3499_v49, %v3499_v49  ;;  %v4506_v62 = vrot.slane %v3500_v51, %v9708_v17  ;;  %v3052_v3 = vmax.f32 %v3011_v57, 0.0 }
 0x15b   : > { %11159 = vst [vmem:[#allocation16_spill] sm:$0xff] %v9993_v38  ;;  %8597 = vmatmul.mubr.msk.bf16.gmra.mrb[96].mxu0 %vm5139_vm3, %v9993_v38  ;;  %v2965_v8 = vmul.f32 %v9698_v10, %v2866_v22  ;;  %v5052_v19 = vrot.slane %v9977_v56, 1  ;;  %v4491_v23 = vrot.slane %v4483_v40, %v9708_v17  ;;  %v4498_v47 = vrot.slane %v4484_v59, %v9708_v17 }
 0x15c   : > { %v3012_v50 = vadd.f32 %v9703_v12, %v2964_v20  ;;  %v10009_v58 = vsel %vm3875_vm5, %v4482_v1, 0.0  ;;  %v4507_v4 = vcombine.low %v3499_v49, %v3501_v2  ;;  %v3502_v30 = vcombine.high %v3052_v3, %v3052_v3 }
 0x15d   : > { %v3509_v31 = vrot.slane %v3052_v3, %v9708_v17  ;;  %v10012_v36 = vcombine.low %v4491_v23, %v4498_v47  ;;  %v10016_v22 = vsel %vm3934_vm4, %v4506_v62, 0.0  ;;  %v5049_v40 = vrot.slane %v9973_v55, 1 }
 0x15e   : > { %11160 = vst [vmem:[#allocation17_spill] sm:$0xff] %v10016_v22  ;;  %v3053_v13 = vmax.f32 %v3012_v50, 0.0  ;;  %v4515_v46 = vrot.slane %v4507_v4, %v9708_v17  ;;  %v3516_v33 = vrot.slane %v3502_v30, %v9708_v17  ;;  %v3013_v2 = vadd.f32 %v9703_v12, %v2965_v8 }
 0x15f   : > { %v2871_v34 = vpop.f32.mrb[52].mxu0  ;;  %v3517_v51 = vcombine.high %v3509_v31, %v3509_v31  ;;  %v5050_v59 = vrot.slane %v9996_v60, 1 }
 0x160   : > { %v8552_v42 = vpop.f32.mrb[53].mxu0  ;;  %v3519_v57 = vcombine.high %v3053_v13, %v3053_v13  ;;  %v3526_v1 = vrot.slane %v3053_v13, %v9708_v17  ;;  %v2966_v20 = vmul.f32 %v9698_v10, %v2871_v34  ;;  %v3518_v3 = vcombine.high %v3516_v33, %v3516_v33 }
 0x161   : > { %v2874_v49 = vpop.f32.mrb[54].mxu0  ;;  %v4508_v23 = vcombine.low %v3509_v31, %v3517_v51  ;;  %v3054_v47 = vmax.f32 %v3013_v2, 0.0  ;;  %v5051_v42 = vsel %vm5008_vm6, %v5049_v40, %v5050_v59  ;;  %v5053_v8 = vsel %vm5008_vm6, %v5050_v59, %v5052_v19 }
 0x162   : > { %v8553_v62 = vpop.f32.mrb[55].mxu0  ;;  %v2967_v50 = vmul.f32 %v9698_v10, %v2874_v49  ;;  %v3533_v4 = vrot.slane %v3519_v57, %v9708_v17  ;;  %v3534_v30 = vcombine.high %v3526_v1, %v3526_v1  ;;  %v4524_v13 = vcombine.low %v3516_v33, %v3518_v3 }
 0x163   : > { %v4522_v0 = vrot.slane %v4508_v23, %v9708_v17  ;;  %v3536_v38 = vcombine.high %v3054_v47, %v3054_v47  ;;  %v3543_v41 = vrot.slane %v3054_v47, %v9708_v17  ;;  %v10032_v51 = vpack.c.bf16 %v5053_v8, %v5051_v42 }
 0x164   : > { %v4525_v34 = vcombine.low %v3526_v1, %v3534_v30  ;;  %v4547_v62 = vrot.slane %v3533_v4, %v9708_v17  ;;  %v3535_v31 = vcombine.high %v3533_v4, %v3533_v4  ;;  %v5057_v2 = vrot.slane %v10016_v22, 1 }
 0x165   : > { %11161 = vst [vmem:[#allocation18_spill] sm:$0xff] %v10032_v51  ;;  %v4523_v49 = vcombine.low %v4515_v46, %v4522_v0  ;;  %v3550_v57 = vrot.slane %v3536_v38, %v9708_v17  ;;  %v3551_v40 = vcombine.high %v3543_v41, %v3543_v41  ;;  %v4532_v19 = vrot.slane %v4524_v13, %v9708_v17 }
 0x166   : > { %v4539_v33 = vrot.slane %v4525_v34, %v9708_v17  ;;  %v4548_v59 = vcombine.low %v3535_v31, %v3543_v41  ;;  %8600 = vmatprep.mubr.msk.bf16.mxu0 %vm5139_vm3, %v10032_v51  ;;  %v3014_v1 = vadd.f32 %v9703_v12, %v2966_v20  ;;  %v10047_v0 = vsel %vm3934_vm4, %v4547_v62, 0.0 }
 0x167   : > { %v2879_v56 = vpop.f32.mrb[56].mxu0  ;;  %v10043_v23 = vsel %vm3875_vm5, %v4523_v49, 0.0  ;;  %v4549_v38 = vcombine.low %v3551_v40, %v3550_v57  ;;  %v3552_v46 = vcombine.high %v3550_v57, %v3550_v57  ;;  %v3015_v42 = vadd.f32 %v9703_v12, %v2967_v50 }
 0x168   : > { %v8556_v3 = vpop.f32.mrb[57].mxu0  ;;  %v10049_v4 = vcombine.low %v4532_v19, %v4539_v33  ;;  %v4556_v41 = vrot.slane %v4548_v59, %v9708_v17  ;;  %v3055_v30 = vmax.f32 %v3014_v1, 0.0  ;;  %v5054_v13 = vrot.slane %v10009_v58, 1 }
 0x169   : > { %v2882_v47 = vpop.f32.mrb[58].mxu0  ;;  %v4563_v8 = vrot.slane %v4549_v38, %v9708_v17  ;;  %v5055_v34 = vrot.slane %v10012_v36, 1  ;;  %v2968_v62 = vmul.f32 %v9698_v10, %v2879_v56  ;;  %v3056_v57 = vmax.f32 %v3015_v42, 0.0 }
 0x16a   : > { %v8557_v20 = vpop.f32.mrb[59].mxu0  ;;  %v3553_v31 = vcombine.high %v3055_v30, %v3055_v30  ;;  %v3560_v49 = vrot.slane %v3055_v30, %v9708_v17  ;;  %v2969_v40 = vmul.f32 %v9698_v10, %v2882_v47  ;;  %v5062_v56 = vrot.slane %v10047_v0, 1 }
 0x16b   : > { %v4564_v19 = vcombine.low %v4556_v41, %v4563_v8  ;;  %v5056_v33 = vsel %vm5008_vm6, %v5054_v13, %v5055_v34  ;;  %v5058_v50 = vsel %vm5008_vm6, %v5055_v34, %v5057_v2  ;;  %v3016_v59 = vadd.f32 %v9703_v12, %v2968_v62 }
 0x16c   : > { %v3567_v1 = vrot.slane %v3553_v31, %v9708_v17  ;;  %v3568_v3 = vcombine.high %v3560_v49, %v3560_v49  ;;  %v4565_v38 = vcombine.low %v3552_v46, %v3560_v49  ;;  %v3570_v20 = vcombine.high %v3056_v57, %v3056_v57 }
 0x16d   : > { %v3577_v51 = vrot.slane %v3056_v57, %v9708_v17  ;;  %v10065_v30 = vpack.c.bf16 %v5058_v50, %v5056_v33  ;;  %v3057_v42 = vmax.f32 %v3016_v59, 0.0  ;;  %v10069_v47 = vsel %vm3875_vm5, %v4564_v19, 0.0 }
 0x16e   : > { %v3569_v2 = vcombine.high %v3567_v1, %v3567_v1  ;;  %v4566_v41 = vcombine.low %v3568_v3, %v3567_v1  ;;  %v3584_v8 = vrot.slane %v3570_v20, %v9708_v17  ;;  %v3017_v31 = vadd.f32 %v9703_v12, %v2969_v40 }
 0x16f   : > { %11162 = vst [vmem:[#allocation19_spill] sm:$0xff] %v10065_v30  ;;  %v2887_v10 = vpop.f32.mrb[60].mxu0  ;;  %v3585_v34 = vcombine.high %v3577_v51, %v3577_v51  ;;  %8601 = vmatmul.mubr.msk.bf16.gmra.mrb[100].mxu0 %vm5139_vm3, %v10065_v30  ;;  %v3587_v46 = vcombine.high %v3057_v42, %v3057_v42  ;;  %v3594_v62 = vrot.slane %v3057_v42, %v9708_v17  ;;  %v5059_v12 = vrot.slane %v10043_v23, 1 }
 0x170   : > { %v8560_v13 = vpop.f32.mrb[61].mxu0  ;;  %v4573_v57 = vrot.slane %v4565_v38, %v9708_v17  ;;  %v4580_v19 = vrot.slane %v4566_v41, %v9708_v17  ;;  %v4588_v33 = vrot.slane %v3569_v2, %v9708_v17  ;;  %v3586_v50 = vcombine.high %v3584_v8, %v3584_v8 }
 0x171   : > { %v2890_v49 = vpop.f32.mrb[62].mxu0  ;;  %v4589_v1 = vcombine.low %v3577_v51, %v3585_v34  ;;  %v3601_v3 = vrot.slane %v3587_v46, %v9708_v17  ;;  %v3602_v20 = vcombine.high %v3594_v62, %v3594_v62  ;;  %v3058_v13 = vmax.f32 %v3017_v31, 0.0 }
 0x172   : > { %v8561_v59 = vpop.f32.mrb[63].mxu0  ;;  %v10080_v30 = vcombine.low %v4573_v57, %v4580_v19  ;;  %v4590_v42 = vcombine.low %v3584_v8, %v3586_v50  ;;  %v5060_v40 = vrot.slane %v10049_v4, 1  ;;  %v4924_v8 = vsel %vm3934_vm4, %v4588_v33, 0.0 }
 0x173   : > { %v4597_v38 = vrot.slane %v4589_v1, %v9708_v17  ;;  %v3603_v22 = vcombine.high %v3601_v3, %v3601_v3  ;;  %v4606_v41 = vcombine.low %v3594_v62, %v3602_v20  ;;  %v3604_v39 = vcombine.high %v3058_v13, %v3058_v13 }
 0x174   : > { %v4604_v2 = vrot.slane %v4590_v42, %v9708_v17  ;;  %v3611_v51 = vrot.slane %v3058_v13, %v9708_v17  ;;  %v5061_v34 = vsel %vm5008_vm6, %v5059_v12, %v5060_v40  ;;  %v5063_v46 = vsel %vm5008_vm6, %v5060_v40, %v5062_v56 }
 0x175   : > { %v4607_v31 = vcombine.low %v3601_v3, %v3603_v22  ;;  %v3618_v57 = vrot.slane %v3604_v39, %v9708_v17  ;;  %v10092_v19 = vpack.c.bf16 %v5063_v46, %v5061_v34  ;;  %v4614_v62 = vrot.slane %v4606_v41, %v9708_v17  ;;  %v10104_v39 = vld [vmem:[%s11096_s2] ss:$0 sm:$0xff] }
 0x176   : > { %v4605_v59 = vcombine.low %v4597_v38, %v4604_v2  ;;  %v3619_v1 = vcombine.high %v3611_v51, %v3611_v51  ;;  %v4629_v20 = vrot.slane %v3611_v51, %v9708_v17  ;;  %v5616_v56 = vrot.slane %v10043_v23, 2 }
 0x177   : > { %11163 = vst [vmem:[#allocation20_spill] sm:$0xff] %v10092_v19  ;;  %v2895_v50 = vpop.f32.mrb[64].mxu0  ;;  %v4621_v42 = vrot.slane %v4607_v31, %v9708_v17  ;;  %8604 = vmatprep.mubr.msk.bf16.mxu0 %vm5139_vm3, %v10092_v19  ;;  %v5617_v22 = vrot.slane %v10049_v4, 2  ;;  %v2970_v33 = vmul.f32 %v10104_v39, %v2887_v10  ;;  %v5619_v41 = vrot.slane %v10047_v0, 2 }
 0x178   : > { %v8564_v13 = vpop.f32.mrb[65].mxu0  ;;  %v10109_v12 = vsel %vm3875_vm5, %v4605_v59, 0.0  ;;  %v4630_v40 = vcombine.low %v3619_v1, %v3618_v57  ;;  %v10113_v38 = vsel %vm3934_vm4, %v4629_v20, 0.0  ;;  %v3620_v10 = vcombine.high %v3618_v57, %v3618_v57  ;;  %v10125_v1 = vld [vmem:[%s11097_s3] ss:$0 sm:$0xff] }
 0x179   : > { %v2898_v3 = vpop.f32.mrb[66].mxu0  ;;  %v10116_v51 = vcombine.low %v4614_v62, %v4621_v42  ;;  %v5618_v46 = vsel %vm5565_vm7, %v5616_v56, %v5617_v22  ;;  %v5620_v59 = vsel %vm5565_vm7, %v5617_v22, %v5619_v41  ;;  %v3018_v20 = vadd.f32 %v10125_v1, %v2970_v33 }
 0x17a   : > { %v8565_v2 = vpop.f32.mrb[67].mxu0  ;;  %v4638_v31 = vrot.slane %v4630_v40, %v9708_v17  ;;  %v2971_v0 = vmul.f32 %v10104_v39, %v2890_v49  ;;  %v10129_v62 = vpack.c.bf16 %v5620_v59, %v5618_v46  ;;  %v5064_v13 = vrot.slane %v10069_v47, 1 }
 0x17b   : > { %v5065_v42 = vrot.slane %v10080_v30, 1  ;;  %v5067_v57 = vrot.slane %v4924_v8, 1  ;;  %v3059_v56 = vmax.f32 %v3018_v20, 0.0  ;;  %v5621_v22 = vrot.slane %v10069_v47, 2 }
 0x17c   : > { %11164 = vst [vmem:[#allocation21_spill] sm:$0xff] %v10129_v62  ;;  %v3019_v40 = vadd.f32 %v10125_v1, %v2971_v0  ;;  %v5622_v41 = vrot.slane %v10080_v30, 2  ;;  %8672 = vmatprep.mubr.msk.bf16.mxu1 %vm5139_vm3, %v10129_v62  ;;  %v5624_v2 = vrot.slane %v4924_v8, 2  ;;  %v2972_v46 = vmul.f32 %v10104_v39, %v2895_v50 }
 0x17d   : > { %v5066_v33 = vsel %vm5008_vm6, %v5064_v13, %v5065_v42  ;;  %v5068_v49 = vsel %vm5008_vm6, %v5065_v42, %v5067_v57  ;;  %v3621_v34 = vcombine.high %v3059_v56, %v3059_v56  ;;  %v3628_v20 = vrot.slane %v3059_v56, %v9708_v17 }
 0x17e   : > { %v3060_v19 = vmax.f32 %v3019_v40, 0.0  ;;  %v10142_v0 = vpack.c.bf16 %v5068_v49, %v5066_v33  ;;  %v5623_v52 = vsel %vm5565_vm7, %v5621_v22, %v5622_v41  ;;  %v5625_v44 = vsel %vm5565_vm7, %v5622_v41, %v5624_v2 }
 0x17f   : > { %v2903_v59 = vpop.f32.mrb[68].mxu0  ;;  %v3020_v62 = vadd.f32 %v10125_v1, %v2972_v46  ;;  %v2973_v13 = vmul.f32 %v10104_v39, %v2898_v3  ;;  %v3635_v8 = vrot.slane %v3621_v34, %v9708_v17  ;;  %v3636_v50 = vcombine.high %v3628_v20, %v3628_v20 }
 0x180   : > { %11165 = vst [vmem:[#allocation22_spill] sm:$0xff] %v10142_v0  ;;  %v8568_v5 = vpop.f32.mrb[69].mxu0  ;;  %v4631_v57 = vcombine.low %v3620_v10, %v3628_v20  ;;  %v3638_v27 = vcombine.high %v3060_v19, %v3060_v19  ;;  %8605 = vmatmul.mubr.msk.bf16.gmra.mrb[104].mxu0 %vm5139_vm3, %v10142_v0  ;;  %v10154_v40 = vpack.c.bf16 %v5625_v44, %v5623_v52  ;;  %v5629_v44 = vrot.slane %v10113_v38, 2 }
 0x181   : > { %v10148_v42 = vpop.f32.mrb[70].mxu0  ;;  %v3645_v5 = vrot.slane %v3060_v19, %v9708_v17  ;;  %v3061_v22 = vmax.f32 %v3020_v62, 0.0  ;;  %v3021_v41 = vadd.f32 %v10125_v1, %v2973_v13  ;;  %v4647_v33 = vcombine.low %v3636_v50, %v3635_v8 }
 0x182   : > { %v8569_v56 = vpop.f32.mrb[71].mxu0  ;;  %11166 = vst [vmem:[#allocation23_spill] sm:$0xff] %v10154_v40  ;;  %v4645_v3 = vrot.slane %v4631_v57, %v9708_v17  ;;  %v3637_v49 = vcombine.high %v3635_v8, %v3635_v8  ;;  %v3652_v34 = vrot.slane %v3638_v27, %v9708_v17  ;;  %8673 = vmatmul.mubr.msk.bf16.vlgmr.msra.gmra.mrb[0].mxu1 %vm5139_vm3, %v10154_v40 }
 0x183   : > { %v3653_v2 = vcombine.high %v3645_v5, %v3645_v5  ;;  %v3655_v10 = vcombine.high %v3061_v22, %v3061_v22  ;;  %v3662_v46 = vrot.slane %v3061_v22, %v9708_v17  ;;  %v3062_v20 = vmax.f32 %v3021_v41, 0.0 }
 0x184   : > { %v4646_v52 = vcombine.low %v4638_v31, %v4645_v3  ;;  %v3654_v19 = vcombine.high %v3652_v34, %v3652_v34  ;;  %v4648_v62 = vcombine.low %v3637_v49, %v3645_v5  ;;  %v4655_v56 = vrot.slane %v4647_v33, %v9708_v17 }
 0x185   : > { %v4670_v13 = vrot.slane %v3653_v2, %v9708_v17  ;;  %v3669_v50 = vrot.slane %v3655_v10, %v9708_v17  ;;  %v3670_v8 = vcombine.high %v3662_v46, %v3662_v46  ;;  %v3672_v57 = vcombine.high %v3062_v20, %v3062_v20 }
 0x186   : > { %v4662_v40 = vrot.slane %v4648_v62, %v9708_v17  ;;  %v4671_v0 = vcombine.low %v3652_v34, %v3654_v19  ;;  %v3679_v22 = vrot.slane %v3062_v20, %v9708_v17  ;;  %v10179_v10 = vsel %vm3875_vm5, %v4646_v52, 0.0 }
 0x187   : > { %v10165_v27 = vpop.f32.mrb[72].mxu0  ;;  %v10172_v31 = vsel %vm3934_vm4, %v4670_v13, 0.0  ;;  %v3671_v5 = vcombine.high %v3669_v50, %v3669_v50  ;;  %v4672_v3 = vcombine.low %v3662_v46, %v3670_v8  ;;  %v3686_v49 = vrot.slane %v3672_v57, %v9708_v17 }
 0x188   : > { %v8572_v41 = vpop.f32.mrb[73].mxu0  ;;  %v10181_v33 = vcombine.low %v4655_v56, %v4662_v40  ;;  %v4679_v34 = vrot.slane %v4671_v0, %v9708_v17  ;;  %v5077_v20 = vrot.slane %v10172_v31, 1  ;;  %v5634_v8 = vrot.slane %v10172_v31, 2 }
 0x189   : > { %v10175_v2 = vpop.f32.mrb[74].mxu0  ;;  %v4686_v62 = vrot.slane %v4672_v3, %v9708_v17  ;;  %v4688_v13 = vcombine.low %v3669_v50, %v3671_v5  ;;  %v3687_v41 = vcombine.high %v3679_v22, %v3679_v22  ;;  %v4711_v46 = vrot.slane %v3686_v49, %v9708_v17 }
 0x18a   : > { %v8573_v19 = vpop.f32.mrb[75].mxu0  ;;  %v2974_v57 = vmul.f32 %v10104_v39, %v2903_v59  ;;  %v5069_v52 = vrot.slane %v10109_v12, 1  ;;  %v5070_v40 = vrot.slane %v10116_v51, 1  ;;  %v3688_v3 = vcombine.high %v3686_v49, %v3686_v49 }
 0x18b   : > { %v4687_v56 = vcombine.low %v4679_v34, %v4686_v62  ;;  %v4696_v0 = vrot.slane %v4688_v13, %v9708_v17  ;;  %v4689_v54 = vcombine.low %v3679_v22, %v3687_v41  ;;  %v10194_v19 = vsel %vm3934_vm4, %v4711_v46, 0.0 }
 0x18c   : > { %v5082_v50 = vrot.slane %v10194_v19, 1  ;;  %v3022_v5 = vadd.f32 %v10125_v1, %v2974_v57  ;;  %v5071_v31 = vsel %vm5008_vm6, %v5069_v52, %v5070_v40  ;;  %v11167_v62 = vrot.slane %v10113_v38, 1 }
 0x18d   : > { %v10201_v59 = vsel %vm3875_vm5, %v4687_v56, 0.0  ;;  %v4703_v34 = vrot.slane %v4689_v54, %v9708_v17  ;;  %v5626_v13 = vrot.slane %v10109_v12, 2  ;;  %v5627_v49 = vrot.slane %v10116_v51, 2 }
 0x18e   : > { %v5073_v22 = vsel %vm5008_vm6, %v5070_v40, %v11167_v62  ;;  %v3063_v46 = vmax.f32 %v3022_v5, 0.0  ;;  %v2975_v57 = vmul.f32 %v10104_v39, %v10148_v42  ;;  %v5074_v54 = vrot.slane %v10179_v10, 1 }
 0x18f   : > { %v10208_v41 = vpop.f32.mrb[76].mxu0  ;;  %v10210_v25 = vpack.c.bf16 %v5073_v22, %v5071_v31  ;;  %v10215_v56 = vcombine.low %v4696_v0, %v4703_v34  ;;  %v5075_v38 = vrot.slane %v10181_v33, 1  ;;  %v5631_v40 = vrot.slane %v10179_v10, 2 }
 0x190   : > { %v8576_v52 = vpop.f32.mrb[77].mxu0  ;;  %v3689_v63 = vcombine.high %v3063_v46, %v3063_v46  ;;  %v3696_v5 = vrot.slane %v3063_v46, %v9708_v17  ;;  %v5628_v31 = vsel %vm5565_vm7, %v5626_v13, %v5627_v49  ;;  %v5630_v42 = vsel %vm5565_vm7, %v5627_v49, %v5629_v44  ;;  %v10236_v13 = vld [vmem:[%s11098_s4 + $0x10] sm:$0xf] }
 0x191   : > { %v2922_v62 = vpop.f32.mrb[78].mxu0  ;;  %8608 = vmatprep.mubr.msk.bf16.mxu0 %vm5139_vm3, %v10210_v25  ;;  %v10225_v0 = vpack.c.bf16 %v5630_v42, %v5628_v31  ;;  %v3023_v34 = vadd.f32 %v10125_v1, %v2975_v57  ;;  %v5076_v52 = vsel %vm5008_vm6, %v5074_v54, %v5075_v38  ;;  %v5078_v16 = vsel %vm5008_vm6, %v5075_v38, %v5077_v20  ;;  %v9225_v20 = vld [vmem:[%s11098_s4 + $0xc] sm:$0xf] }
 0x192   : > { %v8577_v22 = vpop.f32.mrb[79].mxu0  ;;  %v3703_v62 = vrot.slane %v3689_v63, %v9708_v17  ;;  %v3704_v11 = vcombine.high %v3696_v5, %v3696_v5  ;;  %v4712_v46 = vcombine.low %v3688_v3, %v3696_v5  ;;  %v10231_v7 = vpack.c.bf16 %v5078_v16, %v5076_v52 }
 0x193   : > { %11168 = vst [vmem:[#allocation24_spill] sm:$0xff] %v10225_v0  ;;  %8676 = vmatprep.mubr.msk.bf16.mxu1 %vm5139_vm3, %v10225_v0  ;;  %v3064_v44 = vmax.f32 %v3023_v34, 0.0  ;;  %v5632_v49 = vrot.slane %v10181_v33, 2  ;;  %v5947_v63 = vsel %vm5188_vm2, %v9225_v20, 0  ;;  %v5079_v16 = vrot.slane %v10201_v59, 1 }
 0x194   : > { %11169 = vst [vmem:[#allocation25_spill] sm:$0xff] %v10231_v7  ;;  %v4713_v3 = vcombine.low %v3704_v11, %v3703_v62  ;;  %v4720_v57 = vrot.slane %v4712_v46, %v9708_v17  ;;  %v3705_v54 = vcombine.high %v3703_v62, %v3703_v62  ;;  %8609 = vmatmul.mubr.msk.bf16.gmra.mrb[108].mxu0 %vm5139_vm3, %v10231_v7  ;;  %v5080_v38 = vrot.slane %v10215_v56, 1 }
 0x195   : > { %8685 = vmatpush3.bf16.msra.mxu1 %v5947_v63  ;;  %v3706_v5 = vcombine.high %v3064_v44, %v3064_v44  ;;  %v3713_v31 = vrot.slane %v3064_v44, %v9708_v17  ;;  %v5633_v42 = vsel %vm5565_vm7, %v5631_v40, %v5632_v49  ;;  %v5635_v22 = vsel %vm5565_vm7, %v5632_v49, %v5634_v8 }
 0x196   : > { %9185 = vmatprep.subr.msk.bf16.mxu1 %vm5188_vm2, %v10236_v13  ;;  %v4727_v34 = vrot.slane %v4713_v3, %v9708_v17  ;;  %v10256_v52 = vpack.c.bf16 %v5635_v22, %v5633_v42  ;;  %v5081_v62 = vsel %vm5008_vm6, %v5079_v16, %v5080_v38  ;;  %v5083_v46 = vsel %vm5008_vm6, %v5080_v38, %v5082_v50 }
 0x197   : > { %v2927_v11 = vpop.f32.mrb[80].mxu0  ;;  %v3720_v63 = vrot.slane %v3706_v5, %v9708_v17  ;;  %v3721_v44 = vcombine.high %v3713_v31, %v3713_v31  ;;  %v4729_v0 = vcombine.low %v3705_v54, %v3713_v31  ;;  %v10261_v40 = vpack.c.bf16 %v5083_v46, %v5081_v62  ;;  %v9227_v62 = vld [vmem:[%s11098_s4 + $0x8] sm:$0xf] }
 0x198   : > { %v8580_v20 = vpop.f32.mrb[81].mxu0  ;;  %v5639_v49 = vrot.slane %v10194_v19, 2  ;;  %v4728_v7 = vcombine.low %v4720_v57, %v4727_v34  ;;  %8677 = vmatmul.mubr.msk.bf16.gmra.mrb[4].mxu1 %vm5139_vm3, %v10256_v52  ;;  %v5636_v3 = vrot.slane %v10201_v59, 2  ;;  %v5637_v16 = vrot.slane %v10215_v56, 2  ;;  %v9226_v19 = vld [vmem:[%s11098_s4] sm:$0xf] }
 0x199   : > { %v2930_v8 = vpop.f32.mrb[82].mxu0  ;;  %v3722_v50 = vcombine.high %v3720_v63, %v3720_v63  ;;  %v4730_v38 = vcombine.low %v3721_v44, %v3720_v63  ;;  %v4737_v5 = vrot.slane %v4729_v0, %v9708_v17  ;;  %8612 = vmatprep.mubr.msk.bf16.mxu0 %vm5139_vm3, %v10261_v40  ;;  %v5402_v57 = vsel %vm5188_vm2, %v9226_v19, 0 }
 0x19a   : > { %v8581_v42 = vpop.f32.mrb[83].mxu0  ;;  %v4934_v54 = vsel %vm3875_vm5, %v4728_v7, 0.0  ;;  %v5638_v31 = vsel %vm5565_vm7, %v5636_v3, %v5637_v16  ;;  %v5640_v22 = vsel %vm5565_vm7, %v5637_v16, %v5639_v49  ;;  %8617 = vmatpush3.bf16.msra.mxu0 %v5402_v57  ;;  %v4944_v49 = vpack.c.bf16 %v9745_v14, %v9755_v24 }
 0x19b   : > { %v4744_v11 = vrot.slane %v4730_v38, %v9708_v17  ;;  %v4752_v0 = vrot.slane %v3722_v50, %v9708_v17  ;;  %v10281_v34 = vpack.c.bf16 %v5640_v22, %v5638_v31  ;;  %9182 = vmatprep.subr.msk.bf16.mxu0 %vm5188_vm2, %v9227_v62  ;;  %v5084_v20 = vrot.slane %v4934_v54, 1 }
 0x19c   : > { %v5641_v63 = vrot.slane %v4934_v54, 2  ;;  %v2976_v42 = vmul.f32 %v10104_v39, %v10165_v27  ;;  %v2977_v50 = vmul.f32 %v10104_v39, %v10175_v2  ;;  %v10299_v38 = vpack.c.bf16 %v10049_v4, %v10043_v23 }
 0x19d   : > { %v4745_v46 = vcombine.low %v4737_v5, %v4744_v11  ;;  %v4936_v7 = vsel %vm3934_vm4, %v4752_v0, 0.0  ;;  %8680 = vmatprep.mubr.msk.bf16.mxu1 %vm5139_vm3, %v10281_v34  ;;  %v10303_v5 = vpack.c.bf16 %v10080_v30, %v10069_v47  ;;  %v2978_v19 = vmul.f32 %v10104_v39, %v10208_v41 }
 0x19e   : > { %v5087_v44 = vrot.slane %v4936_v7, 1  ;;  %v5644_v8 = vrot.slane %v4936_v7, 2  ;;  %v3024_v23 = vadd.f32 %v10125_v1, %v2976_v42  ;;  %v3025_v4 = vadd.f32 %v10125_v1, %v2977_v50 }
 0x19f   : > { %v5085_v3 = vrot.slane %v4745_v46, 1  ;;  %v5642_v16 = vrot.slane %v4745_v46, 2  ;;  %v3026_v30 = vadd.f32 %v10125_v1, %v2978_v19  ;;  %v10320_v47 = vpack.c.bf16 %v10116_v51, %v10109_v12 }
 0x1a0   : > { %v10324_v39 = vpack.c.bf16 %v10181_v33, %v10179_v10  ;;  %v10328_v41 = vpack.c.bf16 %v10215_v56, %v10201_v59  ;;  %v3065_v0 = vmax.f32 %v3024_v23, 0.0  ;;  %v3066_v1 = vmax.f32 %v3025_v4, 0.0 }
 0x1a1   : > { %v5086_v57 = vsel %vm5008_vm6, %v5084_v20, %v5085_v3  ;;  %v5088_v31 = vsel %vm5008_vm6, %v5085_v3, %v5087_v44  ;;  %v5643_v27 = vsel %vm5565_vm7, %v5641_v63, %v5642_v16  ;;  %v5645_v22 = vsel %vm5565_vm7, %v5642_v16, %v5644_v8 }
 0x1a2   : > { %v10311_v2 = vpack.c.bf16 %v5088_v31, %v5086_v57  ;;  %v10313_v11 = vpack.c.bf16 %v5645_v22, %v5643_v27  ;;  %v10334_v62 = vpack.c.bf16 %v4745_v46, %v4934_v54  ;;  %v9256_v12 = vmov 0.0|0.0  }
 0x1a3   : > { %v3067_v51 = vmax.f32 %v3026_v30, 0.0  ;;  %v3723_v10 = vcombine.high %v3065_v0, %v3065_v0  ;;  %v3730_v33 = vrot.slane %v3065_v0, %v9708_v17  ;;  %v3740_v59 = vcombine.high %v3066_v1, %v3066_v1 }
 0x1a4   : > { %8613 = vmatmul.mubr.msk.bf16.gmra.mrb[112].mxu0 %vm5139_vm3, %v10311_v2  ;;  %8681 = vmatmul.mubr.msk.bf16.gmra.mrb[8].mxu1 %vm5139_vm3, %v10313_v11  ;;  %v3747_v56 = vrot.slane %v3066_v1, %v9708_v17  ;;  %v10344_v54 = vpack.c.bf16 %v9777_v61, %v9798_v29  ;;  %v6159_v46 = vsel %vm5188_vm2, %v10236_v13, 0  ;;  %v10351_v19 = vpack.c.bf16 %v9810_v43, %v9831_v15  ;;  %v10360_v13 = vld [vmem:[%s11098_s4 + $0x14] sm:$0xf] }
 0x1a5   : > { %8686 = vmatprep.mubr.msk.bf16.mxu1 %vm5139_vm3, %v4944_v49  ;;  %8618 = vmatprep.mubr.bf16.mxu0 %v9256_v12  ;;  %v3737_v7 = vrot.slane %v3723_v10, %v9708_v17  ;;  %v3738_v20 = vcombine.high %v3730_v33, %v3730_v33  ;;  %v3754_v63 = vrot.slane %v3740_v59, %v9708_v17 }
 0x1a6   : > { %v3755_v44 = vcombine.high %v3747_v56, %v3747_v56  ;;  %v3764_v8 = vrot.slane %v3067_v51, %v9708_v17  ;;  %v10377_v51 = vpack.c.bf16 %v9865_v9, %v9874_v28 }
 0x1a7   : > { %v3739_v3 = vcombine.high %v3737_v7, %v3737_v7  ;;  %v4753_v16 = vcombine.low %v3730_v33, %v3738_v20  ;;  %v3756_v42 = vcombine.high %v3754_v63, %v3754_v63  ;;  %v10401_v20 = vpack.c.bf16 %v9910_v32, %v9916_v37 }
 0x1a8   : > { %v4770_v50 = vcombine.low %v3747_v56, %v3755_v44  ;;  %v10417_v44 = vpack.c.bf16 %v9996_v60, %v9973_v55 }
 0x1a9   : > { %v4754_v57 = vcombine.low %v3737_v7, %v3739_v3  ;;  %v4761_v31 = vrot.slane %v4753_v16, %v9708_v17  ;;  %v4771_v27 = vcombine.low %v3754_v63, %v3756_v42  ;;  %v10405_v63 = vpack.c.bf16 %v9944_v21, %v9964_v45 }
 0x1aa   : > { %v4778_v22 = vrot.slane %v4770_v50, %v9708_v17  ;;  %v11170_v16 = vmov 0.0  }
 0x1ab   : > { %v4768_v23 = vrot.slane %v4754_v57, %v9708_v17  ;;  %v4785_v4 = vrot.slane %v4771_v27, %v9708_v17  ;;  %v5566_v42 = vrot.slane %v11170_v16, 2  ;;  %v11174_v16 = vld [vmem:[#allocation5_spill] sm:$0xff] }
 0x1ac   : > { %8619 = vmatmul.mubr.msk.bf16.vlgmr.msra.gmra.mrb[84].mxu0 %vm5139_vm3, %v4944_v49  ;;  %8687 = vmatmul.mubr.msk.bf16.vlgmr.msra.gmra.mrb[12].mxu1 %vm5139_vm3, %v10344_v54  ;;  %v4793_v49 = vrot.slane %v3764_v8, %v9708_v17  ;;  %v10383_v17 = vpack.c.bf16 %v9878_v35, %v9893_v53 }
 0x1ad   : > { %8719 = vmatpush3.bf16.msra.mxu1 %v6159_v46  ;;  %8622 = vmatprep.mubr.msk.bf16.mxu0 %vm5139_vm3, %v10344_v54  ;;  %v4769_v30 = vcombine.low %v4761_v31, %v4768_v23  ;;  %v4786_v0 = vcombine.low %v4778_v22, %v4785_v4  ;;  %v10421_v46 = vpack.c.bf16 %v10012_v36, %v10009_v58  ;;  %v5574_v23 = vrot.slane %v9750_v18, 2 }
 0x1ae   : > { %8690 = vmatprep.mubr.msk.bf16.mxu1 %vm5139_vm3, %v10351_v19  ;;  %8651 = vmatpush3.bf16.msra.mxu0 %v9718_v26  ;;  %v4939_v1 = vsel %vm3934_vm4, %v4793_v49, 0.0  ;;  %v10460_v22 = vpack.c.bf16 %v5566_v42, %v5566_v42  ;;  %v5572_v49 = vrot.slane %v9745_v14, 2  ;;  %v5577_v4 = vrot.slane %v9777_v61, 2 }
 0x1af   : > { %9186 = vmatprep.subr.msk.bf16.mxu1 %vm5188_vm2, %v10360_v13  ;;  %v4937_v10 = vsel %vm3875_vm5, %v4769_v30, 0.0  ;;  %v6148_v48 = vrot.slane %v4939_v1, 1  ;;  %v6146_v6 = vrot.slane %v4786_v0, 1  ;;  %v6357_v8 = vrot.slane %v4939_v1, 2  ;;  %v11172_v1 = vld [vmem:[#allocation4_spill] sm:$0xff] }
 0x1b0   : > { %v10385_v26 = vpack.c.bf16 %v4786_v0, %v4937_v10  ;;  %v6145_v33 = vrot.slane %v4937_v10, 1  ;;  %v6354_v3 = vrot.slane %v4937_v10, 2  ;;  %v6355_v50 = vrot.slane %v4786_v0, 2  ;;  %v11171_v0 = vld [vmem:[#allocation3_spill] sm:$0xff] }
 0x1b1   : > { %v6149_v56 = vsel %vm5008_vm6, %v6146_v6, %v6148_v48  ;;  %v5571_v30 = vrot.slane %v9755_v24, 2  ;;  %v5579_v14 = vrot.slane %v11172_v1, 2  ;;  %v5576_v18 = vrot.slane %v9798_v29, 2  ;;  %v10491_v29 = vld [vmem:[%s11098_s4 + $0x18] sm:$0xf] }
 0x1b2   : > { %v6147_v59 = vsel %vm5008_vm6, %v6145_v33, %v6146_v6  ;;  %v6356_v57 = vsel %vm5565_vm7, %v6354_v3, %v6355_v50  ;;  %v6358_v31 = vsel %vm5565_vm7, %v6355_v50, %v6357_v8  ;;  %v5575_v10 = vsel %vm5565_vm7, %v5572_v49, %v5574_v23  ;;  %v11173_v8 = vld [vmem:[#allocation6_spill] sm:$0xff] }
 0x1b3   : > { %v10397_v7 = vpack.c.bf16 %v6149_v56, %v6147_v59  ;;  %v10458_v27 = vpack.c.bf16 %v6358_v31, %v6356_v57  ;;  %v5573_v48 = vsel %vm5565_vm7, %v5571_v30, %v5572_v49  ;;  %v5578_v33 = vsel %vm5565_vm7, %v5576_v18, %v5577_v4  ;;  %v11176_v57 = vld [vmem:[#allocation8_spill] sm:$0xff]  ;;  %v11178_v18 = vld [vmem:[#allocation9_spill] sm:$0xff] }
 0x1b4   : > { %8623 = vmatmul.mubr.msk.bf16.gmra.mrb[88].mxu0 %vm5139_vm3, %v10351_v19  ;;  %8691 = vmatmul.mubr.msk.bf16.gmra.mrb[16].mxu1 %vm5139_vm3, %v10377_v51  ;;  %v5580_v61 = vsel %vm5565_vm7, %v5577_v4, %v5579_v14  ;;  %v10480_v6 = vpack.c.bf16 %v5575_v10, %v5573_v48  ;;  %v6368_v24 = vsel %vm5188_vm2, %v10360_v13, 0  ;;  %v5582_v56 = vrot.slane %v9810_v43, 2  ;;  %v11175_v13 = vld [vmem:[#allocation7_spill] sm:$0xff]  ;;  %v11179_v48 = vld [vmem:[#allocation12_spill] sm:$0xff] }
 0x1b5   : > { %8626 = vmatprep.mubr.msk.bf16.mxu0 %vm5139_vm3, %v10377_v51  ;;  %8694 = vmatprep.mubr.msk.bf16.mxu1 %vm5139_vm3, %v10383_v17  ;;  %v10484_v59 = vpack.c.bf16 %v5580_v61, %v5578_v33  ;;  %v5584_v3 = vrot.slane %v11173_v8, 2  ;;  %v5587_v42 = vrot.slane %v9865_v9, 2  ;;  %v5581_v43 = vrot.slane %v9831_v15, 2  ;;  %v11180_v33 = vld [vmem:[#allocation10_spill] sm:$0xff] }
 0x1b6   : > { %v5589_v50 = vrot.slane %v11175_v13, 2  ;;  %v5586_v31 = vrot.slane %v9874_v28, 2  ;;  %v11177_v28 = vld [vmem:[#allocation11_spill] sm:$0xff]  ;;  %v5596_v1 = vrot.slane %v9916_v37, 2  ;;  %v5597_v14 = vrot.slane %v9910_v32, 2  ;;  %v11181_v13 = vld [vmem:[#allocation13_spill] sm:$0xff] }
 0x1b7   : > { %v5583_v49 = vsel %vm5565_vm7, %v5581_v43, %v5582_v56  ;;  %v5585_v9 = vsel %vm5565_vm7, %v5582_v56, %v5584_v3  ;;  %v5594_v10 = vrot.slane %v11178_v18, 2  ;;  %v5599_v61 = vrot.slane %v11180_v33, 2  ;;  %v11185_v18 = vld [vmem:[#allocation17_spill] sm:$0xff]  ;;  %v11187_v33 = vld [vmem:[#allocation19_spill] sm:$0xff] }
 0x1b8   : > { %v5588_v23 = vsel %vm5565_vm7, %v5586_v31, %v5587_v42  ;;  %v5590_v4 = vsel %vm5565_vm7, %v5587_v42, %v5589_v50  ;;  %v10511_v30 = vpack.c.bf16 %v5585_v9, %v5583_v49  ;;  %v5598_v37 = vsel %vm5565_vm7, %v5596_v1, %v5597_v14  ;;  %v11182_v50 = vld [vmem:[#allocation15_spill] sm:$0xff]  ;;  %v11183_v49 = vld [vmem:[#allocation14_spill] sm:$0xff] }
 0x1b9   : > { %v10513_v15 = vpack.c.bf16 %v5590_v4, %v5588_v23  ;;  %v5600_v32 = vsel %vm5565_vm7, %v5597_v14, %v5599_v61  ;;  %v5601_v42 = vrot.slane %v9964_v45, 2  ;;  %v5602_v43 = vrot.slane %v9944_v21, 2  ;;  %v11184_v45 = vld [vmem:[#allocation16_spill] sm:$0xff] }
 0x1ba   : > { %v10535_v3 = vpack.c.bf16 %v5600_v32, %v5598_v37  ;;  %v5609_v31 = vrot.slane %v11182_v50, 2  ;;  %v5606_v9 = vrot.slane %v9973_v55, 2  ;;  %v5607_v23 = vrot.slane %v9996_v60, 2  ;;  %v11189_v32 = vld [vmem:[#allocation22_spill] sm:$0xff] }
 0x1bb   : > { %v5603_v21 = vsel %vm5565_vm7, %v5601_v42, %v5602_v43  ;;  %v5614_v55 = vrot.slane %v11185_v18, 2  ;;  %v5612_v60 = vrot.slane %v10012_v36, 2  ;;  %v5611_v61 = vrot.slane %v10009_v58, 2  ;;  %v11188_v36 = vld [vmem:[#allocation20_spill] sm:$0xff]  ;;  %v11190_v42 = vld [vmem:[#allocation25_spill] sm:$0xff] }
 0x1bc   : > { %8627 = vmatmul.mubr.msk.bf16.gmra.mrb[92].mxu0 %vm5139_vm3, %v10383_v17  ;;  %8695 = vmatmul.mubr.msk.bf16.gmra.mrb[20].mxu1 %vm5139_vm3, %v10401_v20  ;;  %v5610_v1 = vsel %vm5565_vm7, %v5607_v23, %v5609_v31  ;;  %v6570_v58 = vsel %vm5188_vm2, %v10491_v29, 0  ;;  %v8197_v50 = vld [vmem:[%s11098_s4 + $0x20] sm:$0xf] }
 0x1bd   : > { %8630 = vmatprep.mubr.msk.bf16.mxu0 %vm5139_vm3, %v10401_v20  ;;  %8698 = vmatprep.mubr.msk.bf16.mxu1 %vm5139_vm3, %v10405_v63 }
 0x1c4   : > { %8631 = vmatmul.mubr.msk.bf16.gmra.mrb[96].mxu0 %vm5139_vm3, %v10405_v63  ;;  %8699 = vmatmul.mubr.msk.bf16.gmra.mrb[24].mxu1 %vm5139_vm3, %v10417_v44 }
 0x1c5   : > { %8634 = vmatprep.mubr.msk.bf16.mxu0 %vm5139_vm3, %v10417_v44  ;;  %8702 = vmatprep.mubr.msk.bf16.mxu1 %vm5139_vm3, %v10421_v46 }
 0x1cc   : > { %8635 = vmatmul.mubr.msk.bf16.gmra.mrb[100].mxu0 %vm5139_vm3, %v10421_v46  ;;  %8703 = vmatmul.mubr.msk.bf16.gmra.mrb[28].mxu1 %vm5139_vm3, %v10299_v38 }
 0x1cd   : > { %8638 = vmatprep.mubr.msk.bf16.mxu0 %vm5139_vm3, %v10299_v38  ;;  %8706 = vmatprep.mubr.msk.bf16.mxu1 %vm5139_vm3, %v10303_v5 }
 0x1d4   : > { %8639 = vmatmul.mubr.msk.bf16.gmra.mrb[104].mxu0 %vm5139_vm3, %v10303_v5  ;;  %8707 = vmatmul.mubr.msk.bf16.gmra.mrb[0].mxu1 %vm5139_vm3, %v10320_v47 }
 0x1d5   : > { %8642 = vmatprep.mubr.msk.bf16.mxu0 %vm5139_vm3, %v10320_v47  ;;  %8710 = vmatprep.mubr.msk.bf16.mxu1 %vm5139_vm3, %v10324_v39 }
 0x1dc   : > { %8643 = vmatmul.mubr.msk.bf16.gmra.mrb[108].mxu0 %vm5139_vm3, %v10324_v39  ;;  %8711 = vmatmul.mubr.msk.bf16.gmra.mrb[4].mxu1 %vm5139_vm3, %v10328_v41 }
 0x1dd   : > { %8646 = vmatprep.mubr.msk.bf16.mxu0 %vm5139_vm3, %v10328_v41  ;;  %8714 = vmatprep.mubr.msk.bf16.mxu1 %vm5139_vm3, %v10334_v62 }
 0x1e4   : > { %8647 = vmatmul.mubr.msk.bf16.gmra.mrb[112].mxu0 %vm5139_vm3, %v10334_v62  ;;  %8715 = vmatmul.mubr.msk.bf16.gmra.mrb[8].mxu1 %vm5139_vm3, %v10385_v26 }
 0x1e5   : > { %8720 = vmatprep.mubr.msk.bf16.mxu1 %vm5139_vm3, %v11171_v0  ;;  %8652 = vmatprep.mubr.msk.bf16.mxu0 %vm5139_vm3, %v10460_v22  ;;  %v5592_v0 = vrot.slane %v9878_v35, 2  ;;  %v5591_v35 = vrot.slane %v9893_v53, 2  ;;  %v5604_v53 = vrot.slane %v11181_v13, 2  ;;  %v11193_v13 = vld [vmem:[#allocation24_spill] sm:$0xff] }
 0x1e7   : > { %v5595_v56 = vsel %vm5565_vm7, %v5592_v0, %v5594_v10  ;;  %v5605_v4 = vsel %vm5565_vm7, %v5602_v43, %v5604_v53  ;;  %v8180_v43 = vld [vmem:[%s11098_s4 + $0x1c] sm:$0xf] }
 0x1e8   : > { %v10555_v14 = vpack.c.bf16 %v5605_v4, %v5603_v21  ;;  %v6782_v53 = vsel %vm5188_vm2, %v8180_v43, 0 }
 0x1ec   : > { %8653 = vmatmul.mubr.msk.bf16.vlgmr.msra.gmra.mrb[84].mxu0 %vm5139_vm3, %v10480_v6  ;;  %8721 = vmatmul.mubr.msk.bf16.vlgmr.msra.gmra.mrb[12].mxu1 %vm5139_vm3, %v11174_v16 }
 0x1ed   : > { %8753 = vmatpush3.bf16.msra.mxu1 %v6368_v24  ;;  %8656 = vmatprep.mubr.msk.bf16.mxu0 %vm5139_vm3, %v10484_v59  ;;  %v5593_v24 = vsel %vm5565_vm7, %v5591_v35, %v5592_v0  ;;  %v5608_v0 = vsel %vm5565_vm7, %v5606_v9, %v5607_v23  ;;  %v11186_v35 = vld [vmem:[#allocation18_spill] sm:$0xff] }
 0x1ee   : > { %8724 = vmatprep.mubr.msk.bf16.mxu1 %vm5139_vm3, %v11176_v57  ;;  %9187 = vmatprep.subr.msk.bf16.mxu1 %vm5188_vm2, %v10491_v29  ;;  %v10533_v8 = vpack.c.bf16 %v5595_v56, %v5593_v24  ;;  %v10558_v10 = vpack.c.bf16 %v5610_v1, %v5608_v0  ;;  %v5613_v24 = vsel %vm5565_vm7, %v5611_v61, %v5612_v60  ;;  %v11192_v29 = vld [vmem:[#allocation23_spill] sm:$0xff] }
 0x1ef   : > { %v5615_v56 = vsel %vm5565_vm7, %v5612_v60, %v5614_v55 }
 0x1f0   : > { %v10572_v37 = vpack.c.bf16 %v5615_v56, %v5613_v24 }
 0x1f4   : > { %8657 = vmatmul.mubr.msk.bf16.gmra.mrb[88].mxu0 %vm5139_vm3, %v10511_v30  ;;  %8725 = vmatmul.mubr.msk.bf16.gmra.mrb[16].mxu1 %vm5139_vm3, %v11177_v28 }
 0x1f5   : > { %8660 = vmatprep.mubr.msk.bf16.mxu0 %vm5139_vm3, %v10513_v15  ;;  %8728 = vmatprep.mubr.msk.bf16.mxu1 %vm5139_vm3, %v11179_v48 }
 0x1fc   : > { %8661 = vmatmul.mubr.msk.bf16.gmra.mrb[92].mxu0 %vm5139_vm3, %v10533_v8  ;;  %8729 = vmatmul.mubr.msk.bf16.gmra.mrb[20].mxu1 %vm5139_vm3, %v11183_v49 }
 0x1fd   : > { %8664 = vmatprep.mubr.msk.bf16.mxu0 %vm5139_vm3, %v10535_v3  ;;  %8732 = vmatprep.mubr.msk.bf16.mxu1 %vm5139_vm3, %v11184_v45 }
 0x204   : > { %8665 = vmatmul.mubr.msk.bf16.gmra.mrb[96].mxu0 %vm5139_vm3, %v10555_v14  ;;  %8733 = vmatmul.mubr.msk.bf16.gmra.mrb[24].mxu1 %vm5139_vm3, %v11186_v35 }
 0x205   : > { %8668 = vmatprep.mubr.msk.bf16.mxu0 %vm5139_vm3, %v10558_v10  ;;  %8736 = vmatprep.mubr.msk.bf16.mxu1 %vm5139_vm3, %v11187_v33 }
 0x20c   : > { %8669 = vmatmul.mubr.msk.bf16.gmra.mrb[100].mxu0 %vm5139_vm3, %v10572_v37  ;;  %8737 = vmatmul.mubr.msk.bf16.gmra.mrb[28].mxu1 %vm5139_vm3, %v11188_v36 }
 0x20d   : > { %8740 = vmatprep.mubr.msk.bf16.mxu1 %vm5139_vm3, %v11189_v32 }
 0x214   : > { %8741 = vmatmul.mubr.msk.bf16.gmra.mrb[0].mxu1 %vm5139_vm3, %v10210_v25 }
 0x215   : > { %8744 = vmatprep.mubr.msk.bf16.mxu1 %vm5139_vm3, %v11190_v42 }
 0x21c   : > { %8745 = vmatmul.mubr.msk.bf16.gmra.mrb[4].mxu1 %vm5139_vm3, %v10261_v40 }
 0x21d   : > { %8748 = vmatprep.mubr.msk.bf16.mxu1 %vm5139_vm3, %v10311_v2 }
 0x224   : > { %8749 = vmatmul.mubr.msk.bf16.gmra.mrb[8].mxu1 %vm5139_vm3, %v10397_v7 }
 0x225   : > { %8754 = vmatprep.mubr.msk.bf16.mxu1 %vm5139_vm3, %v10480_v6  ;;  %v11191_v6 = vld [vmem:[#allocation21_spill] sm:$0xff] }
 0x22c   : > { %8755 = vmatmul.mubr.msk.bf16.vlgmr.msra.gmra.mrb[12].mxu1 %vm5139_vm3, %v10484_v59 }
 0x22d   : > { %8787 = vmatpush3.bf16.msra.mxu1 %v6570_v58  ;;  %8758 = vmatprep.mubr.msk.bf16.mxu1 %vm5139_vm3, %v10511_v30 }
 0x22e   : > { %9188 = vmatprep.subr.msk.bf16.mxu1 %vm5188_vm2, %v8180_v43 }
 0x234   : > { %8759 = vmatmul.mubr.msk.bf16.gmra.mrb[16].mxu1 %vm5139_vm3, %v10513_v15 }
 0x235   : > { %8762 = vmatprep.mubr.msk.bf16.mxu1 %vm5139_vm3, %v10533_v8 }
 0x23c   : > { %8763 = vmatmul.mubr.msk.bf16.gmra.mrb[20].mxu1 %vm5139_vm3, %v10535_v3 }
 0x23d   : > { %8766 = vmatprep.mubr.msk.bf16.mxu1 %vm5139_vm3, %v10555_v14 }
 0x244   : > { %8767 = vmatmul.mubr.msk.bf16.gmra.mrb[24].mxu1 %vm5139_vm3, %v10558_v10 }
 0x245   : > { %8770 = vmatprep.mubr.msk.bf16.mxu1 %vm5139_vm3, %v10572_v37 }
 0x24c   : > { %8771 = vmatmul.mubr.msk.bf16.gmra.mrb[28].mxu1 %vm5139_vm3, %v11191_v6 }
 0x24d   : > { %8774 = vmatprep.mubr.msk.bf16.mxu1 %vm5139_vm3, %v11192_v29 }
 0x254   : > { %8775 = vmatmul.mubr.msk.bf16.gmra.mrb[0].mxu1 %vm5139_vm3, %v11193_v13 }
 0x255   : > { %8778 = vmatprep.mubr.msk.bf16.mxu1 %vm5139_vm3, %v10256_v52 }
 0x25c   : > { %8779 = vmatmul.mubr.msk.bf16.gmra.mrb[4].mxu1 %vm5139_vm3, %v10281_v34 }
 0x25d   : > { %8782 = vmatprep.mubr.msk.bf16.mxu1 %vm5139_vm3, %v10313_v11 }
 0x264   : > { %8783 = vmatmul.mubr.msk.bf16.gmra.mrb[8].mxu1 %vm5139_vm3, %v10458_v27 }
 0x265   : > { %8788 = vmatprep.mubr.msk.bf16.mxu1 %vm5139_vm3, %v10344_v54 }
 0x26c   : > { %8789 = vmatmul.mubr.msk.bf16.vlgmr.msra.gmra.mrb[12].mxu1 %vm5139_vm3, %v10351_v19 }
 0x26d   : > { %8821 = vmatpush3.bf16.msra.mxu1 %v6782_v53  ;;  %8792 = vmatprep.mubr.msk.bf16.mxu1 %vm5139_vm3, %v10377_v51 }
 0x26e   : > { %9189 = vmatprep.subr.msk.bf16.mxu1 %vm5188_vm2, %v8197_v50 }
 0x274   : > { %8793 = vmatmul.mubr.msk.bf16.gmra.mrb[16].mxu1 %vm5139_vm3, %v10383_v17 }
 0x275   : > { %8796 = vmatprep.mubr.msk.bf16.mxu1 %vm5139_vm3, %v10401_v20 }
 0x27c   : > { %8797 = vmatmul.mubr.msk.bf16.gmra.mrb[20].mxu1 %vm5139_vm3, %v10405_v63 }
 0x27d   : > { %8800 = vmatprep.mubr.msk.bf16.mxu1 %vm5139_vm3, %v10417_v44 }
 0x284   : > { %8801 = vmatmul.mubr.msk.bf16.gmra.mrb[24].mxu1 %vm5139_vm3, %v10421_v46 }
 0x285   : > { %8804 = vmatprep.mubr.msk.bf16.mxu1 %vm5139_vm3, %v10299_v38  ;;  %v7312_v38 = vld [vmem:[%s11101_s7] sm:$0xf] }
 0x286   : > { %9190 = vmatprep.subr.msk.bf16.mxu0 %vm5188_vm2, %v7312_v38 }
 0x28c   : > { %8805 = vmatmul.mubr.msk.bf16.gmra.mrb[28].mxu1 %vm5139_vm3, %v10303_v5  ;;  %v7362_v5 = vsel %vm5188_vm2, %v7312_v38, 0 }
 0x28d   : > { %8808 = vmatprep.mubr.msk.bf16.mxu1 %vm5139_vm3, %v10320_v47  ;;  %8889 = vmatpush3.bf16.msra.mxu0 %v7362_v5 }
 0x294   : > { %8809 = vmatmul.mubr.msk.bf16.gmra.mrb[0].mxu1 %vm5139_vm3, %v10324_v39 }
 0x295   : > { %8812 = vmatprep.mubr.msk.bf16.mxu1 %vm5139_vm3, %v10328_v41 }
 0x29c   : > { %8813 = vmatmul.mubr.msk.bf16.gmra.mrb[4].mxu1 %vm5139_vm3, %v10334_v62 }
 0x29d   : > { %8816 = vmatprep.mubr.msk.bf16.mxu1 %vm5139_vm3, %v10385_v26 }
 0x2a4   : > { %8817 = vmatmul.mubr.bf16.gmra.mrb[8].mxu1 %v9256_v12  ;;  %v6991_v12 = vsel %vm5188_vm2, %v8197_v50, 0 }
 0x2a5   : > { %8822 = vmatprep.mubr.msk.bf16.mxu1 %vm5139_vm3, %v11174_v16 }
 0x2a7   : > { %v10671_v47 = vpop.f32.mrb[104].mxu0 }
 0x2a8   : > { %v10673_v39 = vpop.f32.mrb[105].mxu0 }
 0x2a9   : > { %v10675_v41 = vpop.f32.mrb[106].mxu0 }
 0x2aa   : > { %v10677_v62 = vpop.f32.mrb[107].mxu0 }
 0x2ac   : > { %8823 = vmatmul.mubr.msk.bf16.vlgmr.msra.gmra.mrb[12].mxu1 %vm5139_vm3, %v11176_v57 }
 0x2ad   : > { %8855 = vmatpush3.bf16.msra.mxu1 %v6991_v12  ;;  %8826 = vmatprep.mubr.msk.bf16.mxu1 %vm5139_vm3, %v11177_v28 }
 0x2af   : > { %v10684_v54 = vpop.f32.mrb[108].mxu0 }
 0x2b0   : > { %v10686_v19 = vpop.f32.mrb[109].mxu0 }
 0x2b1   : > { %v10688_v51 = vpop.f32.mrb[110].mxu0 }
 0x2b2   : > { %v10690_v17 = vpop.f32.mrb[111].mxu0 }
 0x2b4   : > { %8827 = vmatmul.mubr.msk.bf16.gmra.mrb[16].mxu1 %vm5139_vm3, %v11179_v48 }
 0x2b5   : > { %8830 = vmatprep.mubr.msk.bf16.mxu1 %vm5139_vm3, %v11183_v49 }
 0x2b7   : > { %v10696_v26 = vpop.f32.mrb[112].mxu0 }
 0x2b8   : > { %v10698_v20 = vpop.f32.mrb[113].mxu0 }
 0x2b9   : > { %v10700_v63 = vpop.f32.mrb[114].mxu0 }
 0x2ba   : > { %v10702_v44 = vpop.f32.mrb[115].mxu0 }
 0x2bc   : > { %8831 = vmatmul.mubr.msk.bf16.gmra.mrb[20].mxu1 %vm5139_vm3, %v11184_v45 }
 0x2bd   : > { %8834 = vmatprep.mubr.msk.bf16.mxu1 %vm5139_vm3, %v11186_v35 }
 0x2bf   : > { %v8654_v46 = vpop.f32.mrb[84].mxu0 }
 0x2c0   : > { %v5781_v16 = vpop.f32.mrb[85].mxu0 }
 0x2c1   : > { %v8655_v57 = vpop.f32.mrb[86].mxu0 }
 0x2c2   : > { %v5784_v28 = vpop.f32.mrb[87].mxu0 }
 0x2c4   : > { %8835 = vmatmul.mubr.msk.bf16.gmra.mrb[24].mxu1 %vm5139_vm3, %v11187_v33  ;;  %v11194_v33 = vld [vmem:[#allocation2_spill] sm:$0xff] }
 0x2c5   : > { %8838 = vmatprep.mubr.msk.bf16.mxu1 %vm5139_vm3, %v11188_v36 }
 0x2c7   : > { %v8658_v48 = vpop.f32.mrb[88].mxu0 }
 0x2c8   : > { %v10712_v31 = vpop.f32.mrb[89].mxu0 }
 0x2c9   : > { %v10714_v49 = vpop.f32.mrb[90].mxu0 }
 0x2ca   : > { %v10716_v9 = vpop.f32.mrb[91].mxu0 }
 0x2cc   : > { %8839 = vmatmul.mubr.msk.bf16.gmra.mrb[28].mxu1 %vm5139_vm3, %v11189_v32 }
 0x2cd   : > { %8842 = vmatprep.mubr.msk.bf16.mxu1 %vm5139_vm3, %v10210_v25 }
 0x2cf   : > { %v10722_v23 = vpop.f32.mrb[92].mxu0 }
 0x2d0   : > { %v10724_v45 = vpop.f32.mrb[93].mxu0 }
 0x2d1   : > { %v10726_v21 = vpop.f32.mrb[94].mxu0 }
 0x2d2   : > { %v10728_v4 = vpop.f32.mrb[95].mxu0 }
 0x2d4   : > { %8843 = vmatmul.mubr.msk.bf16.gmra.mrb[0].mxu1 %vm5139_vm3, %v11190_v42 }
 0x2d5   : > { %8846 = vmatprep.mubr.msk.bf16.mxu1 %vm5139_vm3, %v10261_v40 }
 0x2d7   : > { %v10734_v0 = vpop.f32.mrb[96].mxu0 }
 0x2d8   : > { %v10736_v1 = vpop.f32.mrb[97].mxu0 }
 0x2d9   : > { %v10738_v18 = vpop.f32.mrb[98].mxu0 }
 0x2da   : > { %v10740_v25 = vpop.f32.mrb[99].mxu0 }
 0x2dc   : > { %8847 = vmatmul.mubr.msk.bf16.gmra.mrb[4].mxu1 %vm5139_vm3, %v10311_v2 }
 0x2dd   : > { %8850 = vmatprep.mubr.msk.bf16.mxu1 %vm5139_vm3, %v10397_v7  ;;  %v10791_v7 = vld [vmem:[%s11099_s5] ss:$0 sm:$0xff] }
 0x2df   : > { %v10746_v55 = vpop.f32.mrb[100].mxu0 }
 0x2e0   : > { %v10748_v60 = vpop.f32.mrb[101].mxu0 }
 0x2e1   : > { %v10750_v35 = vpop.f32.mrb[102].mxu0 }
 0x2e2   : > { %v10752_v40 = vpop.f32.mrb[103].mxu0 }
 0x2e4   : > { %8851 = vmatmul.mubr.msk.bf16.gmra.mrb[8].mxu1 %vm5139_vm3, %v11194_v33 }
 0x2e5   : > { %8856 = vmatprep.mubr.msk.bf16.mxu1 %vm5139_vm3, %v10484_v59 }
 0x2ec   : > { %8857 = vmatmul.mubr.msk.bf16.vlgmr.msra.gmra.mrb[12].mxu1 %vm5139_vm3, %v10511_v30 }
 0x2ed   : > { %8860 = vmatprep.mubr.msk.bf16.mxu1 %vm5139_vm3, %v10513_v15 }
 0x2f4   : > { %8861 = vmatmul.mubr.msk.bf16.gmra.mrb[16].mxu1 %vm5139_vm3, %v10533_v8 }
 0x2f5   : > { %8864 = vmatprep.mubr.msk.bf16.mxu1 %vm5139_vm3, %v10535_v3 }
 0x2fc   : > { %8865 = vmatmul.mubr.msk.bf16.gmra.mrb[20].mxu1 %vm5139_vm3, %v10555_v14 }
 0x2fd   : > { %8868 = vmatprep.mubr.msk.bf16.mxu1 %vm5139_vm3, %v10558_v10 }
 0x304   : > { %8869 = vmatmul.mubr.msk.bf16.gmra.mrb[24].mxu1 %vm5139_vm3, %v10572_v37 }
 0x305   : > { %8872 = vmatprep.mubr.msk.bf16.mxu1 %vm5139_vm3, %v11191_v6 }
 0x30c   : > { %8873 = vmatmul.mubr.msk.bf16.gmra.mrb[28].mxu1 %vm5139_vm3, %v11192_v29 }
 0x30d   : > { %8876 = vmatprep.mubr.msk.bf16.mxu1 %vm5139_vm3, %v11193_v13 }
 0x314   : > { %8877 = vmatmul.mubr.msk.bf16.gmra.mrb[0].mxu1 %vm5139_vm3, %v10256_v52 }
 0x315   : > { %8880 = vmatprep.mubr.msk.bf16.mxu1 %vm5139_vm3, %v10281_v34  ;;  %v10796_v34 = vld [vmem:[%s11100_s6] ss:$0 sm:$0xff] }
 0x31c   : > { %8881 = vmatmul.mubr.msk.bf16.gmra.mrb[4].mxu1 %vm5139_vm3, %v10313_v11 }
 0x31d   : > { %8884 = vmatprep.mubr.msk.bf16.mxu1 %vm5139_vm3, %v10458_v27 }
 0x324   : > { %8885 = vmatmul.mubr.msk.bf16.gmra.mrb[8].mxu1 %vm5139_vm3, %v10460_v22 }
 0x3bf   : > { %v8858_v2 = vpop.f32.mrb[12].mxu1 }
 0x3c0   : > { %v8924_v59 = vadd.f32 %v8858_v2, %v8654_v46  ;;  %v7027_v52 = vpop.f32.mrb[13].mxu1 }
 0x3c1   : > { %v8925_v11 = vadd.f32 %v7027_v52, %v5781_v16  ;;  %v8859_v30 = vpop.f32.mrb[14].mxu1 }
 0x3c2   : > { %v7195_v27 = vmul.f32 %v8924_v59, %v10791_v7  ;;  %v8926_v15 = vadd.f32 %v8859_v30, %v8655_v57  ;;  %v7030_v8 = vpop.f32.mrb[15].mxu1 }
 0x3c3   : > { %v7193_v22 = vmul.f32 %v8925_v11, %v10791_v7  ;;  %v8927_v3 = vadd.f32 %v7030_v8, %v5784_v28 }
 0x3c4   : > { %v7234_v14 = vadd.f32 %v10796_v34, %v7195_v27  ;;  %v7196_v10 = vmul.f32 %v8926_v15, %v10791_v7 }
 0x3c5   : > { %v7232_v61 = vadd.f32 %v10796_v34, %v7193_v22  ;;  %v7194_v24 = vmul.f32 %v8927_v3, %v10791_v7 }
 0x3c6   : > { %v7235_v56 = vadd.f32 %v10796_v34, %v7196_v10  ;;  %v7266_v32 = vmax.f32 %v7234_v14, 0.0 }
 0x3c7   : > { %v7233_v37 = vadd.f32 %v10796_v34, %v7194_v24  ;;  %v8862_v36 = vpop.f32.mrb[16].mxu1  ;;  %v7264_v6 = vmax.f32 %v7232_v61, 0.0 }
 0x3c8   : > { %v7267_v42 = vmax.f32 %v7235_v56, 0.0  ;;  %v8928_v58 = vadd.f32 %v8862_v36, %v8658_v48  ;;  %v7043_v43 = vpop.f32.mrb[17].mxu1 }
 0x3c9   : > { %v7265_v29 = vmax.f32 %v7233_v37, 0.0  ;;  %v8929_v13 = vadd.f32 %v7043_v43, %v10712_v31  ;;  %v8863_v53 = vpop.f32.mrb[18].mxu1 }
 0x3ca   : > { %v7297_v50 = vpack.c.bf16 %v7267_v42, %v7266_v32  ;;  %v7199_v38 = vmul.f32 %v8928_v58, %v10791_v7  ;;  %v8930_v5 = vadd.f32 %v8863_v53, %v10714_v49  ;;  %v7046_v12 = vpop.f32.mrb[19].mxu1 }
 0x3cb   : > { %v7296_v46 = vpack.c.bf16 %v7265_v29, %v7264_v6  ;;  %v7197_v16 = vmul.f32 %v8929_v13, %v10791_v7  ;;  %v8931_v57 = vadd.f32 %v7046_v12, %v10716_v9 }
 0x3cc   : > { %v7238_v28 = vadd.f32 %v10796_v34, %v7199_v38  ;;  %v7200_v48 = vmul.f32 %v8930_v5, %v10791_v7 }
 0x3cd   : > { %v7236_v33 = vadd.f32 %v10796_v34, %v7197_v16  ;;  %v7198_v31 = vmul.f32 %v8931_v57, %v10791_v7  ;;  %8890 = vmatprep.mubr.msk.bf16.mxu0 %vm5139_vm3, %v7296_v46 }
 0x3ce   : > { %v7239_v2 = vadd.f32 %v10796_v34, %v7200_v48  ;;  %8891 = vmatmul.mubr.msk.bf16.vlgmr.msra.gmra.mrb[116].mxu0 %vm5139_vm3, %v7297_v50  ;;  %v7270_v52 = vmax.f32 %v7238_v28, 0.0 }
 0x3cf   : > { %v7237_v49 = vadd.f32 %v10796_v34, %v7198_v31  ;;  %v8866_v59 = vpop.f32.mrb[20].mxu1  ;;  %v7268_v27 = vmax.f32 %v7236_v33, 0.0 }
 0x3d0   : > { %v7271_v11 = vmax.f32 %v7239_v2, 0.0  ;;  %v8932_v9 = vadd.f32 %v8866_v59, %v10722_v23  ;;  %v7059_v30 = vpop.f32.mrb[21].mxu1 }
 0x3d1   : > { %v7269_v15 = vmax.f32 %v7237_v49, 0.0  ;;  %v8933_v8 = vadd.f32 %v7059_v30, %v10724_v45  ;;  %v8867_v22 = vpop.f32.mrb[22].mxu1 }
 0x3d2   : > { %v7299_v3 = vpack.c.bf16 %v7271_v11, %v7270_v52  ;;  %v7203_v14 = vmul.f32 %v8932_v9, %v10791_v7  ;;  %v8934_v10 = vadd.f32 %v8867_v22, %v10726_v21  ;;  %v7062_v61 = vpop.f32.mrb[23].mxu1 }
 0x3d3   : > { %v7298_v24 = vpack.c.bf16 %v7269_v15, %v7268_v27  ;;  %v7201_v56 = vmul.f32 %v8933_v8, %v10791_v7  ;;  %v8935_v37 = vadd.f32 %v7062_v61, %v10728_v4 }
 0x3d4   : > { %v7242_v36 = vadd.f32 %v10796_v34, %v7203_v14  ;;  %v7204_v23 = vmul.f32 %v8934_v10, %v10791_v7 }
 0x3d5   : > { %v7240_v32 = vadd.f32 %v10796_v34, %v7201_v56  ;;  %v7202_v45 = vmul.f32 %v8935_v37, %v10791_v7  ;;  %8894 = vmatprep.mubr.msk.bf16.mxu0 %vm5139_vm3, %v7298_v24 }
 0x3d6   : > { %v7243_v42 = vadd.f32 %v10796_v34, %v7204_v23  ;;  %8895 = vmatmul.mubr.msk.bf16.gmra.mrb[120].mxu0 %vm5139_vm3, %v7299_v3  ;;  %v7274_v43 = vmax.f32 %v7242_v36, 0.0 }
 0x3d7   : > { %v7241_v21 = vadd.f32 %v10796_v34, %v7202_v45  ;;  %v8870_v58 = vpop.f32.mrb[24].mxu1  ;;  %v7272_v13 = vmax.f32 %v7240_v32, 0.0 }
 0x3d8   : > { %v7275_v6 = vmax.f32 %v7243_v42, 0.0  ;;  %v8936_v4 = vadd.f32 %v8870_v58, %v10734_v0  ;;  %v7075_v29 = vpop.f32.mrb[25].mxu1 }
 0x3d9   : > { %v7273_v53 = vmax.f32 %v7241_v21, 0.0  ;;  %v8937_v50 = vadd.f32 %v7075_v29, %v10736_v1  ;;  %v8871_v38 = vpop.f32.mrb[26].mxu1 }
 0x3da   : > { %v7301_v5 = vpack.c.bf16 %v7275_v6, %v7274_v43  ;;  %v7207_v12 = vmul.f32 %v8936_v4, %v10791_v7  ;;  %v8938_v46 = vadd.f32 %v8871_v38, %v10738_v18  ;;  %v7078_v16 = vpop.f32.mrb[27].mxu1 }
 0x3db   : > { %v7300_v57 = vpack.c.bf16 %v7273_v53, %v7272_v13  ;;  %v7205_v28 = vmul.f32 %v8937_v50, %v10791_v7  ;;  %v8939_v48 = vadd.f32 %v7078_v16, %v10740_v25 }
 0x3dc   : > { %v7246_v33 = vadd.f32 %v10796_v34, %v7207_v12  ;;  %v7208_v0 = vmul.f32 %v8938_v46, %v10791_v7 }
 0x3dd   : > { %v7244_v31 = vadd.f32 %v10796_v34, %v7205_v28  ;;  %v7206_v1 = vmul.f32 %v8939_v48, %v10791_v7  ;;  %8898 = vmatprep.mubr.msk.bf16.mxu0 %vm5139_vm3, %v7300_v57 }
 0x3de   : > { %v7247_v2 = vadd.f32 %v10796_v34, %v7208_v0  ;;  %8899 = vmatmul.mubr.msk.bf16.gmra.mrb[124].mxu0 %vm5139_vm3, %v7301_v5  ;;  %v7278_v59 = vmax.f32 %v7246_v33, 0.0 }
 0x3df   : > { %v7245_v18 = vadd.f32 %v10796_v34, %v7206_v1  ;;  %v8874_v49 = vpop.f32.mrb[28].mxu1  ;;  %v7276_v9 = vmax.f32 %v7244_v31, 0.0 }
 0x3e0   : > { %v7279_v52 = vmax.f32 %v7247_v2, 0.0  ;;  %v8940_v25 = vadd.f32 %v8874_v49, %v10746_v55  ;;  %v7091_v11 = vpop.f32.mrb[29].mxu1 }
 0x3e1   : > { %v7277_v30 = vmax.f32 %v7245_v18, 0.0  ;;  %v8941_v27 = vadd.f32 %v7091_v11, %v10748_v60  ;;  %v8875_v15 = vpop.f32.mrb[30].mxu1 }
 0x3e2   : > { %v7303_v8 = vpack.c.bf16 %v7279_v52, %v7278_v59  ;;  %v7211_v22 = vmul.f32 %v8940_v25, %v10791_v7  ;;  %v8942_v3 = vadd.f32 %v8875_v15, %v10750_v35  ;;  %v7094_v14 = vpop.f32.mrb[31].mxu1 }
 0x3e3   : > { %v7302_v10 = vpack.c.bf16 %v7277_v30, %v7276_v9  ;;  %v7209_v61 = vmul.f32 %v8941_v27, %v10791_v7  ;;  %v8943_v24 = vadd.f32 %v7094_v14, %v10752_v40 }
 0x3e4   : > { %v7250_v56 = vadd.f32 %v10796_v34, %v7211_v22  ;;  %v7212_v55 = vmul.f32 %v8942_v3, %v10791_v7 }
 0x3e5   : > { %v7248_v37 = vadd.f32 %v10796_v34, %v7209_v61  ;;  %v7210_v60 = vmul.f32 %v8943_v24, %v10791_v7  ;;  %8902 = vmatprep.mubr.msk.bf16.mxu0 %vm5139_vm3, %v7302_v10 }
 0x3e6   : > { %v7251_v36 = vadd.f32 %v10796_v34, %v7212_v55  ;;  %8903 = vmatmul.mubr.msk.bf16.gmra.mrb[128].mxu0 %vm5139_vm3, %v7303_v8  ;;  %v7282_v32 = vmax.f32 %v7250_v56, 0.0 }
 0x3e7   : > { %v7249_v35 = vadd.f32 %v10796_v34, %v7210_v60  ;;  %v8878_v23 = vpop.f32.mrb[0].mxu1  ;;  %v7280_v21 = vmax.f32 %v7248_v37, 0.0 }
 0x3e8   : > { %v7283_v45 = vmax.f32 %v7251_v36, 0.0  ;;  %v8944_v40 = vadd.f32 %v8878_v23, %v10671_v47  ;;  %v7107_v42 = vpop.f32.mrb[1].mxu1 }
 0x3e9   : > { %v7281_v58 = vmax.f32 %v7249_v35, 0.0  ;;  %v8945_v43 = vadd.f32 %v7107_v42, %v10673_v39  ;;  %v8879_v6 = vpop.f32.mrb[2].mxu1 }
 0x3ea   : > { %v7305_v4 = vpack.c.bf16 %v7283_v45, %v7282_v32  ;;  %v7215_v29 = vmul.f32 %v8944_v40, %v10791_v7  ;;  %v8946_v13 = vadd.f32 %v8879_v6, %v10675_v41  ;;  %v7110_v53 = vpop.f32.mrb[3].mxu1 }
 0x3eb   : > { %v7304_v50 = vpack.c.bf16 %v7281_v58, %v7280_v21  ;;  %v7213_v38 = vmul.f32 %v8945_v43, %v10791_v7  ;;  %v8947_v5 = vadd.f32 %v7110_v53, %v10677_v62 }
 0x3ec   : > { %v7254_v12 = vadd.f32 %v10796_v34, %v7215_v29  ;;  %v7216_v47 = vmul.f32 %v8946_v13, %v10791_v7 }
 0x3ed   : > { %v7252_v46 = vadd.f32 %v10796_v34, %v7213_v38  ;;  %v7214_v39 = vmul.f32 %v8947_v5, %v10791_v7  ;;  %8906 = vmatprep.mubr.msk.bf16.mxu0 %vm5139_vm3, %v7304_v50 }
 0x3ee   : > { %v7255_v16 = vadd.f32 %v10796_v34, %v7216_v47  ;;  %8907 = vmatmul.mubr.msk.bf16.gmra.mrb[132].mxu0 %vm5139_vm3, %v7305_v4  ;;  %v7286_v28 = vmax.f32 %v7254_v12, 0.0 }
 0x3ef   : > { %v7253_v41 = vadd.f32 %v10796_v34, %v7214_v39  ;;  %v8882_v57 = vpop.f32.mrb[4].mxu1  ;;  %v7284_v0 = vmax.f32 %v7252_v46, 0.0 }
 0x3f0   : > { %v7287_v48 = vmax.f32 %v7255_v16, 0.0  ;;  %v8948_v62 = vadd.f32 %v8882_v57, %v10684_v54  ;;  %v7123_v33 = vpop.f32.mrb[5].mxu1 }
 0x3f1   : > { %v7285_v31 = vmax.f32 %v7253_v41, 0.0  ;;  %v8949_v1 = vadd.f32 %v7123_v33, %v10686_v19  ;;  %v8883_v2 = vpop.f32.mrb[6].mxu1 }
 0x3f2   : > { %v7307_v18 = vpack.c.bf16 %v7287_v48, %v7286_v28  ;;  %v7219_v49 = vmul.f32 %v8948_v62, %v10791_v7  ;;  %v8950_v59 = vadd.f32 %v8883_v2, %v10688_v51  ;;  %v7126_v52 = vpop.f32.mrb[7].mxu1 }
 0x3f3   : > { %v7306_v25 = vpack.c.bf16 %v7285_v31, %v7284_v0  ;;  %v7217_v11 = vmul.f32 %v8949_v1, %v10791_v7  ;;  %v8951_v9 = vadd.f32 %v7126_v52, %v10690_v17 }
 0x3f4   : > { %v7258_v30 = vadd.f32 %v10796_v34, %v7219_v49  ;;  %v7220_v54 = vmul.f32 %v8950_v59, %v10791_v7 }
 0x3f5   : > { %v7256_v27 = vadd.f32 %v10796_v34, %v7217_v11  ;;  %v7218_v19 = vmul.f32 %v8951_v9, %v10791_v7  ;;  %8910 = vmatprep.mubr.msk.bf16.mxu0 %vm5139_vm3, %v7306_v25 }
 0x3f6   : > { %v7259_v15 = vadd.f32 %v10796_v34, %v7220_v54  ;;  %8911 = vmatmul.mubr.msk.bf16.gmra.mrb[136].mxu0 %vm5139_vm3, %v7307_v18  ;;  %v7290_v22 = vmax.f32 %v7258_v30, 0.0 }
 0x3f7   : > { %v7257_v51 = vadd.f32 %v10796_v34, %v7218_v19  ;;  %v8886_v8 = vpop.f32.mrb[8].mxu1  ;;  %v7288_v10 = vmax.f32 %v7256_v27, 0.0 }
 0x3f8   : > { %v7291_v3 = vmax.f32 %v7259_v15, 0.0  ;;  %v8952_v17 = vadd.f32 %v8886_v8, %v10696_v26  ;;  %v7139_v14 = vpop.f32.mrb[9].mxu1 }
 0x3f9   : > { %v7289_v61 = vmax.f32 %v7257_v51, 0.0  ;;  %v8953_v24 = vadd.f32 %v7139_v14, %v10698_v20  ;;  %v8887_v56 = vpop.f32.mrb[10].mxu1 }
 0x3fa   : > { %v7309_v55 = vpack.c.bf16 %v7291_v3, %v7290_v22  ;;  %v7223_v37 = vmul.f32 %v8952_v17, %v10791_v7  ;;  %v8954_v60 = vadd.f32 %v8887_v56, %v10700_v63  ;;  %v7142_v36 = vpop.f32.mrb[11].mxu1 }
 0x3fb   : > { %v7308_v35 = vpack.c.bf16 %v7289_v61, %v7288_v10  ;;  %v7221_v23 = vmul.f32 %v8953_v24, %v10791_v7  ;;  %v8955_v32 = vadd.f32 %v7142_v36, %v10702_v44 }
 0x3fc   : > { %v7262_v45 = vadd.f32 %v10796_v34, %v7223_v37  ;;  %v7224_v26 = vmul.f32 %v8954_v60, %v10791_v7 }
 0x3fd   : > { %v7260_v40 = vadd.f32 %v10796_v34, %v7221_v23  ;;  %v7222_v20 = vmul.f32 %v8955_v32, %v10791_v7  ;;  %8914 = vmatprep.mubr.msk.bf16.mxu0 %vm5139_vm3, %v7308_v35  ;;  %v10908_v7 = vld [vmem:[%s11102_s8] ss:$0 sm:$0xff] }
 0x3fe   : > { %v7263_v42 = vadd.f32 %v10796_v34, %v7224_v26  ;;  %8915 = vmatmul.mubr.msk.bf16.gmra.mrb[140].mxu0 %vm5139_vm3, %v7309_v55  ;;  %v7294_v21 = vmax.f32 %v7262_v45, 0.0 }
 0x3ff   : > { %v7261_v63 = vadd.f32 %v10796_v34, %v7222_v20  ;;  %v7292_v44 = vmax.f32 %v7260_v40, 0.0  ;;  %v10913_v34 = vld [vmem:[%s11103_s9] ss:$0 sm:$0xff] }
 0x400   : > { %v7295_v58 = vmax.f32 %v7263_v42, 0.0 }
 0x401   : > { %v7293_v43 = vmax.f32 %v7261_v63, 0.0 }
 0x402   : > { %v7311_v6 = vpack.c.bf16 %v7295_v58, %v7294_v21 }
 0x403   : > { %v7310_v4 = vpack.c.bf16 %v7293_v43, %v7292_v44 }
 0x405   : > { %8918 = vmatprep.mubr.msk.bf16.mxu0 %vm5139_vm3, %v7310_v4 }
 0x406   : > { %8919 = vmatmul.mubr.msk.bf16.gmra.mrb[144].mxu0 %vm5139_vm3, %v7311_v6 }
 0x4a1   : > { %v8892_v29 = vpop.f32.mrb[116].mxu0 }
 0x4a2   : > { %v7534_v13 = vmul.f32 %v8892_v29, %v10908_v7  ;;  %v7398_v53 = vpop.f32.mrb[117].mxu0 }
 0x4a3   : > { %v7532_v50 = vmul.f32 %v10908_v7, %v7398_v53  ;;  %v8893_v38 = vpop.f32.mrb[118].mxu0 }
 0x4a4   : > { %v7573_v5 = vadd.f32 %v10913_v34, %v7534_v13  ;;  %v7535_v12 = vmul.f32 %v8893_v38, %v10908_v7  ;;  %v7401_v47 = vpop.f32.mrb[119].mxu0 }
 0x4a5   : > { %v7571_v46 = vadd.f32 %v10913_v34, %v7532_v50  ;;  %v7533_v39 = vmul.f32 %v10908_v7, %v7401_v47 }
 0x4a6   : > { %v8271_v16 = vpack.c.bf16 %v7573_v5, %v7573_v5  ;;  %v7574_v41 = vadd.f32 %v10913_v34, %v7535_v12  ;;  %v7767_v49 = vsel %vm2669_vm1, %v7573_v5, 0.0 }
 0x4a7   : > { %v8269_v57 = vpack.c.bf16 %v7571_v46, %v7571_v46  ;;  %v7572_v28 = vadd.f32 %v10913_v34, %v7533_v39  ;;  %v7764_v62 = vsel %vm2669_vm1, %v7571_v46, 0.0 }
 0x4a8   : > { %7734 = vst.msk [vmem:[%s10923_s29 + $0x8] sm:$0xf] %vm7731_vm8, %v8271_v16  ;;  %v8272_v48 = vpack.c.bf16 %v7574_v41, %v7574_v41  ;;  %v7769_v54 = vsel %vm2669_vm1, %v7574_v41, 0.0 }
 0x4a9   : > { %7732 = vst.msk [vmem:[%s10923_s29] sm:$0xf] %vm7731_vm8, %v8269_v57  ;;  %v8270_v33 = vpack.c.bf16 %v7572_v28, %v7572_v28  ;;  %v7765_v0 = vsel %vm2669_vm1, %v7572_v28, 0.0  ;;  %v8896_v31 = vpop.f32.mrb[120].mxu0 }
 0x4aa   : > { %7735 = vst.msk [vmem:[%s10923_s29 + $0xc] sm:$0xf] %vm7731_vm8, %v8272_v48  ;;  %v7766_v1 = vadd.f32 %v7765_v0, %v7764_v62  ;;  %v7538_v2 = vmul.f32 %v8896_v31, %v10908_v7  ;;  %v7414_v18 = vpop.f32.mrb[121].mxu0 }
 0x4ab   : > { %7733 = vst.msk [vmem:[%s10923_s29 + $0x4] sm:$0xf] %vm7731_vm8, %v8270_v33  ;;  %v7536_v59 = vmul.f32 %v10908_v7, %v7414_v18  ;;  %v8897_v52 = vpop.f32.mrb[122].mxu0 }
 0x4ac   : > { %v7768_v25 = vadd.f32 %v7767_v49, %v7766_v1  ;;  %v7577_v11 = vadd.f32 %v10913_v34, %v7538_v2  ;;  %v7539_v9 = vmul.f32 %v8897_v52, %v10908_v7  ;;  %v7417_v30 = vpop.f32.mrb[123].mxu0 }
 0x4ad   : > { %v7575_v27 = vadd.f32 %v10913_v34, %v7536_v59  ;;  %v7537_v19 = vmul.f32 %v10908_v7, %v7417_v30 }
 0x4ae   : > { %v8275_v15 = vpack.c.bf16 %v7577_v11, %v7577_v11  ;;  %v7770_v51 = vadd.f32 %v7769_v54, %v7768_v25  ;;  %v7578_v8 = vadd.f32 %v10913_v34, %v7539_v9  ;;  %v7775_v36 = vsel %vm2669_vm1, %v7577_v11, 0.0 }
 0x4af   : > { %v8273_v22 = vpack.c.bf16 %v7575_v27, %v7575_v27  ;;  %v7771_v3 = vsel %vm2669_vm1, %v7575_v27, 0.0  ;;  %v7576_v17 = vadd.f32 %v10913_v34, %v7537_v19 }
 0x4b0   : > { %7738 = vst.msk [vmem:[%s10923_s29 + $0x18] sm:$0xf] %vm7731_vm8, %v8275_v15  ;;  %v7772_v14 = vadd.f32 %v7771_v3, %v7770_v51  ;;  %v8276_v10 = vpack.c.bf16 %v7578_v8, %v7578_v8  ;;  %v7777_v20 = vsel %vm2669_vm1, %v7578_v8, 0.0 }
 0x4b1   : > { %7736 = vst.msk [vmem:[%s10923_s29 + $0x10] sm:$0xf] %vm7731_vm8, %v8273_v22  ;;  %v8274_v61 = vpack.c.bf16 %v7576_v17, %v7576_v17  ;;  %v7773_v24 = vsel %vm2669_vm1, %v7576_v17, 0.0  ;;  %v8900_v56 = vpop.f32.mrb[124].mxu0 }
 0x4b2   : > { %7739 = vst.msk [vmem:[%s10923_s29 + $0x1c] sm:$0xf] %vm7731_vm8, %v8276_v10  ;;  %v7774_v55 = vadd.f32 %v7773_v24, %v7772_v14  ;;  %v7542_v37 = vmul.f32 %v8900_v56, %v10908_v7  ;;  %v7430_v60 = vpop.f32.mrb[125].mxu0 }
 0x4b3   : > { %7737 = vst.msk [vmem:[%s10923_s29 + $0x14] sm:$0xf] %vm7731_vm8, %v8274_v61  ;;  %v7540_v35 = vmul.f32 %v10908_v7, %v7430_v60  ;;  %v8901_v23 = vpop.f32.mrb[126].mxu0 }
 0x4b4   : > { %v7776_v32 = vadd.f32 %v7775_v36, %v7774_v55  ;;  %v7581_v45 = vadd.f32 %v10913_v34, %v7542_v37  ;;  %v7543_v26 = vmul.f32 %v8901_v23, %v10908_v7  ;;  %v7433_v40 = vpop.f32.mrb[127].mxu0 }
 0x4b5   : > { %v7579_v42 = vadd.f32 %v10913_v34, %v7540_v35  ;;  %v7541_v63 = vmul.f32 %v10908_v7, %v7433_v40 }
 0x4b6   : > { %v8279_v21 = vpack.c.bf16 %v7581_v45, %v7581_v45  ;;  %v7778_v58 = vadd.f32 %v7777_v20, %v7776_v32  ;;  %v7582_v44 = vadd.f32 %v10913_v34, %v7543_v26  ;;  %v7783_v46 = vsel %vm2669_vm1, %v7581_v45, 0.0 }
 0x4b7   : > { %v8277_v43 = vpack.c.bf16 %v7579_v42, %v7579_v42  ;;  %v7779_v6 = vsel %vm2669_vm1, %v7579_v42, 0.0  ;;  %v7580_v4 = vadd.f32 %v10913_v34, %v7541_v63 }
 0x4b8   : > { %7742 = vst.msk [vmem:[%s10923_s29 + $0x28] sm:$0xf] %vm7731_vm8, %v8279_v21  ;;  %v7780_v29 = vadd.f32 %v7779_v6, %v7778_v58  ;;  %v8280_v13 = vpack.c.bf16 %v7582_v44, %v7582_v44  ;;  %v7785_v62 = vsel %vm2669_vm1, %v7582_v44, 0.0 }
 0x4b9   : > { %7740 = vst.msk [vmem:[%s10923_s29 + $0x20] sm:$0xf] %vm7731_vm8, %v8277_v43  ;;  %v8278_v53 = vpack.c.bf16 %v7580_v4, %v7580_v4  ;;  %v7781_v50 = vsel %vm2669_vm1, %v7580_v4, 0.0  ;;  %v8904_v38 = vpop.f32.mrb[128].mxu0 }
 0x4ba   : > { %7743 = vst.msk [vmem:[%s10923_s29 + $0x2c] sm:$0xf] %vm7731_vm8, %v8280_v13  ;;  %v7782_v5 = vadd.f32 %v7781_v50, %v7780_v29  ;;  %v7546_v12 = vmul.f32 %v8904_v38, %v10908_v7  ;;  %v7446_v47 = vpop.f32.mrb[129].mxu0 }
 0x4bb   : > { %7741 = vst.msk [vmem:[%s10923_s29 + $0x24] sm:$0xf] %vm7731_vm8, %v8278_v53  ;;  %v7544_v39 = vmul.f32 %v10908_v7, %v7446_v47  ;;  %v8905_v16 = vpop.f32.mrb[130].mxu0 }
 0x4bc   : > { %v7784_v41 = vadd.f32 %v7783_v46, %v7782_v5  ;;  %v7585_v57 = vadd.f32 %v10913_v34, %v7546_v12  ;;  %v7547_v28 = vmul.f32 %v8905_v16, %v10908_v7  ;;  %v7449_v48 = vpop.f32.mrb[131].mxu0 }
 0x4bd   : > { %v7583_v33 = vadd.f32 %v10913_v34, %v7544_v39  ;;  %v7545_v0 = vmul.f32 %v10908_v7, %v7449_v48 }
 0x4be   : > { %v8283_v31 = vpack.c.bf16 %v7585_v57, %v7585_v57  ;;  %v7786_v1 = vadd.f32 %v7785_v62, %v7784_v41  ;;  %v7586_v2 = vadd.f32 %v10913_v34, %v7547_v28  ;;  %v7791_v15 = vsel %vm2669_vm1, %v7585_v57, 0.0 }
 0x4bf   : > { %v8281_v18 = vpack.c.bf16 %v7583_v33, %v7583_v33  ;;  %v7787_v49 = vsel %vm2669_vm1, %v7583_v33, 0.0  ;;  %v7584_v59 = vadd.f32 %v10913_v34, %v7545_v0 }
 0x4c0   : > { %7746 = vst.msk [vmem:[%s10923_s29 + $0x38] sm:$0xf] %vm7731_vm8, %v8283_v31  ;;  %v7788_v52 = vadd.f32 %v7787_v49, %v7786_v1  ;;  %v8284_v25 = vpack.c.bf16 %v7586_v2, %v7586_v2  ;;  %v7793_v10 = vsel %vm2669_vm1, %v7586_v2, 0.0 }
 0x4c1   : > { %7744 = vst.msk [vmem:[%s10923_s29 + $0x30] sm:$0xf] %vm7731_vm8, %v8281_v18  ;;  %v8282_v11 = vpack.c.bf16 %v7584_v59, %v7584_v59  ;;  %v7789_v9 = vsel %vm2669_vm1, %v7584_v59, 0.0  ;;  %v8908_v30 = vpop.f32.mrb[132].mxu0 }
 0x4c2   : > { %7747 = vst.msk [vmem:[%s10923_s29 + $0x3c] sm:$0xf] %vm7731_vm8, %v8284_v25  ;;  %v7790_v54 = vadd.f32 %v7789_v9, %v7788_v52  ;;  %v7550_v27 = vmul.f32 %v8908_v30, %v10908_v7  ;;  %v7462_v19 = vpop.f32.mrb[133].mxu0 }
 0x4c3   : > { %7745 = vst.msk [vmem:[%s10923_s29 + $0x34] sm:$0xf] %vm7731_vm8, %v8282_v11  ;;  %v7548_v51 = vmul.f32 %v10908_v7, %v7462_v19  ;;  %v8909_v8 = vpop.f32.mrb[134].mxu0 }
 0x4c4   : > { %v7792_v22 = vadd.f32 %v7791_v15, %v7790_v54  ;;  %v7589_v3 = vadd.f32 %v10913_v34, %v7550_v27  ;;  %v7551_v17 = vmul.f32 %v8909_v8, %v10908_v7  ;;  %v7465_v14 = vpop.f32.mrb[135].mxu0 }
 0x4c5   : > { %v7587_v61 = vadd.f32 %v10913_v34, %v7548_v51  ;;  %v7549_v24 = vmul.f32 %v10908_v7, %v7465_v14 }
 0x4c6   : > { %v8287_v56 = vpack.c.bf16 %v7589_v3, %v7589_v3  ;;  %v7794_v55 = vadd.f32 %v7793_v10, %v7792_v22  ;;  %v7590_v37 = vadd.f32 %v10913_v34, %v7551_v17  ;;  %v7799_v21 = vsel %vm2669_vm1, %v7589_v3, 0.0 }
 0x4c7   : > { %v8285_v60 = vpack.c.bf16 %v7587_v61, %v7587_v61  ;;  %v7795_v36 = vsel %vm2669_vm1, %v7587_v61, 0.0  ;;  %v7588_v35 = vadd.f32 %v10913_v34, %v7549_v24 }
 0x4c8   : > { %7750 = vst.msk [vmem:[%s10923_s29 + $0x48] sm:$0xf] %vm7731_vm8, %v8287_v56  ;;  %v7796_v23 = vadd.f32 %v7795_v36, %v7794_v55  ;;  %v8288_v32 = vpack.c.bf16 %v7590_v37, %v7590_v37  ;;  %v7801_v13 = vsel %vm2669_vm1, %v7590_v37, 0.0 }
 0x4c9   : > { %7748 = vst.msk [vmem:[%s10923_s29 + $0x40] sm:$0xf] %vm7731_vm8, %v8285_v60  ;;  %v8286_v45 = vpack.c.bf16 %v7588_v35, %v7588_v35  ;;  %v7797_v26 = vsel %vm2669_vm1, %v7588_v35, 0.0  ;;  %v8912_v40 = vpop.f32.mrb[136].mxu0 }
 0x4ca   : > { %7751 = vst.msk [vmem:[%s10923_s29 + $0x4c] sm:$0xf] %vm7731_vm8, %v8288_v32  ;;  %v7798_v20 = vadd.f32 %v7797_v26, %v7796_v23  ;;  %v7554_v42 = vmul.f32 %v8912_v40, %v10908_v7  ;;  %v7478_v63 = vpop.f32.mrb[137].mxu0 }
 0x4cb   : > { %7749 = vst.msk [vmem:[%s10923_s29 + $0x44] sm:$0xf] %vm7731_vm8, %v8286_v45  ;;  %v7552_v58 = vmul.f32 %v10908_v7, %v7478_v63  ;;  %v8913_v44 = vpop.f32.mrb[138].mxu0 }
 0x4cc   : > { %v7800_v43 = vadd.f32 %v7799_v21, %v7798_v20  ;;  %v7593_v6 = vadd.f32 %v10913_v34, %v7554_v42  ;;  %v7555_v4 = vmul.f32 %v8913_v44, %v10908_v7  ;;  %v7481_v29 = vpop.f32.mrb[139].mxu0 }
 0x4cd   : > { %v7591_v53 = vadd.f32 %v10913_v34, %v7552_v58  ;;  %v7553_v50 = vmul.f32 %v10908_v7, %v7481_v29 }
 0x4ce   : > { %v8291_v38 = vpack.c.bf16 %v7593_v6, %v7593_v6  ;;  %v7802_v5 = vadd.f32 %v7801_v13, %v7800_v43  ;;  %v7594_v12 = vadd.f32 %v10913_v34, %v7555_v4  ;;  %v7807_v31 = vsel %vm2669_vm1, %v7593_v6, 0.0 }
 0x4cf   : > { %v8289_v47 = vpack.c.bf16 %v7591_v53, %v7591_v53  ;;  %v7803_v46 = vsel %vm2669_vm1, %v7591_v53, 0.0  ;;  %v7592_v39 = vadd.f32 %v10913_v34, %v7553_v50 }
 0x4d0   : > { %7754 = vst.msk [vmem:[%s10923_s29 + $0x58] sm:$0xf] %vm7731_vm8, %v8291_v38  ;;  %v7804_v16 = vadd.f32 %v7803_v46, %v7802_v5  ;;  %v8292_v41 = vpack.c.bf16 %v7594_v12, %v7594_v12  ;;  %v7809_v25 = vsel %vm2669_vm1, %v7594_v12, 0.0 }
 0x4d1   : > { %7752 = vst.msk [vmem:[%s10923_s29 + $0x50] sm:$0xf] %vm7731_vm8, %v8289_v47  ;;  %v8290_v57 = vpack.c.bf16 %v7592_v39, %v7592_v39  ;;  %v7805_v28 = vsel %vm2669_vm1, %v7592_v39, 0.0  ;;  %v8916_v48 = vpop.f32.mrb[140].mxu0 }
 0x4d2   : > { %7755 = vst.msk [vmem:[%s10923_s29 + $0x5c] sm:$0xf] %vm7731_vm8, %v8292_v41  ;;  %v7806_v62 = vadd.f32 %v7805_v28, %v7804_v16  ;;  %v7558_v33 = vmul.f32 %v8916_v48, %v10908_v7  ;;  %v7494_v0 = vpop.f32.mrb[141].mxu0 }
 0x4d3   : > { %7753 = vst.msk [vmem:[%s10923_s29 + $0x54] sm:$0xf] %vm7731_vm8, %v8290_v57  ;;  %v7556_v1 = vmul.f32 %v10908_v7, %v7494_v0  ;;  %v8917_v2 = vpop.f32.mrb[142].mxu0 }
 0x4d4   : > { %v7808_v18 = vadd.f32 %v7807_v31, %v7806_v62  ;;  %v7597_v49 = vadd.f32 %v10913_v34, %v7558_v33  ;;  %v7559_v59 = vmul.f32 %v8917_v2, %v10908_v7  ;;  %v7497_v52 = vpop.f32.mrb[143].mxu0 }
 0x4d5   : > { %v7595_v11 = vadd.f32 %v10913_v34, %v7556_v1  ;;  %v7557_v9 = vmul.f32 %v10908_v7, %v7497_v52 }
 0x4d6   : > { %v8295_v30 = vpack.c.bf16 %v7597_v49, %v7597_v49  ;;  %v7810_v54 = vadd.f32 %v7809_v25, %v7808_v18  ;;  %v7598_v27 = vadd.f32 %v10913_v34, %v7559_v59  ;;  %v7815_v56 = vsel %vm2669_vm1, %v7597_v49, 0.0 }
 0x4d7   : > { %v8293_v19 = vpack.c.bf16 %v7595_v11, %v7595_v11  ;;  %v7811_v15 = vsel %vm2669_vm1, %v7595_v11, 0.0  ;;  %v7596_v51 = vadd.f32 %v10913_v34, %v7557_v9 }
 0x4d8   : > { %7758 = vst.msk [vmem:[%s10923_s29 + $0x68] sm:$0xf] %vm7731_vm8, %v8295_v30  ;;  %v7812_v8 = vadd.f32 %v7811_v15, %v7810_v54  ;;  %v8296_v22 = vpack.c.bf16 %v7598_v27, %v7598_v27  ;;  %v7817_v32 = vsel %vm2669_vm1, %v7598_v27, 0.0 }
 0x4d9   : > { %7756 = vst.msk [vmem:[%s10923_s29 + $0x60] sm:$0xf] %vm7731_vm8, %v8293_v19  ;;  %v8294_v3 = vpack.c.bf16 %v7596_v51, %v7596_v51  ;;  %v7813_v17 = vsel %vm2669_vm1, %v7596_v51, 0.0  ;;  %v8920_v14 = vpop.f32.mrb[144].mxu0 }
 0x4da   : > { %7759 = vst.msk [vmem:[%s10923_s29 + $0x6c] sm:$0xf] %vm7731_vm8, %v8296_v22  ;;  %v7814_v10 = vadd.f32 %v7813_v17, %v7812_v8  ;;  %v7562_v61 = vmul.f32 %v8920_v14, %v10908_v7  ;;  %v7510_v24 = vpop.f32.mrb[145].mxu0 }
 0x4db   : > { %7757 = vst.msk [vmem:[%s10923_s29 + $0x64] sm:$0xf] %vm7731_vm8, %v8294_v3  ;;  %v7560_v55 = vmul.f32 %v10908_v7, %v7510_v24  ;;  %v8921_v37 = vpop.f32.mrb[146].mxu0 }
 0x4dc   : > { %v7816_v60 = vadd.f32 %v7815_v56, %v7814_v10  ;;  %v7601_v36 = vadd.f32 %v10913_v34, %v7562_v61  ;;  %v7563_v35 = vmul.f32 %v8921_v37, %v10908_v7  ;;  %v7513_v23 = vpop.f32.mrb[147].mxu0 }
 0x4dd   : > { %v7599_v45 = vadd.f32 %v10913_v34, %v7560_v55  ;;  %v7561_v26 = vmul.f32 %v10908_v7, %v7513_v23 }
 0x4de   : > { %v8299_v40 = vpack.c.bf16 %v7601_v36, %v7601_v36  ;;  %v7818_v20 = vadd.f32 %v7817_v32, %v7816_v60  ;;  %v7602_v42 = vadd.f32 %v10913_v34, %v7563_v35  ;;  %v7823_v29 = vsel %vm2669_vm1, %v7601_v36, 0.0 }
 0x4df   : > { %v8297_v63 = vpack.c.bf16 %v7599_v45, %v7599_v45  ;;  %v7819_v21 = vsel %vm2669_vm1, %v7599_v45, 0.0  ;;  %v7600_v58 = vadd.f32 %v10913_v34, %v7561_v26 }
 0x4e0   : > { %7762 = vst.msk [vmem:[%s10923_s29 + $0x78] sm:$0xf] %vm7731_vm8, %v8299_v40  ;;  %v7820_v44 = vadd.f32 %v7819_v21, %v7818_v20  ;;  %v8300_v43 = vpack.c.bf16 %v7602_v42, %v7602_v42  ;;  %v7825_v34 = vsel %vm2669_vm1, %v7602_v42, 0.0 }
 0x4e1   : > { %7760 = vst.msk [vmem:[%s10923_s29 + $0x70] sm:$0xf] %vm7731_vm8, %v8297_v63  ;;  %v8298_v6 = vpack.c.bf16 %v7600_v58, %v7600_v58  ;;  %v7821_v7 = vsel %vm2669_vm1, %v7600_v58, 0.0 }
 0x4e2   : > { %7763 = vst.msk [vmem:[%s10923_s29 + $0x7c] sm:$0xf] %vm7731_vm8, %v8300_v43  ;;  %v7822_v4 = vadd.f32 %v7821_v7, %v7820_v44 }
 0x4e3   : > { %7761 = vst.msk [vmem:[%s10923_s29 + $0x74] sm:$0xf] %vm7731_vm8, %v8298_v6 }
 0x4e4   : > { %v7824_v13 = vadd.f32 %v7823_v29, %v7822_v4 }
 0x4e6   : > { %v7826_v53 = vadd.f32 %v7825_v34, %v7824_v13 }
 0x4e8   : > { %v7827_v50 = vrot.slane %v7826_v53, 4 }
 0x4ea   : > { %v7828_v38 = vadd.f32 %v7827_v50, %v7826_v53 }
 0x4ec   : > { %v7829_v5 = vrot.slane %v7828_v38, 2 }
 0x4ee   : > { %v7830_v12 = vadd.f32 %v7829_v5, %v7828_v38 }
 0x4f0   : > { %v7831_v47 = vrot.slane %v7830_v12, 1 }
 0x4f2   : > { %v7832_v46 = vadd.f32 %v7831_v47, %v7830_v12 }
 0x4f4   : > { %7834 = vst.msk [vmem:[%s428_s13] sm:$0x1] %vm7833_vm9, %v7832_v46 }
 0x4f5 PF: > { %s22_s19 = sadd.s32 1, %s9250_s19   ;;  %s11195_s17 = smov %s9246_s18 }
 0x4f6   : > { %p19_p5 = scmp.ge.s32.totalorder %s22_s19, 4   ;;  %s11196_s18 = smov %s11198_s20 }
 0x4f8   :  { %21 = sbr.rel (!%p19_p5) target bundleno = 2 (0x2), region = 111 }

</bundles_post_ra>
